<compile_context>
chip_gen: v7x
topology: tpu7x:2x2x1
jax: 0.10.0
libtpu: 0.0.40
codegen_flags: <defaults>
</compile_context>

<pallas_src>
import functools

import numpy as np
import jax
import jax.numpy as jnp
from jax.experimental import pallas as pl
from jax.experimental.pallas import tpu as pltpu


def _lb_cnn_gibbs_kernel(sample_type, S,
                         alpha_ref, xsn_ref, a0_ref, by2_ref, bcm_ref, b0_ref,
                         u0_ref, us_ref, b0y_ref,
                         out_ref, z_ref):
    """Single-program kernel. Latent coordinate m on sublanes, (sample, batch) on lanes."""
    M, SN = z_ref.shape

    # compute_linear_pi, replicated over the S sample groups along the lane axis.
    lin_sn = a0_ref[...] + jnp.dot(alpha_ref[...], xsn_ref[...],
                                   preferred_element_type=jnp.float32)       # [M, SN]
    # constant part of the per-coordinate flip logit: 2*beta[y_n, j] + linear_pi[n, j]
    const_sn = by2_ref[...] + lin_sn                                          # [M, SN]

    bcm = bcm_ref[...]                                                        # [C, M]
    b0 = b0_ref[...]                                                          # [C, 1]

    # ---- initial Z (init_sample1 / init_sample2), Z in {-1, +1} --------------
    u0 = u0_ref[...]                                                          # [M, SN]
    if sample_type == 2:
        p0 = 1.0 / (1.0 + jnp.exp(-lin_sn))          # pi_pos, stable sigmoid
        z0 = jnp.where(u0 < p0, 1.0, -1.0)
    else:  # sample_type == 1
        z0 = jnp.where(u0 < 0.5, 1.0, -1.0)
    z0 = z0.astype(jnp.float32)                                               # [M, SN]

    # running class logits lg = beta_0 + beta @ Z, carried through the sweep
    lg = b0 + jnp.dot(bcm, z0, preferred_element_type=jnp.float32)            # [C, SN]

    u_all = us_ref[...]                                                       # [M, SN]

    # ---- gibbs_update: one sequential sweep, fully unrolled (static j) -------
    # gibbs_order is already applied as a coordinate relabeling in the wrapper,
    # so sweeping j = 0..M-1 here reproduces the permuted sweep.
    for j in range(M):
        zj = z0[j:j + 1, :]            # [1, SN]  coordinate j not yet updated this sweep
        bj = bcm[:, j:j + 1]           # [C, 1]
        cj = const_sn[j:j + 1, :]      # [1, SN]
        uj = u_all[j:j + 1, :]         # [1, SN]

        lg_pos = lg + (1.0 - zj) * bj                                         # [C, SN]
        lg_neg = lg_pos - 2.0 * bj                                            # [C, SN]

        # p(z_j=+1) = S_neg / (S_neg + exp(-c_j) * S_pos), S_± = sum_c exp(lg_±);
        # evaluated log/divide-free with max subtraction for stability.
        a = lg_pos - cj                                                       # [C, SN]
        m = jnp.max(jnp.maximum(a, lg_neg), axis=0, keepdims=True)            # [1, SN]
        num = jnp.sum(jnp.exp(lg_neg - m), axis=0, keepdims=True)             # [1, SN]
        den = num + jnp.sum(jnp.exp(a - m), axis=0, keepdims=True)            # [1, SN]

        s_new = jnp.where(uj * den < num, 1.0, -1.0).astype(jnp.float32)      # [1, SN]

        lg = lg + (s_new - zj) * bj                  # rank-1 logit update
        z_ref[j:j + 1, :] = s_new                    # lane-dense sublane-row store

    # ---- expectations & expected log-likelihood -------------------------------
    z_fin = z_ref[...]                                                        # [M, SN]
    # recompute class logits from the final state (avoid rank-1 f32 drift)
    lg_fin = b0 + jnp.dot(bcm, z_fin, preferred_element_type=jnp.float32)     # [C, SN]

    inv_s = 1.0 / float(S)

    # TermII = sum_n mean_s logsumexp_c(beta_0 + beta . Z)
    m2 = jnp.max(lg_fin, axis=0, keepdims=True)
    lse = m2 + jnp.log(jnp.sum(jnp.exp(lg_fin - m2), axis=0, keepdims=True))  # [1, SN]
    term_ii = jnp.sum(lse) * inv_s

    # TermI = sum_n beta_0[y_n] + sum_{n,m} EII[n,m] * beta[y_n, m]
    term_i = b0y_ref[0, 0] + 0.5 * inv_s * jnp.sum(z_fin * by2_ref[...])

    # TermIII = sum_{n,m} EI[n,m] * linear_pi[n,m]   (EI = mean_s (Z+1)/2)
    term_iii = 0.5 * inv_s * jnp.sum((z_fin + 1.0) * lin_sn)

    # TermIV = sum_{n,m} log(1 + exp(linear_pi)), stabilized softplus
    # (lin_sn is replicated S times along lanes, hence the 1/S factor)
    term_iv = inv_s * jnp.sum(jnp.maximum(lin_sn, 0.0)
                              + jnp.log(1.0 + jnp.exp(-jnp.abs(lin_sn))))

    out_ref[0, 0] = term_i - term_ii + term_iii - term_iv


def lb_cnn_gibbs_forward(x, y, params, *, num_samples, gibbs_order, rng_key,
                         sample_type=1):
    """Equivalent of LB_CNN_Gibbs.forward(x_in, y_in) -> E_log_likelihood (float32)."""
    if sample_type == 3:
        raise NotImplementedError(
            "sample_Type=3 (init_sample3) is not implemented in the Pallas kernel")
    if sample_type not in (1, 2):
        raise ValueError(f"unknown sample_Type {sample_type}")

    alpha_0, alpha, beta_0, beta = params
    N, F = x.shape
    M = alpha.shape[0]
    C = beta.shape[0]
    S = int(num_samples)
    SN = S * N

    # ---- glue (plain JAX): permutation relabeling, gathers, sample-tiling -----
    order = jnp.asarray(gibbs_order, dtype=jnp.int32)                         # [M]
    y = jnp.asarray(y, dtype=jnp.int32)
    x32 = x.astype(jnp.float32)

    alpha_perm = alpha.astype(jnp.float32)[order]                             # [M, F]
    a0_col = alpha_0.astype(jnp.float32)[order].reshape(M, 1)                 # [M, 1]
    b_cm = beta.astype(jnp.float32)[:, order]                                 # [C, M]
    b0_col = beta_0.astype(jnp.float32).reshape(C, 1)                         # [C, 1]

    by2 = 2.0 * beta.astype(jnp.float32)[y][:, order]                         # [N, M]
    by2_sn = jnp.tile(by2.T, (1, S))                                          # [M, SN]
    x_sn = jnp.tile(x32.T, (1, S))                                            # [F, SN]
    b0y_sum = jnp.sum(beta_0.astype(jnp.float32)[y]).reshape(1, 1)            # (1, 1)

    k0, k1 = jax.random.split(rng_key)
    u0 = jax.random.uniform(k0, (M, SN), dtype=jnp.float32)
    u_sweep = jax.random.uniform(k1, (M, SN), dtype=jnp.float32)

    kernel = functools.partial(_lb_cnn_gibbs_kernel, sample_type, S)
    vmem = pl.BlockSpec(memory_space=pltpu.MemorySpace.VMEM)
    smem = pl.BlockSpec(memory_space=pltpu.MemorySpace.SMEM)

    out = pl.pallas_call(
        kernel,
        out_shape=jax.ShapeDtypeStruct((1, 1), jnp.float32),
        in_specs=[vmem, vmem, vmem, vmem, vmem, vmem, vmem, vmem, smem],
        out_specs=smem,
        scratch_shapes=[pltpu.VMEM((M, SN), jnp.float32)],
    )(alpha_perm, x_sn, a0_col, by2_sn, b_cm, b0_col, u0, u_sweep, b0y_sum)
    return out[0, 0]


if __name__ == "__main__":
    # small shapes consistent with the module's forward
    N, F, M, C, S = 8, 16, 32, 4, 8   # batch, num_features, latent_size, classes, num_samples

    key = jax.random.PRNGKey(0)
    k1, k2, k3, k4, k5, k6, k7, k8 = jax.random.split(key, 8)

    init_c = 2.0 / np.sqrt(F)
    init_c2 = 2.0 / np.sqrt(M)
    alpha_0 = jax.random.normal(k1, (M,), dtype=jnp.float32)
    alpha = init_c * jax.random.normal(k2, (M, F), dtype=jnp.float32)
    beta_0 = jax.random.normal(k3, (C,), dtype=jnp.float32)
    beta = init_c2 * jax.random.normal(k4, (C, M), dtype=jnp.float32)

    x = jax.random.normal(k5, (N, F), dtype=jnp.float32)
    y = jax.random.randint(k6, (N,), 0, C)
    gibbs_order = jax.random.permutation(k7, M)

    ell = lb_cnn_gibbs_forward(
        x, y, (alpha_0, alpha, beta_0, beta),
        num_samples=S, gibbs_order=gibbs_order, rng_key=k8, sample_type=1)
    jax.block_until_ready(ell)
    assert np.isfinite(np.asarray(ell)), "non-finite log-likelihood"
    print("KERNEL_OK")
</pallas_src>

<mosaic_0001>
module attributes {stable_mosaic.version = 11 : i64} {
  func.func @_lb_cnn_gibbs_kernel(%arg0: memref<32x16xf32, #tpu.memory_space<vmem>>, %arg1: memref<16x64xf32, #tpu.memory_space<vmem>>, %arg2: memref<32x1xf32, #tpu.memory_space<vmem>>, %arg3: memref<32x64xf32, #tpu.memory_space<vmem>>, %arg4: memref<4x32xf32, #tpu.memory_space<vmem>>, %arg5: memref<4x1xf32, #tpu.memory_space<vmem>>, %arg6: memref<32x64xf32, #tpu.memory_space<vmem>>, %arg7: memref<32x64xf32, #tpu.memory_space<vmem>>, %arg8: memref<1x1xf32, #tpu.memory_space<smem>>, %arg9: memref<1x1xf32, #tpu.memory_space<smem>>, %arg10: memref<32x64xf32, #tpu.memory_space<vmem>>) attributes {dimension_semantics = [], scalar_prefetch = 0 : i64, scratch_operands = 1 : i64, tpu.core_type = #tpu.core_type<tc>} {
    %c0 = arith.constant 0 : index
    %c0_0 = arith.constant 0 : index
    %0 = vector.load %arg2[%c0, %c0_0] : memref<32x1xf32, #tpu.memory_space<vmem>>, vector<32x1xf32>
    %c0_1 = arith.constant 0 : index
    %c0_2 = arith.constant 0 : index
    %1 = vector.load %arg0[%c0_1, %c0_2] : memref<32x16xf32, #tpu.memory_space<vmem>>, vector<32x16xf32>
    %c0_3 = arith.constant 0 : index
    %c0_4 = arith.constant 0 : index
    %2 = vector.load %arg1[%c0_3, %c0_4] : memref<16x64xf32, #tpu.memory_space<vmem>>, vector<16x64xf32>
    %cst = arith.constant dense<0.000000e+00> : vector<32x64xf32>
    %3 = tpu.matmul %1, %2, %cst {dimension_numbers = #tpu.dot_dimension_numbers<[1], [0], [0], [1], [0, 0, 1, 1], [], []>} : vector<32x16xf32>, vector<16x64xf32>, vector<32x64xf32> -> vector<32x64xf32>
    %4 = vector.broadcast %0 : vector<32x1xf32> to vector<32x64xf32>
    %5 = arith.addf %4, %3 : vector<32x64xf32>
    %c0_5 = arith.constant 0 : index
    %c0_6 = arith.constant 0 : index
    %6 = vector.load %arg3[%c0_5, %c0_6] : memref<32x64xf32, #tpu.memory_space<vmem>>, vector<32x64xf32>
    %7 = arith.addf %6, %5 : vector<32x64xf32>
    %c0_7 = arith.constant 0 : index
    %c0_8 = arith.constant 0 : index
    %8 = vector.load %arg4[%c0_7, %c0_8] : memref<4x32xf32, #tpu.memory_space<vmem>>, vector<4x32xf32>
    %c0_9 = arith.constant 0 : index
    %c0_10 = arith.constant 0 : index
    %9 = vector.load %arg5[%c0_9, %c0_10] : memref<4x1xf32, #tpu.memory_space<vmem>>, vector<4x1xf32>
    %c0_11 = arith.constant 0 : index
    %c0_12 = arith.constant 0 : index
    %10 = vector.load %arg6[%c0_11, %c0_12] : memref<32x64xf32, #tpu.memory_space<vmem>>, vector<32x64xf32>
    %cst_13 = arith.constant 5.000000e-01 : f32
    %11 = vector.broadcast %cst_13 : f32 to vector<32x64xf32>
    %12 = arith.cmpf olt, %10, %11 : vector<32x64xf32>
    %cst_14 = arith.constant 1.000000e+00 : f32
    %cst_15 = arith.constant -1.000000e+00 : f32
    %13 = vector.broadcast %cst_14 : f32 to vector<32x64xf32>
    %14 = vector.broadcast %cst_15 : f32 to vector<32x64xf32>
    %15 = arith.select %12, %13, %14 : vector<32x64xi1>, vector<32x64xf32>
    %cst_16 = arith.constant dense<0.000000e+00> : vector<4x64xf32>
    %16 = tpu.matmul %8, %15, %cst_16 {dimension_numbers = #tpu.dot_dimension_numbers<[1], [0], [0], [1], [0, 0, 1, 1], [], []>} : vector<4x32xf32>, vector<32x64xf32>, vector<4x64xf32> -> vector<4x64xf32>
    %17 = vector.broadcast %9 : vector<4x1xf32> to vector<4x64xf32>
    %18 = arith.addf %17, %16 : vector<4x64xf32>
    %c0_17 = arith.constant 0 : index
    %c0_18 = arith.constant 0 : index
    %19 = vector.load %arg7[%c0_17, %c0_18] : memref<32x64xf32, #tpu.memory_space<vmem>>, vector<32x64xf32>
    %20 = vector.extract_strided_slice %15 {offsets = [0, 0], sizes = [1, 64], strides = [1, 1]} : vector<32x64xf32> to vector<1x64xf32>
    %21 = vector.extract_strided_slice %8 {offsets = [0, 0], sizes = [4, 1], strides = [1, 1]} : vector<4x32xf32> to vector<4x1xf32>
    %22 = vector.extract_strided_slice %7 {offsets = [0, 0], sizes = [1, 64], strides = [1, 1]} : vector<32x64xf32> to vector<1x64xf32>
    %23 = vector.extract_strided_slice %19 {offsets = [0, 0], sizes = [1, 64], strides = [1, 1]} : vector<32x64xf32> to vector<1x64xf32>
    %cst_19 = arith.constant 1.000000e+00 : f32
    %24 = vector.broadcast %cst_19 : f32 to vector<1x64xf32>
    %25 = arith.subf %24, %20 : vector<1x64xf32>
    %26 = vector.broadcast %25 : vector<1x64xf32> to vector<4x64xf32>
    %27 = vector.broadcast %21 : vector<4x1xf32> to vector<4x64xf32>
    %28 = arith.mulf %26, %27 : vector<4x64xf32>
    %29 = arith.addf %18, %28 : vector<4x64xf32>
    %cst_20 = arith.constant 2.000000e+00 : f32
    %30 = vector.broadcast %cst_20 : f32 to vector<4x1xf32>
    %31 = arith.mulf %30, %21 : vector<4x1xf32>
    %32 = vector.broadcast %31 : vector<4x1xf32> to vector<4x64xf32>
    %33 = arith.subf %29, %32 : vector<4x64xf32>
    %34 = vector.broadcast %22 : vector<1x64xf32> to vector<4x64xf32>
    %35 = arith.subf %29, %34 : vector<4x64xf32>
    %36 = arith.maximumf %35, %33 : vector<4x64xf32>
    %cst_21 = arith.constant dense<0xFF800000> : vector<64xf32>
    %37 = vector.multi_reduction <maximumf>, %36, %cst_21 [0] : vector<4x64xf32> to vector<64xf32>
    %38 = vector.shape_cast %37 : vector<64xf32> to vector<1x64xf32>
    %39 = vector.broadcast %38 : vector<1x64xf32> to vector<4x64xf32>
    %40 = arith.subf %33, %39 : vector<4x64xf32>
    %41 = math.exp %40 : vector<4x64xf32>
    %cst_22 = arith.constant dense<0.000000e+00> : vector<64xf32>
    %42 = vector.multi_reduction <add>, %41, %cst_22 [0] : vector<4x64xf32> to vector<64xf32>
    %43 = vector.shape_cast %42 : vector<64xf32> to vector<1x64xf32>
    %44 = vector.broadcast %38 : vector<1x64xf32> to vector<4x64xf32>
    %45 = arith.subf %35, %44 : vector<4x64xf32>
    %46 = math.exp %45 : vector<4x64xf32>
    %cst_23 = arith.constant dense<0.000000e+00> : vector<64xf32>
    %47 = vector.multi_reduction <add>, %46, %cst_23 [0] : vector<4x64xf32> to vector<64xf32>
    %48 = vector.shape_cast %47 : vector<64xf32> to vector<1x64xf32>
    %49 = arith.addf %43, %48 : vector<1x64xf32>
    %50 = arith.mulf %23, %49 : vector<1x64xf32>
    %51 = arith.cmpf olt, %50, %43 : vector<1x64xf32>
    %cst_24 = arith.constant 1.000000e+00 : f32
    %cst_25 = arith.constant -1.000000e+00 : f32
    %52 = vector.broadcast %cst_24 : f32 to vector<1x64xf32>
    %53 = vector.broadcast %cst_25 : f32 to vector<1x64xf32>
    %54 = arith.select %51, %52, %53 : vector<1x64xi1>, vector<1x64xf32>
    %55 = arith.subf %54, %20 : vector<1x64xf32>
    %56 = vector.broadcast %55 : vector<1x64xf32> to vector<4x64xf32>
    %57 = vector.broadcast %21 : vector<4x1xf32> to vector<4x64xf32>
    %58 = arith.mulf %56, %57 : vector<4x64xf32>
    %59 = arith.addf %18, %58 : vector<4x64xf32>
    %c0_26 = arith.constant 0 : index
    %c0_27 = arith.constant 0 : index
    %60 = vector.load %arg10[%c0_26, %c0_27] : memref<32x64xf32, #tpu.memory_space<vmem>>, vector<1x64xf32>
    tpu.vector_store %arg10[%c0_26, %c0_27], %54 {strides = array<i32>} : memref<32x64xf32, #tpu.memory_space<vmem>>, vector<1x64xf32>,
    %61 = vector.extract_strided_slice %15 {offsets = [1, 0], sizes = [1, 64], strides = [1, 1]} : vector<32x64xf32> to vector<1x64xf32>
    %62 = vector.extract_strided_slice %8 {offsets = [0, 1], sizes = [4, 1], strides = [1, 1]} : vector<4x32xf32> to vector<4x1xf32>
    %63 = vector.extract_strided_slice %7 {offsets = [1, 0], sizes = [1, 64], strides = [1, 1]} : vector<32x64xf32> to vector<1x64xf32>
    %64 = vector.extract_strided_slice %19 {offsets = [1, 0], sizes = [1, 64], strides = [1, 1]} : vector<32x64xf32> to vector<1x64xf32>
    %cst_28 = arith.constant 1.000000e+00 : f32
    %65 = vector.broadcast %cst_28 : f32 to vector<1x64xf32>
    %66 = arith.subf %65, %61 : vector<1x64xf32>
    %67 = vector.broadcast %66 : vector<1x64xf32> to vector<4x64xf32>
    %68 = vector.broadcast %62 : vector<4x1xf32> to vector<4x64xf32>
    %69 = arith.mulf %67, %68 : vector<4x64xf32>
    %70 = arith.addf %59, %69 : vector<4x64xf32>
    %cst_29 = arith.constant 2.000000e+00 : f32
    %71 = vector.broadcast %cst_29 : f32 to vector<4x1xf32>
    %72 = arith.mulf %71, %62 : vector<4x1xf32>
    %73 = vector.broadcast %72 : vector<4x1xf32> to vector<4x64xf32>
    %74 = arith.subf %70, %73 : vector<4x64xf32>
    %75 = vector.broadcast %63 : vector<1x64xf32> to vector<4x64xf32>
    %76 = arith.subf %70, %75 : vector<4x64xf32>
    %77 = arith.maximumf %76, %74 : vector<4x64xf32>
    %cst_30 = arith.constant dense<0xFF800000> : vector<64xf32>
    %78 = vector.multi_reduction <maximumf>, %77, %cst_30 [0] : vector<4x64xf32> to vector<64xf32>
    %79 = vector.shape_cast %78 : vector<64xf32> to vector<1x64xf32>
    %80 = vector.broadcast %79 : vector<1x64xf32> to vector<4x64xf32>
    %81 = arith.subf %74, %80 : vector<4x64xf32>
    %82 = math.exp %81 : vector<4x64xf32>
    %cst_31 = arith.constant dense<0.000000e+00> : vector<64xf32>
    %83 = vector.multi_reduction <add>, %82, %cst_31 [0] : vector<4x64xf32> to vector<64xf32>
    %84 = vector.shape_cast %83 : vector<64xf32> to vector<1x64xf32>
    %85 = vector.broadcast %79 : vector<1x64xf32> to vector<4x64xf32>
    %86 = arith.subf %76, %85 : vector<4x64xf32>
    %87 = math.exp %86 : vector<4x64xf32>
    %cst_32 = arith.constant dense<0.000000e+00> : vector<64xf32>
    %88 = vector.multi_reduction <add>, %87, %cst_32 [0] : vector<4x64xf32> to vector<64xf32>
    %89 = vector.shape_cast %88 : vector<64xf32> to vector<1x64xf32>
    %90 = arith.addf %84, %89 : vector<1x64xf32>
    %91 = arith.mulf %64, %90 : vector<1x64xf32>
    %92 = arith.cmpf olt, %91, %84 : vector<1x64xf32>
    %cst_33 = arith.constant 1.000000e+00 : f32
    %cst_34 = arith.constant -1.000000e+00 : f32
    %93 = vector.broadcast %cst_33 : f32 to vector<1x64xf32>
    %94 = vector.broadcast %cst_34 : f32 to vector<1x64xf32>
    %95 = arith.select %92, %93, %94 : vector<1x64xi1>, vector<1x64xf32>
    %96 = arith.subf %95, %61 : vector<1x64xf32>
    %97 = vector.broadcast %96 : vector<1x64xf32> to vector<4x64xf32>
    %98 = vector.broadcast %62 : vector<4x1xf32> to vector<4x64xf32>
    %99 = arith.mulf %97, %98 : vector<4x64xf32>
    %100 = arith.addf %59, %99 : vector<4x64xf32>
    %c1 = arith.constant 1 : index
    %c0_35 = arith.constant 0 : index
    %101 = vector.load %arg10[%c1, %c0_35] : memref<32x64xf32, #tpu.memory_space<vmem>>, vector<1x64xf32>
    tpu.vector_store %arg10[%c1, %c0_35], %95 {strides = array<i32>} : memref<32x64xf32, #tpu.memory_space<vmem>>, vector<1x64xf32>,
    %102 = vector.extract_strided_slice %15 {offsets = [2, 0], sizes = [1, 64], strides = [1, 1]} : vector<32x64xf32> to vector<1x64xf32>
    %103 = vector.extract_strided_slice %8 {offsets = [0, 2], sizes = [4, 1], strides = [1, 1]} : vector<4x32xf32> to vector<4x1xf32>
    %104 = vector.extract_strided_slice %7 {offsets = [2, 0], sizes = [1, 64], strides = [1, 1]} : vector<32x64xf32> to vector<1x64xf32>
    %105 = vector.extract_strided_slice %19 {offsets = [2, 0], sizes = [1, 64], strides = [1, 1]} : vector<32x64xf32> to vector<1x64xf32>
    %cst_36 = arith.constant 1.000000e+00 : f32
    %106 = vector.broadcast %cst_36 : f32 to vector<1x64xf32>
    %107 = arith.subf %106, %102 : vector<1x64xf32>
    %108 = vector.broadcast %107 : vector<1x64xf32> to vector<4x64xf32>
    %109 = vector.broadcast %103 : vector<4x1xf32> to vector<4x64xf32>
    %110 = arith.mulf %108, %109 : vector<4x64xf32>
    %111 = arith.addf %100, %110 : vector<4x64xf32>
    %cst_37 = arith.constant 2.000000e+00 : f32
    %112 = vector.broadcast %cst_37 : f32 to vector<4x1xf32>
    %113 = arith.mulf %112, %103 : vector<4x1xf32>
    %114 = vector.broadcast %113 : vector<4x1xf32> to vector<4x64xf32>
    %115 = arith.subf %111, %114 : vector<4x64xf32>
    %116 = vector.broadcast %104 : vector<1x64xf32> to vector<4x64xf32>
    %117 = arith.subf %111, %116 : vector<4x64xf32>
    %118 = arith.maximumf %117, %115 : vector<4x64xf32>
    %cst_38 = arith.constant dense<0xFF800000> : vector<64xf32>
    %119 = vector.multi_reduction <maximumf>, %118, %cst_38 [0] : vector<4x64xf32> to vector<64xf32>
    %120 = vector.shape_cast %119 : vector<64xf32> to vector<1x64xf32>
    %121 = vector.broadcast %120 : vector<1x64xf32> to vector<4x64xf32>
    %122 = arith.subf %115, %121 : vector<4x64xf32>
    %123 = math.exp %122 : vector<4x64xf32>
    %cst_39 = arith.constant dense<0.000000e+00> : vector<64xf32>
    %124 = vector.multi_reduction <add>, %123, %cst_39 [0] : vector<4x64xf32> to vector<64xf32>
    %125 = vector.shape_cast %124 : vector<64xf32> to vector<1x64xf32>
    %126 = vector.broadcast %120 : vector<1x64xf32> to vector<4x64xf32>
    %127 = arith.subf %117, %126 : vector<4x64xf32>
    %128 = math.exp %127 : vector<4x64xf32>
    %cst_40 = arith.constant dense<0.000000e+00> : vector<64xf32>
    %129 = vector.multi_reduction <add>, %128, %cst_40 [0] : vector<4x64xf32> to vector<64xf32>
    %130 = vector.shape_cast %129 : vector<64xf32> to vector<1x64xf32>
    %131 = arith.addf %125, %130 : vector<1x64xf32>
    %132 = arith.mulf %105, %131 : vector<1x64xf32>
    %133 = arith.cmpf olt, %132, %125 : vector<1x64xf32>
    %cst_41 = arith.constant 1.000000e+00 : f32
    %cst_42 = arith.constant -1.000000e+00 : f32
    %134 = vector.broadcast %cst_41 : f32 to vector<1x64xf32>
    %135 = vector.broadcast %cst_42 : f32 to vector<1x64xf32>
    %136 = arith.select %133, %134, %135 : vector<1x64xi1>, vector<1x64xf32>
    %137 = arith.subf %136, %102 : vector<1x64xf32>
    %138 = vector.broadcast %137 : vector<1x64xf32> to vector<4x64xf32>
    %139 = vector.broadcast %103 : vector<4x1xf32> to vector<4x64xf32>
    %140 = arith.mulf %138, %139 : vector<4x64xf32>
    %141 = arith.addf %100, %140 : vector<4x64xf32>
    %c2 = arith.constant 2 : index
    %c0_43 = arith.constant 0 : index
    %142 = vector.load %arg10[%c2, %c0_43] : memref<32x64xf32, #tpu.memory_space<vmem>>, vector<1x64xf32>
    tpu.vector_store %arg10[%c2, %c0_43], %136 {strides = array<i32>} : memref<32x64xf32, #tpu.memory_space<vmem>>, vector<1x64xf32>,
    %143 = vector.extract_strided_slice %15 {offsets = [3, 0], sizes = [1, 64], strides = [1, 1]} : vector<32x64xf32> to vector<1x64xf32>
    %144 = vector.extract_strided_slice %8 {offsets = [0, 3], sizes = [4, 1], strides = [1, 1]} : vector<4x32xf32> to vector<4x1xf32>
    %145 = vector.extract_strided_slice %7 {offsets = [3, 0], sizes = [1, 64], strides = [1, 1]} : vector<32x64xf32> to vector<1x64xf32>
    %146 = vector.extract_strided_slice %19 {offsets = [3, 0], sizes = [1, 64], strides = [1, 1]} : vector<32x64xf32> to vector<1x64xf32>
    %cst_44 = arith.constant 1.000000e+00 : f32
    %147 = vector.broadcast %cst_44 : f32 to vector<1x64xf32>
    %148 = arith.subf %147, %143 : vector<1x64xf32>
    %149 = vector.broadcast %148 : vector<1x64xf32> to vector<4x64xf32>
    %150 = vector.broadcast %144 : vector<4x1xf32> to vector<4x64xf32>
    %151 = arith.mulf %149, %150 : vector<4x64xf32>
    %152 = arith.addf %141, %151 : vector<4x64xf32>
    %cst_45 = arith.constant 2.000000e+00 : f32
    %153 = vector.broadcast %cst_45 : f32 to vector<4x1xf32>
    %154 = arith.mulf %153, %144 : vector<4x1xf32>
    %155 = vector.broadcast %154 : vector<4x1xf32> to vector<4x64xf32>
    %156 = arith.subf %152, %155 : vector<4x64xf32>
    %157 = vector.broadcast %145 : vector<1x64xf32> to vector<4x64xf32>
    %158 = arith.subf %152, %157 : vector<4x64xf32>
    %159 = arith.maximumf %158, %156 : vector<4x64xf32>
    %cst_46 = arith.constant dense<0xFF800000> : vector<64xf32>
    %160 = vector.multi_reduction <maximumf>, %159, %cst_46 [0] : vector<4x64xf32> to vector<64xf32>
    %161 = vector.shape_cast %160 : vector<64xf32> to vector<1x64xf32>
    %162 = vector.broadcast %161 : vector<1x64xf32> to vector<4x64xf32>
    %163 = arith.subf %156, %162 : vector<4x64xf32>
    %164 = math.exp %163 : vector<4x64xf32>
    %cst_47 = arith.constant dense<0.000000e+00> : vector<64xf32>
    %165 = vector.multi_reduction <add>, %164, %cst_47 [0] : vector<4x64xf32> to vector<64xf32>
    %166 = vector.shape_cast %165 : vector<64xf32> to vector<1x64xf32>
    %167 = vector.broadcast %161 : vector<1x64xf32> to vector<4x64xf32>
    %168 = arith.subf %158, %167 : vector<4x64xf32>
    %169 = math.exp %168 : vector<4x64xf32>
    %cst_48 = arith.constant dense<0.000000e+00> : vector<64xf32>
    %170 = vector.multi_reduction <add>, %169, %cst_48 [0] : vector<4x64xf32> to vector<64xf32>
    %171 = vector.shape_cast %170 : vector<64xf32> to vector<1x64xf32>
    %172 = arith.addf %166, %171 : vector<1x64xf32>
    %173 = arith.mulf %146, %172 : vector<1x64xf32>
    %174 = arith.cmpf olt, %173, %166 : vector<1x64xf32>
    %cst_49 = arith.constant 1.000000e+00 : f32
    %cst_50 = arith.constant -1.000000e+00 : f32
    %175 = vector.broadcast %cst_49 : f32 to vector<1x64xf32>
    %176 = vector.broadcast %cst_50 : f32 to vector<1x64xf32>
    %177 = arith.select %174, %175, %176 : vector<1x64xi1>, vector<1x64xf32>
    %178 = arith.subf %177, %143 : vector<1x64xf32>
    %179 = vector.broadcast %178 : vector<1x64xf32> to vector<4x64xf32>
    %180 = vector.broadcast %144 : vector<4x1xf32> to vector<4x64xf32>
    %181 = arith.mulf %179, %180 : vector<4x64xf32>
    %182 = arith.addf %141, %181 : vector<4x64xf32>
    %c3 = arith.constant 3 : index
    %c0_51 = arith.constant 0 : index
    %183 = vector.load %arg10[%c3, %c0_51] : memref<32x64xf32, #tpu.memory_space<vmem>>, vector<1x64xf32>
    tpu.vector_store %arg10[%c3, %c0_51], %177 {strides = array<i32>} : memref<32x64xf32, #tpu.memory_space<vmem>>, vector<1x64xf32>,
    %184 = vector.extract_strided_slice %15 {offsets = [4, 0], sizes = [1, 64], strides = [1, 1]} : vector<32x64xf32> to vector<1x64xf32>
    %185 = vector.extract_strided_slice %8 {offsets = [0, 4], sizes = [4, 1], strides = [1, 1]} : vector<4x32xf32> to vector<4x1xf32>
    %186 = vector.extract_strided_slice %7 {offsets = [4, 0], sizes = [1, 64], strides = [1, 1]} : vector<32x64xf32> to vector<1x64xf32>
    %187 = vector.extract_strided_slice %19 {offsets = [4, 0], sizes = [1, 64], strides = [1, 1]} : vector<32x64xf32> to vector<1x64xf32>
    %cst_52 = arith.constant 1.000000e+00 : f32
    %188 = vector.broadcast %cst_52 : f32 to vector<1x64xf32>
    %189 = arith.subf %188, %184 : vector<1x64xf32>
    %190 = vector.broadcast %189 : vector<1x64xf32> to vector<4x64xf32>
    %191 = vector.broadcast %185 : vector<4x1xf32> to vector<4x64xf32>
    %192 = arith.mulf %190, %191 : vector<4x64xf32>
    %193 = arith.addf %182, %192 : vector<4x64xf32>
    %cst_53 = arith.constant 2.000000e+00 : f32
    %194 = vector.broadcast %cst_53 : f32 to vector<4x1xf32>
    %195 = arith.mulf %194, %185 : vector<4x1xf32>
    %196 = vector.broadcast %195 : vector<4x1xf32> to vector<4x64xf32>
    %197 = arith.subf %193, %196 : vector<4x64xf32>
    %198 = vector.broadcast %186 : vector<1x64xf32> to vector<4x64xf32>
    %199 = arith.subf %193, %198 : vector<4x64xf32>
    %200 = arith.maximumf %199, %197 : vector<4x64xf32>
    %cst_54 = arith.constant dense<0xFF800000> : vector<64xf32>
    %201 = vector.multi_reduction <maximumf>, %200, %cst_54 [0] : vector<4x64xf32> to vector<64xf32>
    %202 = vector.shape_cast %201 : vector<64xf32> to vector<1x64xf32>
    %203 = vector.broadcast %202 : vector<1x64xf32> to vector<4x64xf32>
    %204 = arith.subf %197, %203 : vector<4x64xf32>
    %205 = math.exp %204 : vector<4x64xf32>
    %cst_55 = arith.constant dense<0.000000e+00> : vector<64xf32>
    %206 = vector.multi_reduction <add>, %205, %cst_55 [0] : vector<4x64xf32> to vector<64xf32>
    %207 = vector.shape_cast %206 : vector<64xf32> to vector<1x64xf32>
    %208 = vector.broadcast %202 : vector<1x64xf32> to vector<4x64xf32>
    %209 = arith.subf %199, %208 : vector<4x64xf32>
    %210 = math.exp %209 : vector<4x64xf32>
    %cst_56 = arith.constant dense<0.000000e+00> : vector<64xf32>
    %211 = vector.multi_reduction <add>, %210, %cst_56 [0] : vector<4x64xf32> to vector<64xf32>
    %212 = vector.shape_cast %211 : vector<64xf32> to vector<1x64xf32>
    %213 = arith.addf %207, %212 : vector<1x64xf32>
    %214 = arith.mulf %187, %213 : vector<1x64xf32>
    %215 = arith.cmpf olt, %214, %207 : vector<1x64xf32>
    %cst_57 = arith.constant 1.000000e+00 : f32
    %cst_58 = arith.constant -1.000000e+00 : f32
    %216 = vector.broadcast %cst_57 : f32 to vector<1x64xf32>
    %217 = vector.broadcast %cst_58 : f32 to vector<1x64xf32>
    %218 = arith.select %215, %216, %217 : vector<1x64xi1>, vector<1x64xf32>
    %219 = arith.subf %218, %184 : vector<1x64xf32>
    %220 = vector.broadcast %219 : vector<1x64xf32> to vector<4x64xf32>
    %221 = vector.broadcast %185 : vector<4x1xf32> to vector<4x64xf32>
    %222 = arith.mulf %220, %221 : vector<4x64xf32>
    %223 = arith.addf %182, %222 : vector<4x64xf32>
    %c4 = arith.constant 4 : index
    %c0_59 = arith.constant 0 : index
    %224 = vector.load %arg10[%c4, %c0_59] : memref<32x64xf32, #tpu.memory_space<vmem>>, vector<1x64xf32>
    tpu.vector_store %arg10[%c4, %c0_59], %218 {strides = array<i32>} : memref<32x64xf32, #tpu.memory_space<vmem>>, vector<1x64xf32>,
    %225 = vector.extract_strided_slice %15 {offsets = [5, 0], sizes = [1, 64], strides = [1, 1]} : vector<32x64xf32> to vector<1x64xf32>
    %226 = vector.extract_strided_slice %8 {offsets = [0, 5], sizes = [4, 1], strides = [1, 1]} : vector<4x32xf32> to vector<4x1xf32>
    %227 = vector.extract_strided_slice %7 {offsets = [5, 0], sizes = [1, 64], strides = [1, 1]} : vector<32x64xf32> to vector<1x64xf32>
    %228 = vector.extract_strided_slice %19 {offsets = [5, 0], sizes = [1, 64], strides = [1, 1]} : vector<32x64xf32> to vector<1x64xf32>
    %cst_60 = arith.constant 1.000000e+00 : f32
    %229 = vector.broadcast %cst_60 : f32 to vector<1x64xf32>
    %230 = arith.subf %229, %225 : vector<1x64xf32>
    %231 = vector.broadcast %230 : vector<1x64xf32> to vector<4x64xf32>
    %232 = vector.broadcast %226 : vector<4x1xf32> to vector<4x64xf32>
    %233 = arith.mulf %231, %232 : vector<4x64xf32>
    %234 = arith.addf %223, %233 : vector<4x64xf32>
    %cst_61 = arith.constant 2.000000e+00 : f32
    %235 = vector.broadcast %cst_61 : f32 to vector<4x1xf32>
    %236 = arith.mulf %235, %226 : vector<4x1xf32>
    %237 = vector.broadcast %236 : vector<4x1xf32> to vector<4x64xf32>
    %238 = arith.subf %234, %237 : vector<4x64xf32>
    %239 = vector.broadcast %227 : vector<1x64xf32> to vector<4x64xf32>
    %240 = arith.subf %234, %239 : vector<4x64xf32>
    %241 = arith.maximumf %240, %238 : vector<4x64xf32>
    %cst_62 = arith.constant dense<0xFF800000> : vector<64xf32>
    %242 = vector.multi_reduction <maximumf>, %241, %cst_62 [0] : vector<4x64xf32> to vector<64xf32>
    %243 = vector.shape_cast %242 : vector<64xf32> to vector<1x64xf32>
    %244 = vector.broadcast %243 : vector<1x64xf32> to vector<4x64xf32>
    %245 = arith.subf %238, %244 : vector<4x64xf32>
    %246 = math.exp %245 : vector<4x64xf32>
    %cst_63 = arith.constant dense<0.000000e+00> : vector<64xf32>
    %247 = vector.multi_reduction <add>, %246, %cst_63 [0] : vector<4x64xf32> to vector<64xf32>
    %248 = vector.shape_cast %247 : vector<64xf32> to vector<1x64xf32>
    %249 = vector.broadcast %243 : vector<1x64xf32> to vector<4x64xf32>
    %250 = arith.subf %240, %249 : vector<4x64xf32>
    %251 = math.exp %250 : vector<4x64xf32>
    %cst_64 = arith.constant dense<0.000000e+00> : vector<64xf32>
    %252 = vector.multi_reduction <add>, %251, %cst_64 [0] : vector<4x64xf32> to vector<64xf32>
    %253 = vector.shape_cast %252 : vector<64xf32> to vector<1x64xf32>
    %254 = arith.addf %248, %253 : vector<1x64xf32>
    %255 = arith.mulf %228, %254 : vector<1x64xf32>
    %256 = arith.cmpf olt, %255, %248 : vector<1x64xf32>
    %cst_65 = arith.constant 1.000000e+00 : f32
    %cst_66 = arith.constant -1.000000e+00 : f32
    %257 = vector.broadcast %cst_65 : f32 to vector<1x64xf32>
    %258 = vector.broadcast %cst_66 : f32 to vector<1x64xf32>
    %259 = arith.select %256, %257, %258 : vector<1x64xi1>, vector<1x64xf32>
    %260 = arith.subf %259, %225 : vector<1x64xf32>
    %261 = vector.broadcast %260 : vector<1x64xf32> to vector<4x64xf32>
    %262 = vector.broadcast %226 : vector<4x1xf32> to vector<4x64xf32>
    %263 = arith.mulf %261, %262 : vector<4x64xf32>
    %264 = arith.addf %223, %263 : vector<4x64xf32>
    %c5 = arith.constant 5 : index
    %c0_67 = arith.constant 0 : index
    %265 = vector.load %arg10[%c5, %c0_67] : memref<32x64xf32, #tpu.memory_space<vmem>>, vector<1x64xf32>
    tpu.vector_store %arg10[%c5, %c0_67], %259 {strides = array<i32>} : memref<32x64xf32, #tpu.memory_space<vmem>>, vector<1x64xf32>,
    %266 = vector.extract_strided_slice %15 {offsets = [6, 0], sizes = [1, 64], strides = [1, 1]} : vector<32x64xf32> to vector<1x64xf32>
    %267 = vector.extract_strided_slice %8 {offsets = [0, 6], sizes = [4, 1], strides = [1, 1]} : vector<4x32xf32> to vector<4x1xf32>
    %268 = vector.extract_strided_slice %7 {offsets = [6, 0], sizes = [1, 64], strides = [1, 1]} : vector<32x64xf32> to vector<1x64xf32>
    %269 = vector.extract_strided_slice %19 {offsets = [6, 0], sizes = [1, 64], strides = [1, 1]} : vector<32x64xf32> to vector<1x64xf32>
    %cst_68 = arith.constant 1.000000e+00 : f32
    %270 = vector.broadcast %cst_68 : f32 to vector<1x64xf32>
    %271 = arith.subf %270, %266 : vector<1x64xf32>
    %272 = vector.broadcast %271 : vector<1x64xf32> to vector<4x64xf32>
    %273 = vector.broadcast %267 : vector<4x1xf32> to vector<4x64xf32>
    %274 = arith.mulf %272, %273 : vector<4x64xf32>
    %275 = arith.addf %264, %274 : vector<4x64xf32>
    %cst_69 = arith.constant 2.000000e+00 : f32
    %276 = vector.broadcast %cst_69 : f32 to vector<4x1xf32>
    %277 = arith.mulf %276, %267 : vector<4x1xf32>
    %278 = vector.broadcast %277 : vector<4x1xf32> to vector<4x64xf32>
    %279 = arith.subf %275, %278 : vector<4x64xf32>
    %280 = vector.broadcast %268 : vector<1x64xf32> to vector<4x64xf32>
    %281 = arith.subf %275, %280 : vector<4x64xf32>
    %282 = arith.maximumf %281, %279 : vector<4x64xf32>
    %cst_70 = arith.constant dense<0xFF800000> : vector<64xf32>
    %283 = vector.multi_reduction <maximumf>, %282, %cst_70 [0] : vector<4x64xf32> to vector<64xf32>
    %284 = vector.shape_cast %283 : vector<64xf32> to vector<1x64xf32>
    %285 = vector.broadcast %284 : vector<1x64xf32> to vector<4x64xf32>
    %286 = arith.subf %279, %285 : vector<4x64xf32>
    %287 = math.exp %286 : vector<4x64xf32>
    %cst_71 = arith.constant dense<0.000000e+00> : vector<64xf32>
    %288 = vector.multi_reduction <add>, %287, %cst_71 [0] : vector<4x64xf32> to vector<64xf32>
    %289 = vector.shape_cast %288 : vector<64xf32> to vector<1x64xf32>
    %290 = vector.broadcast %284 : vector<1x64xf32> to vector<4x64xf32>
    %291 = arith.subf %281, %290 : vector<4x64xf32>
    %292 = math.exp %291 : vector<4x64xf32>
    %cst_72 = arith.constant dense<0.000000e+00> : vector<64xf32>
    %293 = vector.multi_reduction <add>, %292, %cst_72 [0] : vector<4x64xf32> to vector<64xf32>
    %294 = vector.shape_cast %293 : vector<64xf32> to vector<1x64xf32>
    %295 = arith.addf %289, %294 : vector<1x64xf32>
    %296 = arith.mulf %269, %295 : vector<1x64xf32>
    %297 = arith.cmpf olt, %296, %289 : vector<1x64xf32>
    %cst_73 = arith.constant 1.000000e+00 : f32
    %cst_74 = arith.constant -1.000000e+00 : f32
    %298 = vector.broadcast %cst_73 : f32 to vector<1x64xf32>
    %299 = vector.broadcast %cst_74 : f32 to vector<1x64xf32>
    %300 = arith.select %297, %298, %299 : vector<1x64xi1>, vector<1x64xf32>
    %301 = arith.subf %300, %266 : vector<1x64xf32>
    %302 = vector.broadcast %301 : vector<1x64xf32> to vector<4x64xf32>
    %303 = vector.broadcast %267 : vector<4x1xf32> to vector<4x64xf32>
    %304 = arith.mulf %302, %303 : vector<4x64xf32>
    %305 = arith.addf %264, %304 : vector<4x64xf32>
    %c6 = arith.constant 6 : index
    %c0_75 = arith.constant 0 : index
    %306 = vector.load %arg10[%c6, %c0_75] : memref<32x64xf32, #tpu.memory_space<vmem>>, vector<1x64xf32>
    tpu.vector_store %arg10[%c6, %c0_75], %300 {strides = array<i32>} : memref<32x64xf32, #tpu.memory_space<vmem>>, vector<1x64xf32>,
    %307 = vector.extract_strided_slice %15 {offsets = [7, 0], sizes = [1, 64], strides = [1, 1]} : vector<32x64xf32> to vector<1x64xf32>
    %308 = vector.extract_strided_slice %8 {offsets = [0, 7], sizes = [4, 1], strides = [1, 1]} : vector<4x32xf32> to vector<4x1xf32>
    %309 = vector.extract_strided_slice %7 {offsets = [7, 0], sizes = [1, 64], strides = [1, 1]} : vector<32x64xf32> to vector<1x64xf32>
    %310 = vector.extract_strided_slice %19 {offsets = [7, 0], sizes = [1, 64], strides = [1, 1]} : vector<32x64xf32> to vector<1x64xf32>
    %cst_76 = arith.constant 1.000000e+00 : f32
    %311 = vector.broadcast %cst_76 : f32 to vector<1x64xf32>
    %312 = arith.subf %311, %307 : vector<1x64xf32>
    %313 = vector.broadcast %312 : vector<1x64xf32> to vector<4x64xf32>
    %314 = vector.broadcast %308 : vector<4x1xf32> to vector<4x64xf32>
    %315 = arith.mulf %313, %314 : vector<4x64xf32>
    %316 = arith.addf %305, %315 : vector<4x64xf32>
    %cst_77 = arith.constant 2.000000e+00 : f32
    %317 = vector.broadcast %cst_77 : f32 to vector<4x1xf32>
    %318 = arith.mulf %317, %308 : vector<4x1xf32>
    %319 = vector.broadcast %318 : vector<4x1xf32> to vector<4x64xf32>
    %320 = arith.subf %316, %319 : vector<4x64xf32>
    %321 = vector.broadcast %309 : vector<1x64xf32> to vector<4x64xf32>
    %322 = arith.subf %316, %321 : vector<4x64xf32>
    %323 = arith.maximumf %322, %320 : vector<4x64xf32>
    %cst_78 = arith.constant dense<0xFF800000> : vector<64xf32>
    %324 = vector.multi_reduction <maximumf>, %323, %cst_78 [0] : vector<4x64xf32> to vector<64xf32>
    %325 = vector.shape_cast %324 : vector<64xf32> to vector<1x64xf32>
    %326 = vector.broadcast %325 : vector<1x64xf32> to vector<4x64xf32>
    %327 = arith.subf %320, %326 : vector<4x64xf32>
    %328 = math.exp %327 : vector<4x64xf32>
    %cst_79 = arith.constant dense<0.000000e+00> : vector<64xf32>
    %329 = vector.multi_reduction <add>, %328, %cst_79 [0] : vector<4x64xf32> to vector<64xf32>
    %330 = vector.shape_cast %329 : vector<64xf32> to vector<1x64xf32>
    %331 = vector.broadcast %325 : vector<1x64xf32> to vector<4x64xf32>
    %332 = arith.subf %322, %331 : vector<4x64xf32>
    %333 = math.exp %332 : vector<4x64xf32>
    %cst_80 = arith.constant dense<0.000000e+00> : vector<64xf32>
    %334 = vector.multi_reduction <add>, %333, %cst_80 [0] : vector<4x64xf32> to vector<64xf32>
    %335 = vector.shape_cast %334 : vector<64xf32> to vector<1x64xf32>
    %336 = arith.addf %330, %335 : vector<1x64xf32>
    %337 = arith.mulf %310, %336 : vector<1x64xf32>
    %338 = arith.cmpf olt, %337, %330 : vector<1x64xf32>
    %cst_81 = arith.constant 1.000000e+00 : f32
    %cst_82 = arith.constant -1.000000e+00 : f32
    %339 = vector.broadcast %cst_81 : f32 to vector<1x64xf32>
    %340 = vector.broadcast %cst_82 : f32 to vector<1x64xf32>
    %341 = arith.select %338, %339, %340 : vector<1x64xi1>, vector<1x64xf32>
    %342 = arith.subf %341, %307 : vector<1x64xf32>
    %343 = vector.broadcast %342 : vector<1x64xf32> to vector<4x64xf32>
    %344 = vector.broadcast %308 : vector<4x1xf32> to vector<4x64xf32>
    %345 = arith.mulf %343, %344 : vector<4x64xf32>
    %346 = arith.addf %305, %345 : vector<4x64xf32>
    %c7 = arith.constant 7 : index
    %c0_83 = arith.constant 0 : index
    %347 = vector.load %arg10[%c7, %c0_83] : memref<32x64xf32, #tpu.memory_space<vmem>>, vector<1x64xf32>
    tpu.vector_store %arg10[%c7, %c0_83], %341 {strides = array<i32>} : memref<32x64xf32, #tpu.memory_space<vmem>>, vector<1x64xf32>,
    %348 = vector.extract_strided_slice %15 {offsets = [8, 0], sizes = [1, 64], strides = [1, 1]} : vector<32x64xf32> to vector<1x64xf32>
    %349 = vector.extract_strided_slice %8 {offsets = [0, 8], sizes = [4, 1], strides = [1, 1]} : vector<4x32xf32> to vector<4x1xf32>
    %350 = vector.extract_strided_slice %7 {offsets = [8, 0], sizes = [1, 64], strides = [1, 1]} : vector<32x64xf32> to vector<1x64xf32>
    %351 = vector.extract_strided_slice %19 {offsets = [8, 0], sizes = [1, 64], strides = [1, 1]} : vector<32x64xf32> to vector<1x64xf32>
    %cst_84 = arith.constant 1.000000e+00 : f32
    %352 = vector.broadcast %cst_84 : f32 to vector<1x64xf32>
    %353 = arith.subf %352, %348 : vector<1x64xf32>
    %354 = vector.broadcast %353 : vector<1x64xf32> to vector<4x64xf32>
    %355 = vector.broadcast %349 : vector<4x1xf32> to vector<4x64xf32>
    %356 = arith.mulf %354, %355 : vector<4x64xf32>
    %357 = arith.addf %346, %356 : vector<4x64xf32>
    %cst_85 = arith.constant 2.000000e+00 : f32
    %358 = vector.broadcast %cst_85 : f32 to vector<4x1xf32>
    %359 = arith.mulf %358, %349 : vector<4x1xf32>
    %360 = vector.broadcast %359 : vector<4x1xf32> to vector<4x64xf32>
    %361 = arith.subf %357, %360 : vector<4x64xf32>
    %362 = vector.broadcast %350 : vector<1x64xf32> to vector<4x64xf32>
    %363 = arith.subf %357, %362 : vector<4x64xf32>
    %364 = arith.maximumf %363, %361 : vector<4x64xf32>
    %cst_86 = arith.constant dense<0xFF800000> : vector<64xf32>
    %365 = vector.multi_reduction <maximumf>, %364, %cst_86 [0] : vector<4x64xf32> to vector<64xf32>
    %366 = vector.shape_cast %365 : vector<64xf32> to vector<1x64xf32>
    %367 = vector.broadcast %366 : vector<1x64xf32> to vector<4x64xf32>
    %368 = arith.subf %361, %367 : vector<4x64xf32>
    %369 = math.exp %368 : vector<4x64xf32>
    %cst_87 = arith.constant dense<0.000000e+00> : vector<64xf32>
    %370 = vector.multi_reduction <add>, %369, %cst_87 [0] : vector<4x64xf32> to vector<64xf32>
    %371 = vector.shape_cast %370 : vector<64xf32> to vector<1x64xf32>
    %372 = vector.broadcast %366 : vector<1x64xf32> to vector<4x64xf32>
    %373 = arith.subf %363, %372 : vector<4x64xf32>
    %374 = math.exp %373 : vector<4x64xf32>
    %cst_88 = arith.constant dense<0.000000e+00> : vector<64xf32>
    %375 = vector.multi_reduction <add>, %374, %cst_88 [0] : vector<4x64xf32> to vector<64xf32>
    %376 = vector.shape_cast %375 : vector<64xf32> to vector<1x64xf32>
    %377 = arith.addf %371, %376 : vector<1x64xf32>
    %378 = arith.mulf %351, %377 : vector<1x64xf32>
    %379 = arith.cmpf olt, %378, %371 : vector<1x64xf32>
    %cst_89 = arith.constant 1.000000e+00 : f32
    %cst_90 = arith.constant -1.000000e+00 : f32
    %380 = vector.broadcast %cst_89 : f32 to vector<1x64xf32>
    %381 = vector.broadcast %cst_90 : f32 to vector<1x64xf32>
    %382 = arith.select %379, %380, %381 : vector<1x64xi1>, vector<1x64xf32>
    %383 = arith.subf %382, %348 : vector<1x64xf32>
    %384 = vector.broadcast %383 : vector<1x64xf32> to vector<4x64xf32>
    %385 = vector.broadcast %349 : vector<4x1xf32> to vector<4x64xf32>
    %386 = arith.mulf %384, %385 : vector<4x64xf32>
    %387 = arith.addf %346, %386 : vector<4x64xf32>
    %c8 = arith.constant 8 : index
    %c0_91 = arith.constant 0 : index
    %388 = vector.load %arg10[%c8, %c0_91] : memref<32x64xf32, #tpu.memory_space<vmem>>, vector<1x64xf32>
    tpu.vector_store %arg10[%c8, %c0_91], %382 {strides = array<i32>} : memref<32x64xf32, #tpu.memory_space<vmem>>, vector<1x64xf32>,
    %389 = vector.extract_strided_slice %15 {offsets = [9, 0], sizes = [1, 64], strides = [1, 1]} : vector<32x64xf32> to vector<1x64xf32>
    %390 = vector.extract_strided_slice %8 {offsets = [0, 9], sizes = [4, 1], strides = [1, 1]} : vector<4x32xf32> to vector<4x1xf32>
    %391 = vector.extract_strided_slice %7 {offsets = [9, 0], sizes = [1, 64], strides = [1, 1]} : vector<32x64xf32> to vector<1x64xf32>
    %392 = vector.extract_strided_slice %19 {offsets = [9, 0], sizes = [1, 64], strides = [1, 1]} : vector<32x64xf32> to vector<1x64xf32>
    %cst_92 = arith.constant 1.000000e+00 : f32
    %393 = vector.broadcast %cst_92 : f32 to vector<1x64xf32>
    %394 = arith.subf %393, %389 : vector<1x64xf32>
    %395 = vector.broadcast %394 : vector<1x64xf32> to vector<4x64xf32>
    %396 = vector.broadcast %390 : vector<4x1xf32> to vector<4x64xf32>
    %397 = arith.mulf %395, %396 : vector<4x64xf32>
    %398 = arith.addf %387, %397 : vector<4x64xf32>
    %cst_93 = arith.constant 2.000000e+00 : f32
    %399 = vector.broadcast %cst_93 : f32 to vector<4x1xf32>
    %400 = arith.mulf %399, %390 : vector<4x1xf32>
    %401 = vector.broadcast %400 : vector<4x1xf32> to vector<4x64xf32>
    %402 = arith.subf %398, %401 : vector<4x64xf32>
    %403 = vector.broadcast %391 : vector<1x64xf32> to vector<4x64xf32>
    %404 = arith.subf %398, %403 : vector<4x64xf32>
    %405 = arith.maximumf %404, %402 : vector<4x64xf32>
    %cst_94 = arith.constant dense<0xFF800000> : vector<64xf32>
    %406 = vector.multi_reduction <maximumf>, %405, %cst_94 [0] : vector<4x64xf32> to vector<64xf32>
    %407 = vector.shape_cast %406 : vector<64xf32> to vector<1x64xf32>
    %408 = vector.broadcast %407 : vector<1x64xf32> to vector<4x64xf32>
    %409 = arith.subf %402, %408 : vector<4x64xf32>
    %410 = math.exp %409 : vector<4x64xf32>
    %cst_95 = arith.constant dense<0.000000e+00> : vector<64xf32>
    %411 = vector.multi_reduction <add>, %410, %cst_95 [0] : vector<4x64xf32> to vector<64xf32>
    %412 = vector.shape_cast %411 : vector<64xf32> to vector<1x64xf32>
    %413 = vector.broadcast %407 : vector<1x64xf32> to vector<4x64xf32>
    %414 = arith.subf %404, %413 : vector<4x64xf32>
    %415 = math.exp %414 : vector<4x64xf32>
    %cst_96 = arith.constant dense<0.000000e+00> : vector<64xf32>
    %416 = vector.multi_reduction <add>, %415, %cst_96 [0] : vector<4x64xf32> to vector<64xf32>
    %417 = vector.shape_cast %416 : vector<64xf32> to vector<1x64xf32>
    %418 = arith.addf %412, %417 : vector<1x64xf32>
    %419 = arith.mulf %392, %418 : vector<1x64xf32>
    %420 = arith.cmpf olt, %419, %412 : vector<1x64xf32>
    %cst_97 = arith.constant 1.000000e+00 : f32
    %cst_98 = arith.constant -1.000000e+00 : f32
    %421 = vector.broadcast %cst_97 : f32 to vector<1x64xf32>
    %422 = vector.broadcast %cst_98 : f32 to vector<1x64xf32>
    %423 = arith.select %420, %421, %422 : vector<1x64xi1>, vector<1x64xf32>
    %424 = arith.subf %423, %389 : vector<1x64xf32>
    %425 = vector.broadcast %424 : vector<1x64xf32> to vector<4x64xf32>
    %426 = vector.broadcast %390 : vector<4x1xf32> to vector<4x64xf32>
    %427 = arith.mulf %425, %426 : vector<4x64xf32>
    %428 = arith.addf %387, %427 : vector<4x64xf32>
    %c9 = arith.constant 9 : index
    %c0_99 = arith.constant 0 : index
    %429 = vector.load %arg10[%c9, %c0_99] : memref<32x64xf32, #tpu.memory_space<vmem>>, vector<1x64xf32>
    tpu.vector_store %arg10[%c9, %c0_99], %423 {strides = array<i32>} : memref<32x64xf32, #tpu.memory_space<vmem>>, vector<1x64xf32>,
    %430 = vector.extract_strided_slice %15 {offsets = [10, 0], sizes = [1, 64], strides = [1, 1]} : vector<32x64xf32> to vector<1x64xf32>
    %431 = vector.extract_strided_slice %8 {offsets = [0, 10], sizes = [4, 1], strides = [1, 1]} : vector<4x32xf32> to vector<4x1xf32>
    %432 = vector.extract_strided_slice %7 {offsets = [10, 0], sizes = [1, 64], strides = [1, 1]} : vector<32x64xf32> to vector<1x64xf32>
    %433 = vector.extract_strided_slice %19 {offsets = [10, 0], sizes = [1, 64], strides = [1, 1]} : vector<32x64xf32> to vector<1x64xf32>
    %cst_100 = arith.constant 1.000000e+00 : f32
    %434 = vector.broadcast %cst_100 : f32 to vector<1x64xf32>
    %435 = arith.subf %434, %430 : vector<1x64xf32>
    %436 = vector.broadcast %435 : vector<1x64xf32> to vector<4x64xf32>
    %437 = vector.broadcast %431 : vector<4x1xf32> to vector<4x64xf32>
    %438 = arith.mulf %436, %437 : vector<4x64xf32>
    %439 = arith.addf %428, %438 : vector<4x64xf32>
    %cst_101 = arith.constant 2.000000e+00 : f32
    %440 = vector.broadcast %cst_101 : f32 to vector<4x1xf32>
    %441 = arith.mulf %440, %431 : vector<4x1xf32>
    %442 = vector.broadcast %441 : vector<4x1xf32> to vector<4x64xf32>
    %443 = arith.subf %439, %442 : vector<4x64xf32>
    %444 = vector.broadcast %432 : vector<1x64xf32> to vector<4x64xf32>
    %445 = arith.subf %439, %444 : vector<4x64xf32>
    %446 = arith.maximumf %445, %443 : vector<4x64xf32>
    %cst_102 = arith.constant dense<0xFF800000> : vector<64xf32>
    %447 = vector.multi_reduction <maximumf>, %446, %cst_102 [0] : vector<4x64xf32> to vector<64xf32>
    %448 = vector.shape_cast %447 : vector<64xf32> to vector<1x64xf32>
    %449 = vector.broadcast %448 : vector<1x64xf32> to vector<4x64xf32>
    %450 = arith.subf %443, %449 : vector<4x64xf32>
    %451 = math.exp %450 : vector<4x64xf32>
    %cst_103 = arith.constant dense<0.000000e+00> : vector<64xf32>
    %452 = vector.multi_reduction <add>, %451, %cst_103 [0] : vector<4x64xf32> to vector<64xf32>
    %453 = vector.shape_cast %452 : vector<64xf32> to vector<1x64xf32>
    %454 = vector.broadcast %448 : vector<1x64xf32> to vector<4x64xf32>
    %455 = arith.subf %445, %454 : vector<4x64xf32>
    %456 = math.exp %455 : vector<4x64xf32>
    %cst_104 = arith.constant dense<0.000000e+00> : vector<64xf32>
    %457 = vector.multi_reduction <add>, %456, %cst_104 [0] : vector<4x64xf32> to vector<64xf32>
    %458 = vector.shape_cast %457 : vector<64xf32> to vector<1x64xf32>
    %459 = arith.addf %453, %458 : vector<1x64xf32>
    %460 = arith.mulf %433, %459 : vector<1x64xf32>
    %461 = arith.cmpf olt, %460, %453 : vector<1x64xf32>
    %cst_105 = arith.constant 1.000000e+00 : f32
    %cst_106 = arith.constant -1.000000e+00 : f32
    %462 = vector.broadcast %cst_105 : f32 to vector<1x64xf32>
    %463 = vector.broadcast %cst_106 : f32 to vector<1x64xf32>
    %464 = arith.select %461, %462, %463 : vector<1x64xi1>, vector<1x64xf32>
    %465 = arith.subf %464, %430 : vector<1x64xf32>
    %466 = vector.broadcast %465 : vector<1x64xf32> to vector<4x64xf32>
    %467 = vector.broadcast %431 : vector<4x1xf32> to vector<4x64xf32>
    %468 = arith.mulf %466, %467 : vector<4x64xf32>
    %469 = arith.addf %428, %468 : vector<4x64xf32>
    %c10 = arith.constant 10 : index
    %c0_107 = arith.constant 0 : index
    %470 = vector.load %arg10[%c10, %c0_107] : memref<32x64xf32, #tpu.memory_space<vmem>>, vector<1x64xf32>
    tpu.vector_store %arg10[%c10, %c0_107], %464 {strides = array<i32>} : memref<32x64xf32, #tpu.memory_space<vmem>>, vector<1x64xf32>,
    %471 = vector.extract_strided_slice %15 {offsets = [11, 0], sizes = [1, 64], strides = [1, 1]} : vector<32x64xf32> to vector<1x64xf32>
    %472 = vector.extract_strided_slice %8 {offsets = [0, 11], sizes = [4, 1], strides = [1, 1]} : vector<4x32xf32> to vector<4x1xf32>
    %473 = vector.extract_strided_slice %7 {offsets = [11, 0], sizes = [1, 64], strides = [1, 1]} : vector<32x64xf32> to vector<1x64xf32>
    %474 = vector.extract_strided_slice %19 {offsets = [11, 0], sizes = [1, 64], strides = [1, 1]} : vector<32x64xf32> to vector<1x64xf32>
    %cst_108 = arith.constant 1.000000e+00 : f32
    %475 = vector.broadcast %cst_108 : f32 to vector<1x64xf32>
    %476 = arith.subf %475, %471 : vector<1x64xf32>
    %477 = vector.broadcast %476 : vector<1x64xf32> to vector<4x64xf32>
    %478 = vector.broadcast %472 : vector<4x1xf32> to vector<4x64xf32>
    %479 = arith.mulf %477, %478 : vector<4x64xf32>
    %480 = arith.addf %469, %479 : vector<4x64xf32>
    %cst_109 = arith.constant 2.000000e+00 : f32
    %481 = vector.broadcast %cst_109 : f32 to vector<4x1xf32>
    %482 = arith.mulf %481, %472 : vector<4x1xf32>
    %483 = vector.broadcast %482 : vector<4x1xf32> to vector<4x64xf32>
    %484 = arith.subf %480, %483 : vector<4x64xf32>
    %485 = vector.broadcast %473 : vector<1x64xf32> to vector<4x64xf32>
    %486 = arith.subf %480, %485 : vector<4x64xf32>
    %487 = arith.maximumf %486, %484 : vector<4x64xf32>
    %cst_110 = arith.constant dense<0xFF800000> : vector<64xf32>
    %488 = vector.multi_reduction <maximumf>, %487, %cst_110 [0] : vector<4x64xf32> to vector<64xf32>
    %489 = vector.shape_cast %488 : vector<64xf32> to vector<1x64xf32>
    %490 = vector.broadcast %489 : vector<1x64xf32> to vector<4x64xf32>
    %491 = arith.subf %484, %490 : vector<4x64xf32>
    %492 = math.exp %491 : vector<4x64xf32>
    %cst_111 = arith.constant dense<0.000000e+00> : vector<64xf32>
    %493 = vector.multi_reduction <add>, %492, %cst_111 [0] : vector<4x64xf32> to vector<64xf32>
    %494 = vector.shape_cast %493 : vector<64xf32> to vector<1x64xf32>
    %495 = vector.broadcast %489 : vector<1x64xf32> to vector<4x64xf32>
    %496 = arith.subf %486, %495 : vector<4x64xf32>
    %497 = math.exp %496 : vector<4x64xf32>
    %cst_112 = arith.constant dense<0.000000e+00> : vector<64xf32>
    %498 = vector.multi_reduction <add>, %497, %cst_112 [0] : vector<4x64xf32> to vector<64xf32>
    %499 = vector.shape_cast %498 : vector<64xf32> to vector<1x64xf32>
    %500 = arith.addf %494, %499 : vector<1x64xf32>
    %501 = arith.mulf %474, %500 : vector<1x64xf32>
    %502 = arith.cmpf olt, %501, %494 : vector<1x64xf32>
    %cst_113 = arith.constant 1.000000e+00 : f32
    %cst_114 = arith.constant -1.000000e+00 : f32
    %503 = vector.broadcast %cst_113 : f32 to vector<1x64xf32>
    %504 = vector.broadcast %cst_114 : f32 to vector<1x64xf32>
    %505 = arith.select %502, %503, %504 : vector<1x64xi1>, vector<1x64xf32>
    %506 = arith.subf %505, %471 : vector<1x64xf32>
    %507 = vector.broadcast %506 : vector<1x64xf32> to vector<4x64xf32>
    %508 = vector.broadcast %472 : vector<4x1xf32> to vector<4x64xf32>
    %509 = arith.mulf %507, %508 : vector<4x64xf32>
    %510 = arith.addf %469, %509 : vector<4x64xf32>
    %c11 = arith.constant 11 : index
    %c0_115 = arith.constant 0 : index
    %511 = vector.load %arg10[%c11, %c0_115] : memref<32x64xf32, #tpu.memory_space<vmem>>, vector<1x64xf32>
    tpu.vector_store %arg10[%c11, %c0_115], %505 {strides = array<i32>} : memref<32x64xf32, #tpu.memory_space<vmem>>, vector<1x64xf32>,
    %512 = vector.extract_strided_slice %15 {offsets = [12, 0], sizes = [1, 64], strides = [1, 1]} : vector<32x64xf32> to vector<1x64xf32>
    %513 = vector.extract_strided_slice %8 {offsets = [0, 12], sizes = [4, 1], strides = [1, 1]} : vector<4x32xf32> to vector<4x1xf32>
    %514 = vector.extract_strided_slice %7 {offsets = [12, 0], sizes = [1, 64], strides = [1, 1]} : vector<32x64xf32> to vector<1x64xf32>
    %515 = vector.extract_strided_slice %19 {offsets = [12, 0], sizes = [1, 64], strides = [1, 1]} : vector<32x64xf32> to vector<1x64xf32>
    %cst_116 = arith.constant 1.000000e+00 : f32
    %516 = vector.broadcast %cst_116 : f32 to vector<1x64xf32>
    %517 = arith.subf %516, %512 : vector<1x64xf32>
    %518 = vector.broadcast %517 : vector<1x64xf32> to vector<4x64xf32>
    %519 = vector.broadcast %513 : vector<4x1xf32> to vector<4x64xf32>
    %520 = arith.mulf %518, %519 : vector<4x64xf32>
    %521 = arith.addf %510, %520 : vector<4x64xf32>
    %cst_117 = arith.constant 2.000000e+00 : f32
    %522 = vector.broadcast %cst_117 : f32 to vector<4x1xf32>
    %523 = arith.mulf %522, %513 : vector<4x1xf32>
    %524 = vector.broadcast %523 : vector<4x1xf32> to vector<4x64xf32>
    %525 = arith.subf %521, %524 : vector<4x64xf32>
    %526 = vector.broadcast %514 : vector<1x64xf32> to vector<4x64xf32>
    %527 = arith.subf %521, %526 : vector<4x64xf32>
    %528 = arith.maximumf %527, %525 : vector<4x64xf32>
    %cst_118 = arith.constant dense<0xFF800000> : vector<64xf32>
    %529 = vector.multi_reduction <maximumf>, %528, %cst_118 [0] : vector<4x64xf32> to vector<64xf32>
    %530 = vector.shape_cast %529 : vector<64xf32> to vector<1x64xf32>
    %531 = vector.broadcast %530 : vector<1x64xf32> to vector<4x64xf32>
    %532 = arith.subf %525, %531 : vector<4x64xf32>
    %533 = math.exp %532 : vector<4x64xf32>
    %cst_119 = arith.constant dense<0.000000e+00> : vector<64xf32>
    %534 = vector.multi_reduction <add>, %533, %cst_119 [0] : vector<4x64xf32> to vector<64xf32>
    %535 = vector.shape_cast %534 : vector<64xf32> to vector<1x64xf32>
    %536 = vector.broadcast %530 : vector<1x64xf32> to vector<4x64xf32>
    %537 = arith.subf %527, %536 : vector<4x64xf32>
    %538 = math.exp %537 : vector<4x64xf32>
    %cst_120 = arith.constant dense<0.000000e+00> : vector<64xf32>
    %539 = vector.multi_reduction <add>, %538, %cst_120 [0] : vector<4x64xf32> to vector<64xf32>
    %540 = vector.shape_cast %539 : vector<64xf32> to vector<1x64xf32>
    %541 = arith.addf %535, %540 : vector<1x64xf32>
    %542 = arith.mulf %515, %541 : vector<1x64xf32>
    %543 = arith.cmpf olt, %542, %535 : vector<1x64xf32>
    %cst_121 = arith.constant 1.000000e+00 : f32
    %cst_122 = arith.constant -1.000000e+00 : f32
    %544 = vector.broadcast %cst_121 : f32 to vector<1x64xf32>
    %545 = vector.broadcast %cst_122 : f32 to vector<1x64xf32>
    %546 = arith.select %543, %544, %545 : vector<1x64xi1>, vector<1x64xf32>
    %547 = arith.subf %546, %512 : vector<1x64xf32>
    %548 = vector.broadcast %547 : vector<1x64xf32> to vector<4x64xf32>
    %549 = vector.broadcast %513 : vector<4x1xf32> to vector<4x64xf32>
    %550 = arith.mulf %548, %549 : vector<4x64xf32>
    %551 = arith.addf %510, %550 : vector<4x64xf32>
    %c12 = arith.constant 12 : index
    %c0_123 = arith.constant 0 : index
    %552 = vector.load %arg10[%c12, %c0_123] : memref<32x64xf32, #tpu.memory_space<vmem>>, vector<1x64xf32>
    tpu.vector_store %arg10[%c12, %c0_123], %546 {strides = array<i32>} : memref<32x64xf32, #tpu.memory_space<vmem>>, vector<1x64xf32>,
    %553 = vector.extract_strided_slice %15 {offsets = [13, 0], sizes = [1, 64], strides = [1, 1]} : vector<32x64xf32> to vector<1x64xf32>
    %554 = vector.extract_strided_slice %8 {offsets = [0, 13], sizes = [4, 1], strides = [1, 1]} : vector<4x32xf32> to vector<4x1xf32>
    %555 = vector.extract_strided_slice %7 {offsets = [13, 0], sizes = [1, 64], strides = [1, 1]} : vector<32x64xf32> to vector<1x64xf32>
    %556 = vector.extract_strided_slice %19 {offsets = [13, 0], sizes = [1, 64], strides = [1, 1]} : vector<32x64xf32> to vector<1x64xf32>
    %cst_124 = arith.constant 1.000000e+00 : f32
    %557 = vector.broadcast %cst_124 : f32 to vector<1x64xf32>
    %558 = arith.subf %557, %553 : vector<1x64xf32>
    %559 = vector.broadcast %558 : vector<1x64xf32> to vector<4x64xf32>
    %560 = vector.broadcast %554 : vector<4x1xf32> to vector<4x64xf32>
    %561 = arith.mulf %559, %560 : vector<4x64xf32>
    %562 = arith.addf %551, %561 : vector<4x64xf32>
    %cst_125 = arith.constant 2.000000e+00 : f32
    %563 = vector.broadcast %cst_125 : f32 to vector<4x1xf32>
    %564 = arith.mulf %563, %554 : vector<4x1xf32>
    %565 = vector.broadcast %564 : vector<4x1xf32> to vector<4x64xf32>
    %566 = arith.subf %562, %565 : vector<4x64xf32>
    %567 = vector.broadcast %555 : vector<1x64xf32> to vector<4x64xf32>
    %568 = arith.subf %562, %567 : vector<4x64xf32>
    %569 = arith.maximumf %568, %566 : vector<4x64xf32>
    %cst_126 = arith.constant dense<0xFF800000> : vector<64xf32>
    %570 = vector.multi_reduction <maximumf>, %569, %cst_126 [0] : vector<4x64xf32> to vector<64xf32>
    %571 = vector.shape_cast %570 : vector<64xf32> to vector<1x64xf32>
    %572 = vector.broadcast %571 : vector<1x64xf32> to vector<4x64xf32>
    %573 = arith.subf %566, %572 : vector<4x64xf32>
    %574 = math.exp %573 : vector<4x64xf32>
    %cst_127 = arith.constant dense<0.000000e+00> : vector<64xf32>
    %575 = vector.multi_reduction <add>, %574, %cst_127 [0] : vector<4x64xf32> to vector<64xf32>
    %576 = vector.shape_cast %575 : vector<64xf32> to vector<1x64xf32>
    %577 = vector.broadcast %571 : vector<1x64xf32> to vector<4x64xf32>
    %578 = arith.subf %568, %577 : vector<4x64xf32>
    %579 = math.exp %578 : vector<4x64xf32>
    %cst_128 = arith.constant dense<0.000000e+00> : vector<64xf32>
    %580 = vector.multi_reduction <add>, %579, %cst_128 [0] : vector<4x64xf32> to vector<64xf32>
    %581 = vector.shape_cast %580 : vector<64xf32> to vector<1x64xf32>
    %582 = arith.addf %576, %581 : vector<1x64xf32>
    %583 = arith.mulf %556, %582 : vector<1x64xf32>
    %584 = arith.cmpf olt, %583, %576 : vector<1x64xf32>
    %cst_129 = arith.constant 1.000000e+00 : f32
    %cst_130 = arith.constant -1.000000e+00 : f32
    %585 = vector.broadcast %cst_129 : f32 to vector<1x64xf32>
    %586 = vector.broadcast %cst_130 : f32 to vector<1x64xf32>
    %587 = arith.select %584, %585, %586 : vector<1x64xi1>, vector<1x64xf32>
    %588 = arith.subf %587, %553 : vector<1x64xf32>
    %589 = vector.broadcast %588 : vector<1x64xf32> to vector<4x64xf32>
    %590 = vector.broadcast %554 : vector<4x1xf32> to vector<4x64xf32>
    %591 = arith.mulf %589, %590 : vector<4x64xf32>
    %592 = arith.addf %551, %591 : vector<4x64xf32>
    %c13 = arith.constant 13 : index
    %c0_131 = arith.constant 0 : index
    %593 = vector.load %arg10[%c13, %c0_131] : memref<32x64xf32, #tpu.memory_space<vmem>>, vector<1x64xf32>
    tpu.vector_store %arg10[%c13, %c0_131], %587 {strides = array<i32>} : memref<32x64xf32, #tpu.memory_space<vmem>>, vector<1x64xf32>,
    %594 = vector.extract_strided_slice %15 {offsets = [14, 0], sizes = [1, 64], strides = [1, 1]} : vector<32x64xf32> to vector<1x64xf32>
    %595 = vector.extract_strided_slice %8 {offsets = [0, 14], sizes = [4, 1], strides = [1, 1]} : vector<4x32xf32> to vector<4x1xf32>
    %596 = vector.extract_strided_slice %7 {offsets = [14, 0], sizes = [1, 64], strides = [1, 1]} : vector<32x64xf32> to vector<1x64xf32>
    %597 = vector.extract_strided_slice %19 {offsets = [14, 0], sizes = [1, 64], strides = [1, 1]} : vector<32x64xf32> to vector<1x64xf32>
    %cst_132 = arith.constant 1.000000e+00 : f32
    %598 = vector.broadcast %cst_132 : f32 to vector<1x64xf32>
    %599 = arith.subf %598, %594 : vector<1x64xf32>
    %600 = vector.broadcast %599 : vector<1x64xf32> to vector<4x64xf32>
    %601 = vector.broadcast %595 : vector<4x1xf32> to vector<4x64xf32>
    %602 = arith.mulf %600, %601 : vector<4x64xf32>
    %603 = arith.addf %592, %602 : vector<4x64xf32>
    %cst_133 = arith.constant 2.000000e+00 : f32
    %604 = vector.broadcast %cst_133 : f32 to vector<4x1xf32>
    %605 = arith.mulf %604, %595 : vector<4x1xf32>
    %606 = vector.broadcast %605 : vector<4x1xf32> to vector<4x64xf32>
    %607 = arith.subf %603, %606 : vector<4x64xf32>
    %608 = vector.broadcast %596 : vector<1x64xf32> to vector<4x64xf32>
    %609 = arith.subf %603, %608 : vector<4x64xf32>
    %610 = arith.maximumf %609, %607 : vector<4x64xf32>
    %cst_134 = arith.constant dense<0xFF800000> : vector<64xf32>
    %611 = vector.multi_reduction <maximumf>, %610, %cst_134 [0] : vector<4x64xf32> to vector<64xf32>
    %612 = vector.shape_cast %611 : vector<64xf32> to vector<1x64xf32>
    %613 = vector.broadcast %612 : vector<1x64xf32> to vector<4x64xf32>
    %614 = arith.subf %607, %613 : vector<4x64xf32>
    %615 = math.exp %614 : vector<4x64xf32>
    %cst_135 = arith.constant dense<0.000000e+00> : vector<64xf32>
    %616 = vector.multi_reduction <add>, %615, %cst_135 [0] : vector<4x64xf32> to vector<64xf32>
    %617 = vector.shape_cast %616 : vector<64xf32> to vector<1x64xf32>
    %618 = vector.broadcast %612 : vector<1x64xf32> to vector<4x64xf32>
    %619 = arith.subf %609, %618 : vector<4x64xf32>
    %620 = math.exp %619 : vector<4x64xf32>
    %cst_136 = arith.constant dense<0.000000e+00> : vector<64xf32>
    %621 = vector.multi_reduction <add>, %620, %cst_136 [0] : vector<4x64xf32> to vector<64xf32>
    %622 = vector.shape_cast %621 : vector<64xf32> to vector<1x64xf32>
    %623 = arith.addf %617, %622 : vector<1x64xf32>
    %624 = arith.mulf %597, %623 : vector<1x64xf32>
    %625 = arith.cmpf olt, %624, %617 : vector<1x64xf32>
    %cst_137 = arith.constant 1.000000e+00 : f32
    %cst_138 = arith.constant -1.000000e+00 : f32
    %626 = vector.broadcast %cst_137 : f32 to vector<1x64xf32>
    %627 = vector.broadcast %cst_138 : f32 to vector<1x64xf32>
    %628 = arith.select %625, %626, %627 : vector<1x64xi1>, vector<1x64xf32>
    %629 = arith.subf %628, %594 : vector<1x64xf32>
    %630 = vector.broadcast %629 : vector<1x64xf32> to vector<4x64xf32>
    %631 = vector.broadcast %595 : vector<4x1xf32> to vector<4x64xf32>
    %632 = arith.mulf %630, %631 : vector<4x64xf32>
    %633 = arith.addf %592, %632 : vector<4x64xf32>
    %c14 = arith.constant 14 : index
    %c0_139 = arith.constant 0 : index
    %634 = vector.load %arg10[%c14, %c0_139] : memref<32x64xf32, #tpu.memory_space<vmem>>, vector<1x64xf32>
    tpu.vector_store %arg10[%c14, %c0_139], %628 {strides = array<i32>} : memref<32x64xf32, #tpu.memory_space<vmem>>, vector<1x64xf32>,
    %635 = vector.extract_strided_slice %15 {offsets = [15, 0], sizes = [1, 64], strides = [1, 1]} : vector<32x64xf32> to vector<1x64xf32>
    %636 = vector.extract_strided_slice %8 {offsets = [0, 15], sizes = [4, 1], strides = [1, 1]} : vector<4x32xf32> to vector<4x1xf32>
    %637 = vector.extract_strided_slice %7 {offsets = [15, 0], sizes = [1, 64], strides = [1, 1]} : vector<32x64xf32> to vector<1x64xf32>
    %638 = vector.extract_strided_slice %19 {offsets = [15, 0], sizes = [1, 64], strides = [1, 1]} : vector<32x64xf32> to vector<1x64xf32>
    %cst_140 = arith.constant 1.000000e+00 : f32
    %639 = vector.broadcast %cst_140 : f32 to vector<1x64xf32>
    %640 = arith.subf %639, %635 : vector<1x64xf32>
    %641 = vector.broadcast %640 : vector<1x64xf32> to vector<4x64xf32>
    %642 = vector.broadcast %636 : vector<4x1xf32> to vector<4x64xf32>
    %643 = arith.mulf %641, %642 : vector<4x64xf32>
    %644 = arith.addf %633, %643 : vector<4x64xf32>
    %cst_141 = arith.constant 2.000000e+00 : f32
    %645 = vector.broadcast %cst_141 : f32 to vector<4x1xf32>
    %646 = arith.mulf %645, %636 : vector<4x1xf32>
    %647 = vector.broadcast %646 : vector<4x1xf32> to vector<4x64xf32>
    %648 = arith.subf %644, %647 : vector<4x64xf32>
    %649 = vector.broadcast %637 : vector<1x64xf32> to vector<4x64xf32>
    %650 = arith.subf %644, %649 : vector<4x64xf32>
    %651 = arith.maximumf %650, %648 : vector<4x64xf32>
    %cst_142 = arith.constant dense<0xFF800000> : vector<64xf32>
    %652 = vector.multi_reduction <maximumf>, %651, %cst_142 [0] : vector<4x64xf32> to vector<64xf32>
    %653 = vector.shape_cast %652 : vector<64xf32> to vector<1x64xf32>
    %654 = vector.broadcast %653 : vector<1x64xf32> to vector<4x64xf32>
    %655 = arith.subf %648, %654 : vector<4x64xf32>
    %656 = math.exp %655 : vector<4x64xf32>
    %cst_143 = arith.constant dense<0.000000e+00> : vector<64xf32>
    %657 = vector.multi_reduction <add>, %656, %cst_143 [0] : vector<4x64xf32> to vector<64xf32>
    %658 = vector.shape_cast %657 : vector<64xf32> to vector<1x64xf32>
    %659 = vector.broadcast %653 : vector<1x64xf32> to vector<4x64xf32>
    %660 = arith.subf %650, %659 : vector<4x64xf32>
    %661 = math.exp %660 : vector<4x64xf32>
    %cst_144 = arith.constant dense<0.000000e+00> : vector<64xf32>
    %662 = vector.multi_reduction <add>, %661, %cst_144 [0] : vector<4x64xf32> to vector<64xf32>
    %663 = vector.shape_cast %662 : vector<64xf32> to vector<1x64xf32>
    %664 = arith.addf %658, %663 : vector<1x64xf32>
    %665 = arith.mulf %638, %664 : vector<1x64xf32>
    %666 = arith.cmpf olt, %665, %658 : vector<1x64xf32>
    %cst_145 = arith.constant 1.000000e+00 : f32
    %cst_146 = arith.constant -1.000000e+00 : f32
    %667 = vector.broadcast %cst_145 : f32 to vector<1x64xf32>
    %668 = vector.broadcast %cst_146 : f32 to vector<1x64xf32>
    %669 = arith.select %666, %667, %668 : vector<1x64xi1>, vector<1x64xf32>
    %670 = arith.subf %669, %635 : vector<1x64xf32>
    %671 = vector.broadcast %670 : vector<1x64xf32> to vector<4x64xf32>
    %672 = vector.broadcast %636 : vector<4x1xf32> to vector<4x64xf32>
    %673 = arith.mulf %671, %672 : vector<4x64xf32>
    %674 = arith.addf %633, %673 : vector<4x64xf32>
    %c15 = arith.constant 15 : index
    %c0_147 = arith.constant 0 : index
    %675 = vector.load %arg10[%c15, %c0_147] : memref<32x64xf32, #tpu.memory_space<vmem>>, vector<1x64xf32>
    tpu.vector_store %arg10[%c15, %c0_147], %669 {strides = array<i32>} : memref<32x64xf32, #tpu.memory_space<vmem>>, vector<1x64xf32>,
    %676 = vector.extract_strided_slice %15 {offsets = [16, 0], sizes = [1, 64], strides = [1, 1]} : vector<32x64xf32> to vector<1x64xf32>
    %677 = vector.extract_strided_slice %8 {offsets = [0, 16], sizes = [4, 1], strides = [1, 1]} : vector<4x32xf32> to vector<4x1xf32>
    %678 = vector.extract_strided_slice %7 {offsets = [16, 0], sizes = [1, 64], strides = [1, 1]} : vector<32x64xf32> to vector<1x64xf32>
    %679 = vector.extract_strided_slice %19 {offsets = [16, 0], sizes = [1, 64], strides = [1, 1]} : vector<32x64xf32> to vector<1x64xf32>
    %cst_148 = arith.constant 1.000000e+00 : f32
    %680 = vector.broadcast %cst_148 : f32 to vector<1x64xf32>
    %681 = arith.subf %680, %676 : vector<1x64xf32>
    %682 = vector.broadcast %681 : vector<1x64xf32> to vector<4x64xf32>
    %683 = vector.broadcast %677 : vector<4x1xf32> to vector<4x64xf32>
    %684 = arith.mulf %682, %683 : vector<4x64xf32>
    %685 = arith.addf %674, %684 : vector<4x64xf32>
    %cst_149 = arith.constant 2.000000e+00 : f32
    %686 = vector.broadcast %cst_149 : f32 to vector<4x1xf32>
    %687 = arith.mulf %686, %677 : vector<4x1xf32>
    %688 = vector.broadcast %687 : vector<4x1xf32> to vector<4x64xf32>
    %689 = arith.subf %685, %688 : vector<4x64xf32>
    %690 = vector.broadcast %678 : vector<1x64xf32> to vector<4x64xf32>
    %691 = arith.subf %685, %690 : vector<4x64xf32>
    %692 = arith.maximumf %691, %689 : vector<4x64xf32>
    %cst_150 = arith.constant dense<0xFF800000> : vector<64xf32>
    %693 = vector.multi_reduction <maximumf>, %692, %cst_150 [0] : vector<4x64xf32> to vector<64xf32>
    %694 = vector.shape_cast %693 : vector<64xf32> to vector<1x64xf32>
    %695 = vector.broadcast %694 : vector<1x64xf32> to vector<4x64xf32>
    %696 = arith.subf %689, %695 : vector<4x64xf32>
    %697 = math.exp %696 : vector<4x64xf32>
    %cst_151 = arith.constant dense<0.000000e+00> : vector<64xf32>
    %698 = vector.multi_reduction <add>, %697, %cst_151 [0] : vector<4x64xf32> to vector<64xf32>
    %699 = vector.shape_cast %698 : vector<64xf32> to vector<1x64xf32>
    %700 = vector.broadcast %694 : vector<1x64xf32> to vector<4x64xf32>
    %701 = arith.subf %691, %700 : vector<4x64xf32>
    %702 = math.exp %701 : vector<4x64xf32>
    %cst_152 = arith.constant dense<0.000000e+00> : vector<64xf32>
    %703 = vector.multi_reduction <add>, %702, %cst_152 [0] : vector<4x64xf32> to vector<64xf32>
    %704 = vector.shape_cast %703 : vector<64xf32> to vector<1x64xf32>
    %705 = arith.addf %699, %704 : vector<1x64xf32>
    %706 = arith.mulf %679, %705 : vector<1x64xf32>
    %707 = arith.cmpf olt, %706, %699 : vector<1x64xf32>
    %cst_153 = arith.constant 1.000000e+00 : f32
    %cst_154 = arith.constant -1.000000e+00 : f32
    %708 = vector.broadcast %cst_153 : f32 to vector<1x64xf32>
    %709 = vector.broadcast %cst_154 : f32 to vector<1x64xf32>
    %710 = arith.select %707, %708, %709 : vector<1x64xi1>, vector<1x64xf32>
    %711 = arith.subf %710, %676 : vector<1x64xf32>
    %712 = vector.broadcast %711 : vector<1x64xf32> to vector<4x64xf32>
    %713 = vector.broadcast %677 : vector<4x1xf32> to vector<4x64xf32>
    %714 = arith.mulf %712, %713 : vector<4x64xf32>
    %715 = arith.addf %674, %714 : vector<4x64xf32>
    %c16 = arith.constant 16 : index
    %c0_155 = arith.constant 0 : index
    %716 = vector.load %arg10[%c16, %c0_155] : memref<32x64xf32, #tpu.memory_space<vmem>>, vector<1x64xf32>
    tpu.vector_store %arg10[%c16, %c0_155], %710 {strides = array<i32>} : memref<32x64xf32, #tpu.memory_space<vmem>>, vector<1x64xf32>,
    %717 = vector.extract_strided_slice %15 {offsets = [17, 0], sizes = [1, 64], strides = [1, 1]} : vector<32x64xf32> to vector<1x64xf32>
    %718 = vector.extract_strided_slice %8 {offsets = [0, 17], sizes = [4, 1], strides = [1, 1]} : vector<4x32xf32> to vector<4x1xf32>
    %719 = vector.extract_strided_slice %7 {offsets = [17, 0], sizes = [1, 64], strides = [1, 1]} : vector<32x64xf32> to vector<1x64xf32>
    %720 = vector.extract_strided_slice %19 {offsets = [17, 0], sizes = [1, 64], strides = [1, 1]} : vector<32x64xf32> to vector<1x64xf32>
    %cst_156 = arith.constant 1.000000e+00 : f32
    %721 = vector.broadcast %cst_156 : f32 to vector<1x64xf32>
    %722 = arith.subf %721, %717 : vector<1x64xf32>
    %723 = vector.broadcast %722 : vector<1x64xf32> to vector<4x64xf32>
    %724 = vector.broadcast %718 : vector<4x1xf32> to vector<4x64xf32>
    %725 = arith.mulf %723, %724 : vector<4x64xf32>
    %726 = arith.addf %715, %725 : vector<4x64xf32>
    %cst_157 = arith.constant 2.000000e+00 : f32
    %727 = vector.broadcast %cst_157 : f32 to vector<4x1xf32>
    %728 = arith.mulf %727, %718 : vector<4x1xf32>
    %729 = vector.broadcast %728 : vector<4x1xf32> to vector<4x64xf32>
    %730 = arith.subf %726, %729 : vector<4x64xf32>
    %731 = vector.broadcast %719 : vector<1x64xf32> to vector<4x64xf32>
    %732 = arith.subf %726, %731 : vector<4x64xf32>
    %733 = arith.maximumf %732, %730 : vector<4x64xf32>
    %cst_158 = arith.constant dense<0xFF800000> : vector<64xf32>
    %734 = vector.multi_reduction <maximumf>, %733, %cst_158 [0] : vector<4x64xf32> to vector<64xf32>
    %735 = vector.shape_cast %734 : vector<64xf32> to vector<1x64xf32>
    %736 = vector.broadcast %735 : vector<1x64xf32> to vector<4x64xf32>
    %737 = arith.subf %730, %736 : vector<4x64xf32>
    %738 = math.exp %737 : vector<4x64xf32>
    %cst_159 = arith.constant dense<0.000000e+00> : vector<64xf32>
    %739 = vector.multi_reduction <add>, %738, %cst_159 [0] : vector<4x64xf32> to vector<64xf32>
    %740 = vector.shape_cast %739 : vector<64xf32> to vector<1x64xf32>
    %741 = vector.broadcast %735 : vector<1x64xf32> to vector<4x64xf32>
    %742 = arith.subf %732, %741 : vector<4x64xf32>
    %743 = math.exp %742 : vector<4x64xf32>
    %cst_160 = arith.constant dense<0.000000e+00> : vector<64xf32>
    %744 = vector.multi_reduction <add>, %743, %cst_160 [0] : vector<4x64xf32> to vector<64xf32>
    %745 = vector.shape_cast %744 : vector<64xf32> to vector<1x64xf32>
    %746 = arith.addf %740, %745 : vector<1x64xf32>
    %747 = arith.mulf %720, %746 : vector<1x64xf32>
    %748 = arith.cmpf olt, %747, %740 : vector<1x64xf32>
    %cst_161 = arith.constant 1.000000e+00 : f32
    %cst_162 = arith.constant -1.000000e+00 : f32
    %749 = vector.broadcast %cst_161 : f32 to vector<1x64xf32>
    %750 = vector.broadcast %cst_162 : f32 to vector<1x64xf32>
    %751 = arith.select %748, %749, %750 : vector<1x64xi1>, vector<1x64xf32>
    %752 = arith.subf %751, %717 : vector<1x64xf32>
    %753 = vector.broadcast %752 : vector<1x64xf32> to vector<4x64xf32>
    %754 = vector.broadcast %718 : vector<4x1xf32> to vector<4x64xf32>
    %755 = arith.mulf %753, %754 : vector<4x64xf32>
    %756 = arith.addf %715, %755 : vector<4x64xf32>
    %c17 = arith.constant 17 : index
    %c0_163 = arith.constant 0 : index
    %757 = vector.load %arg10[%c17, %c0_163] : memref<32x64xf32, #tpu.memory_space<vmem>>, vector<1x64xf32>
    tpu.vector_store %arg10[%c17, %c0_163], %751 {strides = array<i32>} : memref<32x64xf32, #tpu.memory_space<vmem>>, vector<1x64xf32>,
    %758 = vector.extract_strided_slice %15 {offsets = [18, 0], sizes = [1, 64], strides = [1, 1]} : vector<32x64xf32> to vector<1x64xf32>
    %759 = vector.extract_strided_slice %8 {offsets = [0, 18], sizes = [4, 1], strides = [1, 1]} : vector<4x32xf32> to vector<4x1xf32>
    %760 = vector.extract_strided_slice %7 {offsets = [18, 0], sizes = [1, 64], strides = [1, 1]} : vector<32x64xf32> to vector<1x64xf32>
    %761 = vector.extract_strided_slice %19 {offsets = [18, 0], sizes = [1, 64], strides = [1, 1]} : vector<32x64xf32> to vector<1x64xf32>
    %cst_164 = arith.constant 1.000000e+00 : f32
    %762 = vector.broadcast %cst_164 : f32 to vector<1x64xf32>
    %763 = arith.subf %762, %758 : vector<1x64xf32>
    %764 = vector.broadcast %763 : vector<1x64xf32> to vector<4x64xf32>
    %765 = vector.broadcast %759 : vector<4x1xf32> to vector<4x64xf32>
    %766 = arith.mulf %764, %765 : vector<4x64xf32>
    %767 = arith.addf %756, %766 : vector<4x64xf32>
    %cst_165 = arith.constant 2.000000e+00 : f32
    %768 = vector.broadcast %cst_165 : f32 to vector<4x1xf32>
    %769 = arith.mulf %768, %759 : vector<4x1xf32>
    %770 = vector.broadcast %769 : vector<4x1xf32> to vector<4x64xf32>
    %771 = arith.subf %767, %770 : vector<4x64xf32>
    %772 = vector.broadcast %760 : vector<1x64xf32> to vector<4x64xf32>
    %773 = arith.subf %767, %772 : vector<4x64xf32>
    %774 = arith.maximumf %773, %771 : vector<4x64xf32>
    %cst_166 = arith.constant dense<0xFF800000> : vector<64xf32>
    %775 = vector.multi_reduction <maximumf>, %774, %cst_166 [0] : vector<4x64xf32> to vector<64xf32>
    %776 = vector.shape_cast %775 : vector<64xf32> to vector<1x64xf32>
    %777 = vector.broadcast %776 : vector<1x64xf32> to vector<4x64xf32>
    %778 = arith.subf %771, %777 : vector<4x64xf32>
    %779 = math.exp %778 : vector<4x64xf32>
    %cst_167 = arith.constant dense<0.000000e+00> : vector<64xf32>
    %780 = vector.multi_reduction <add>, %779, %cst_167 [0] : vector<4x64xf32> to vector<64xf32>
    %781 = vector.shape_cast %780 : vector<64xf32> to vector<1x64xf32>
    %782 = vector.broadcast %776 : vector<1x64xf32> to vector<4x64xf32>
    %783 = arith.subf %773, %782 : vector<4x64xf32>
    %784 = math.exp %783 : vector<4x64xf32>
    %cst_168 = arith.constant dense<0.000000e+00> : vector<64xf32>
    %785 = vector.multi_reduction <add>, %784, %cst_168 [0] : vector<4x64xf32> to vector<64xf32>
    %786 = vector.shape_cast %785 : vector<64xf32> to vector<1x64xf32>
    %787 = arith.addf %781, %786 : vector<1x64xf32>
    %788 = arith.mulf %761, %787 : vector<1x64xf32>
    %789 = arith.cmpf olt, %788, %781 : vector<1x64xf32>
    %cst_169 = arith.constant 1.000000e+00 : f32
    %cst_170 = arith.constant -1.000000e+00 : f32
    %790 = vector.broadcast %cst_169 : f32 to vector<1x64xf32>
    %791 = vector.broadcast %cst_170 : f32 to vector<1x64xf32>
    %792 = arith.select %789, %790, %791 : vector<1x64xi1>, vector<1x64xf32>
    %793 = arith.subf %792, %758 : vector<1x64xf32>
    %794 = vector.broadcast %793 : vector<1x64xf32> to vector<4x64xf32>
    %795 = vector.broadcast %759 : vector<4x1xf32> to vector<4x64xf32>
    %796 = arith.mulf %794, %795 : vector<4x64xf32>
    %797 = arith.addf %756, %796 : vector<4x64xf32>
    %c18 = arith.constant 18 : index
    %c0_171 = arith.constant 0 : index
    %798 = vector.load %arg10[%c18, %c0_171] : memref<32x64xf32, #tpu.memory_space<vmem>>, vector<1x64xf32>
    tpu.vector_store %arg10[%c18, %c0_171], %792 {strides = array<i32>} : memref<32x64xf32, #tpu.memory_space<vmem>>, vector<1x64xf32>,
    %799 = vector.extract_strided_slice %15 {offsets = [19, 0], sizes = [1, 64], strides = [1, 1]} : vector<32x64xf32> to vector<1x64xf32>
    %800 = vector.extract_strided_slice %8 {offsets = [0, 19], sizes = [4, 1], strides = [1, 1]} : vector<4x32xf32> to vector<4x1xf32>
    %801 = vector.extract_strided_slice %7 {offsets = [19, 0], sizes = [1, 64], strides = [1, 1]} : vector<32x64xf32> to vector<1x64xf32>
    %802 = vector.extract_strided_slice %19 {offsets = [19, 0], sizes = [1, 64], strides = [1, 1]} : vector<32x64xf32> to vector<1x64xf32>
    %cst_172 = arith.constant 1.000000e+00 : f32
    %803 = vector.broadcast %cst_172 : f32 to vector<1x64xf32>
    %804 = arith.subf %803, %799 : vector<1x64xf32>
    %805 = vector.broadcast %804 : vector<1x64xf32> to vector<4x64xf32>
    %806 = vector.broadcast %800 : vector<4x1xf32> to vector<4x64xf32>
    %807 = arith.mulf %805, %806 : vector<4x64xf32>
    %808 = arith.addf %797, %807 : vector<4x64xf32>
    %cst_173 = arith.constant 2.000000e+00 : f32
    %809 = vector.broadcast %cst_173 : f32 to vector<4x1xf32>
    %810 = arith.mulf %809, %800 : vector<4x1xf32>
    %811 = vector.broadcast %810 : vector<4x1xf32> to vector<4x64xf32>
    %812 = arith.subf %808, %811 : vector<4x64xf32>
    %813 = vector.broadcast %801 : vector<1x64xf32> to vector<4x64xf32>
    %814 = arith.subf %808, %813 : vector<4x64xf32>
    %815 = arith.maximumf %814, %812 : vector<4x64xf32>
    %cst_174 = arith.constant dense<0xFF800000> : vector<64xf32>
    %816 = vector.multi_reduction <maximumf>, %815, %cst_174 [0] : vector<4x64xf32> to vector<64xf32>
    %817 = vector.shape_cast %816 : vector<64xf32> to vector<1x64xf32>
    %818 = vector.broadcast %817 : vector<1x64xf32> to vector<4x64xf32>
    %819 = arith.subf %812, %818 : vector<4x64xf32>
    %820 = math.exp %819 : vector<4x64xf32>
    %cst_175 = arith.constant dense<0.000000e+00> : vector<64xf32>
    %821 = vector.multi_reduction <add>, %820, %cst_175 [0] : vector<4x64xf32> to vector<64xf32>
    %822 = vector.shape_cast %821 : vector<64xf32> to vector<1x64xf32>
    %823 = vector.broadcast %817 : vector<1x64xf32> to vector<4x64xf32>
    %824 = arith.subf %814, %823 : vector<4x64xf32>
    %825 = math.exp %824 : vector<4x64xf32>
    %cst_176 = arith.constant dense<0.000000e+00> : vector<64xf32>
    %826 = vector.multi_reduction <add>, %825, %cst_176 [0] : vector<4x64xf32> to vector<64xf32>
    %827 = vector.shape_cast %826 : vector<64xf32> to vector<1x64xf32>
    %828 = arith.addf %822, %827 : vector<1x64xf32>
    %829 = arith.mulf %802, %828 : vector<1x64xf32>
    %830 = arith.cmpf olt, %829, %822 : vector<1x64xf32>
    %cst_177 = arith.constant 1.000000e+00 : f32
    %cst_178 = arith.constant -1.000000e+00 : f32
    %831 = vector.broadcast %cst_177 : f32 to vector<1x64xf32>
    %832 = vector.broadcast %cst_178 : f32 to vector<1x64xf32>
    %833 = arith.select %830, %831, %832 : vector<1x64xi1>, vector<1x64xf32>
    %834 = arith.subf %833, %799 : vector<1x64xf32>
    %835 = vector.broadcast %834 : vector<1x64xf32> to vector<4x64xf32>
    %836 = vector.broadcast %800 : vector<4x1xf32> to vector<4x64xf32>
    %837 = arith.mulf %835, %836 : vector<4x64xf32>
    %838 = arith.addf %797, %837 : vector<4x64xf32>
    %c19 = arith.constant 19 : index
    %c0_179 = arith.constant 0 : index
    %839 = vector.load %arg10[%c19, %c0_179] : memref<32x64xf32, #tpu.memory_space<vmem>>, vector<1x64xf32>
    tpu.vector_store %arg10[%c19, %c0_179], %833 {strides = array<i32>} : memref<32x64xf32, #tpu.memory_space<vmem>>, vector<1x64xf32>,
    %840 = vector.extract_strided_slice %15 {offsets = [20, 0], sizes = [1, 64], strides = [1, 1]} : vector<32x64xf32> to vector<1x64xf32>
    %841 = vector.extract_strided_slice %8 {offsets = [0, 20], sizes = [4, 1], strides = [1, 1]} : vector<4x32xf32> to vector<4x1xf32>
    %842 = vector.extract_strided_slice %7 {offsets = [20, 0], sizes = [1, 64], strides = [1, 1]} : vector<32x64xf32> to vector<1x64xf32>
    %843 = vector.extract_strided_slice %19 {offsets = [20, 0], sizes = [1, 64], strides = [1, 1]} : vector<32x64xf32> to vector<1x64xf32>
    %cst_180 = arith.constant 1.000000e+00 : f32
    %844 = vector.broadcast %cst_180 : f32 to vector<1x64xf32>
    %845 = arith.subf %844, %840 : vector<1x64xf32>
    %846 = vector.broadcast %845 : vector<1x64xf32> to vector<4x64xf32>
    %847 = vector.broadcast %841 : vector<4x1xf32> to vector<4x64xf32>
    %848 = arith.mulf %846, %847 : vector<4x64xf32>
    %849 = arith.addf %838, %848 : vector<4x64xf32>
    %cst_181 = arith.constant 2.000000e+00 : f32
    %850 = vector.broadcast %cst_181 : f32 to vector<4x1xf32>
    %851 = arith.mulf %850, %841 : vector<4x1xf32>
    %852 = vector.broadcast %851 : vector<4x1xf32> to vector<4x64xf32>
    %853 = arith.subf %849, %852 : vector<4x64xf32>
    %854 = vector.broadcast %842 : vector<1x64xf32> to vector<4x64xf32>
    %855 = arith.subf %849, %854 : vector<4x64xf32>
    %856 = arith.maximumf %855, %853 : vector<4x64xf32>
    %cst_182 = arith.constant dense<0xFF800000> : vector<64xf32>
    %857 = vector.multi_reduction <maximumf>, %856, %cst_182 [0] : vector<4x64xf32> to vector<64xf32>
    %858 = vector.shape_cast %857 : vector<64xf32> to vector<1x64xf32>
    %859 = vector.broadcast %858 : vector<1x64xf32> to vector<4x64xf32>
    %860 = arith.subf %853, %859 : vector<4x64xf32>
    %861 = math.exp %860 : vector<4x64xf32>
    %cst_183 = arith.constant dense<0.000000e+00> : vector<64xf32>
    %862 = vector.multi_reduction <add>, %861, %cst_183 [0] : vector<4x64xf32> to vector<64xf32>
    %863 = vector.shape_cast %862 : vector<64xf32> to vector<1x64xf32>
    %864 = vector.broadcast %858 : vector<1x64xf32> to vector<4x64xf32>
    %865 = arith.subf %855, %864 : vector<4x64xf32>
    %866 = math.exp %865 : vector<4x64xf32>
    %cst_184 = arith.constant dense<0.000000e+00> : vector<64xf32>
    %867 = vector.multi_reduction <add>, %866, %cst_184 [0] : vector<4x64xf32> to vector<64xf32>
    %868 = vector.shape_cast %867 : vector<64xf32> to vector<1x64xf32>
    %869 = arith.addf %863, %868 : vector<1x64xf32>
    %870 = arith.mulf %843, %869 : vector<1x64xf32>
    %871 = arith.cmpf olt, %870, %863 : vector<1x64xf32>
    %cst_185 = arith.constant 1.000000e+00 : f32
    %cst_186 = arith.constant -1.000000e+00 : f32
    %872 = vector.broadcast %cst_185 : f32 to vector<1x64xf32>
    %873 = vector.broadcast %cst_186 : f32 to vector<1x64xf32>
    %874 = arith.select %871, %872, %873 : vector<1x64xi1>, vector<1x64xf32>
    %875 = arith.subf %874, %840 : vector<1x64xf32>
    %876 = vector.broadcast %875 : vector<1x64xf32> to vector<4x64xf32>
    %877 = vector.broadcast %841 : vector<4x1xf32> to vector<4x64xf32>
    %878 = arith.mulf %876, %877 : vector<4x64xf32>
    %879 = arith.addf %838, %878 : vector<4x64xf32>
    %c20 = arith.constant 20 : index
    %c0_187 = arith.constant 0 : index
    %880 = vector.load %arg10[%c20, %c0_187] : memref<32x64xf32, #tpu.memory_space<vmem>>, vector<1x64xf32>
    tpu.vector_store %arg10[%c20, %c0_187], %874 {strides = array<i32>} : memref<32x64xf32, #tpu.memory_space<vmem>>, vector<1x64xf32>,
    %881 = vector.extract_strided_slice %15 {offsets = [21, 0], sizes = [1, 64], strides = [1, 1]} : vector<32x64xf32> to vector<1x64xf32>
    %882 = vector.extract_strided_slice %8 {offsets = [0, 21], sizes = [4, 1], strides = [1, 1]} : vector<4x32xf32> to vector<4x1xf32>
    %883 = vector.extract_strided_slice %7 {offsets = [21, 0], sizes = [1, 64], strides = [1, 1]} : vector<32x64xf32> to vector<1x64xf32>
    %884 = vector.extract_strided_slice %19 {offsets = [21, 0], sizes = [1, 64], strides = [1, 1]} : vector<32x64xf32> to vector<1x64xf32>
    %cst_188 = arith.constant 1.000000e+00 : f32
    %885 = vector.broadcast %cst_188 : f32 to vector<1x64xf32>
    %886 = arith.subf %885, %881 : vector<1x64xf32>
    %887 = vector.broadcast %886 : vector<1x64xf32> to vector<4x64xf32>
    %888 = vector.broadcast %882 : vector<4x1xf32> to vector<4x64xf32>
    %889 = arith.mulf %887, %888 : vector<4x64xf32>
    %890 = arith.addf %879, %889 : vector<4x64xf32>
    %cst_189 = arith.constant 2.000000e+00 : f32
    %891 = vector.broadcast %cst_189 : f32 to vector<4x1xf32>
    %892 = arith.mulf %891, %882 : vector<4x1xf32>
    %893 = vector.broadcast %892 : vector<4x1xf32> to vector<4x64xf32>
    %894 = arith.subf %890, %893 : vector<4x64xf32>
    %895 = vector.broadcast %883 : vector<1x64xf32> to vector<4x64xf32>
    %896 = arith.subf %890, %895 : vector<4x64xf32>
    %897 = arith.maximumf %896, %894 : vector<4x64xf32>
    %cst_190 = arith.constant dense<0xFF800000> : vector<64xf32>
    %898 = vector.multi_reduction <maximumf>, %897, %cst_190 [0] : vector<4x64xf32> to vector<64xf32>
    %899 = vector.shape_cast %898 : vector<64xf32> to vector<1x64xf32>
    %900 = vector.broadcast %899 : vector<1x64xf32> to vector<4x64xf32>
    %901 = arith.subf %894, %900 : vector<4x64xf32>
    %902 = math.exp %901 : vector<4x64xf32>
    %cst_191 = arith.constant dense<0.000000e+00> : vector<64xf32>
    %903 = vector.multi_reduction <add>, %902, %cst_191 [0] : vector<4x64xf32> to vector<64xf32>
    %904 = vector.shape_cast %903 : vector<64xf32> to vector<1x64xf32>
    %905 = vector.broadcast %899 : vector<1x64xf32> to vector<4x64xf32>
    %906 = arith.subf %896, %905 : vector<4x64xf32>
    %907 = math.exp %906 : vector<4x64xf32>
    %cst_192 = arith.constant dense<0.000000e+00> : vector<64xf32>
    %908 = vector.multi_reduction <add>, %907, %cst_192 [0] : vector<4x64xf32> to vector<64xf32>
    %909 = vector.shape_cast %908 : vector<64xf32> to vector<1x64xf32>
    %910 = arith.addf %904, %909 : vector<1x64xf32>
    %911 = arith.mulf %884, %910 : vector<1x64xf32>
    %912 = arith.cmpf olt, %911, %904 : vector<1x64xf32>
    %cst_193 = arith.constant 1.000000e+00 : f32
    %cst_194 = arith.constant -1.000000e+00 : f32
    %913 = vector.broadcast %cst_193 : f32 to vector<1x64xf32>
    %914 = vector.broadcast %cst_194 : f32 to vector<1x64xf32>
    %915 = arith.select %912, %913, %914 : vector<1x64xi1>, vector<1x64xf32>
    %916 = arith.subf %915, %881 : vector<1x64xf32>
    %917 = vector.broadcast %916 : vector<1x64xf32> to vector<4x64xf32>
    %918 = vector.broadcast %882 : vector<4x1xf32> to vector<4x64xf32>
    %919 = arith.mulf %917, %918 : vector<4x64xf32>
    %920 = arith.addf %879, %919 : vector<4x64xf32>
    %c21 = arith.constant 21 : index
    %c0_195 = arith.constant 0 : index
    %921 = vector.load %arg10[%c21, %c0_195] : memref<32x64xf32, #tpu.memory_space<vmem>>, vector<1x64xf32>
    tpu.vector_store %arg10[%c21, %c0_195], %915 {strides = array<i32>} : memref<32x64xf32, #tpu.memory_space<vmem>>, vector<1x64xf32>,
    %922 = vector.extract_strided_slice %15 {offsets = [22, 0], sizes = [1, 64], strides = [1, 1]} : vector<32x64xf32> to vector<1x64xf32>
    %923 = vector.extract_strided_slice %8 {offsets = [0, 22], sizes = [4, 1], strides = [1, 1]} : vector<4x32xf32> to vector<4x1xf32>
    %924 = vector.extract_strided_slice %7 {offsets = [22, 0], sizes = [1, 64], strides = [1, 1]} : vector<32x64xf32> to vector<1x64xf32>
    %925 = vector.extract_strided_slice %19 {offsets = [22, 0], sizes = [1, 64], strides = [1, 1]} : vector<32x64xf32> to vector<1x64xf32>
    %cst_196 = arith.constant 1.000000e+00 : f32
    %926 = vector.broadcast %cst_196 : f32 to vector<1x64xf32>
    %927 = arith.subf %926, %922 : vector<1x64xf32>
    %928 = vector.broadcast %927 : vector<1x64xf32> to vector<4x64xf32>
    %929 = vector.broadcast %923 : vector<4x1xf32> to vector<4x64xf32>
    %930 = arith.mulf %928, %929 : vector<4x64xf32>
    %931 = arith.addf %920, %930 : vector<4x64xf32>
    %cst_197 = arith.constant 2.000000e+00 : f32
    %932 = vector.broadcast %cst_197 : f32 to vector<4x1xf32>
    %933 = arith.mulf %932, %923 : vector<4x1xf32>
    %934 = vector.broadcast %933 : vector<4x1xf32> to vector<4x64xf32>
    %935 = arith.subf %931, %934 : vector<4x64xf32>
    %936 = vector.broadcast %924 : vector<1x64xf32> to vector<4x64xf32>
    %937 = arith.subf %931, %936 : vector<4x64xf32>
    %938 = arith.maximumf %937, %935 : vector<4x64xf32>
    %cst_198 = arith.constant dense<0xFF800000> : vector<64xf32>
    %939 = vector.multi_reduction <maximumf>, %938, %cst_198 [0] : vector<4x64xf32> to vector<64xf32>
    %940 = vector.shape_cast %939 : vector<64xf32> to vector<1x64xf32>
    %941 = vector.broadcast %940 : vector<1x64xf32> to vector<4x64xf32>
    %942 = arith.subf %935, %941 : vector<4x64xf32>
    %943 = math.exp %942 : vector<4x64xf32>
    %cst_199 = arith.constant dense<0.000000e+00> : vector<64xf32>
    %944 = vector.multi_reduction <add>, %943, %cst_199 [0] : vector<4x64xf32> to vector<64xf32>
    %945 = vector.shape_cast %944 : vector<64xf32> to vector<1x64xf32>
    %946 = vector.broadcast %940 : vector<1x64xf32> to vector<4x64xf32>
    %947 = arith.subf %937, %946 : vector<4x64xf32>
    %948 = math.exp %947 : vector<4x64xf32>
    %cst_200 = arith.constant dense<0.000000e+00> : vector<64xf32>
    %949 = vector.multi_reduction <add>, %948, %cst_200 [0] : vector<4x64xf32> to vector<64xf32>
    %950 = vector.shape_cast %949 : vector<64xf32> to vector<1x64xf32>
    %951 = arith.addf %945, %950 : vector<1x64xf32>
    %952 = arith.mulf %925, %951 : vector<1x64xf32>
    %953 = arith.cmpf olt, %952, %945 : vector<1x64xf32>
    %cst_201 = arith.constant 1.000000e+00 : f32
    %cst_202 = arith.constant -1.000000e+00 : f32
    %954 = vector.broadcast %cst_201 : f32 to vector<1x64xf32>
    %955 = vector.broadcast %cst_202 : f32 to vector<1x64xf32>
    %956 = arith.select %953, %954, %955 : vector<1x64xi1>, vector<1x64xf32>
    %957 = arith.subf %956, %922 : vector<1x64xf32>
    %958 = vector.broadcast %957 : vector<1x64xf32> to vector<4x64xf32>
    %959 = vector.broadcast %923 : vector<4x1xf32> to vector<4x64xf32>
    %960 = arith.mulf %958, %959 : vector<4x64xf32>
    %961 = arith.addf %920, %960 : vector<4x64xf32>
    %c22 = arith.constant 22 : index
    %c0_203 = arith.constant 0 : index
    %962 = vector.load %arg10[%c22, %c0_203] : memref<32x64xf32, #tpu.memory_space<vmem>>, vector<1x64xf32>
    tpu.vector_store %arg10[%c22, %c0_203], %956 {strides = array<i32>} : memref<32x64xf32, #tpu.memory_space<vmem>>, vector<1x64xf32>,
    %963 = vector.extract_strided_slice %15 {offsets = [23, 0], sizes = [1, 64], strides = [1, 1]} : vector<32x64xf32> to vector<1x64xf32>
    %964 = vector.extract_strided_slice %8 {offsets = [0, 23], sizes = [4, 1], strides = [1, 1]} : vector<4x32xf32> to vector<4x1xf32>
    %965 = vector.extract_strided_slice %7 {offsets = [23, 0], sizes = [1, 64], strides = [1, 1]} : vector<32x64xf32> to vector<1x64xf32>
    %966 = vector.extract_strided_slice %19 {offsets = [23, 0], sizes = [1, 64], strides = [1, 1]} : vector<32x64xf32> to vector<1x64xf32>
    %cst_204 = arith.constant 1.000000e+00 : f32
    %967 = vector.broadcast %cst_204 : f32 to vector<1x64xf32>
    %968 = arith.subf %967, %963 : vector<1x64xf32>
    %969 = vector.broadcast %968 : vector<1x64xf32> to vector<4x64xf32>
    %970 = vector.broadcast %964 : vector<4x1xf32> to vector<4x64xf32>
    %971 = arith.mulf %969, %970 : vector<4x64xf32>
    %972 = arith.addf %961, %971 : vector<4x64xf32>
    %cst_205 = arith.constant 2.000000e+00 : f32
    %973 = vector.broadcast %cst_205 : f32 to vector<4x1xf32>
    %974 = arith.mulf %973, %964 : vector<4x1xf32>
    %975 = vector.broadcast %974 : vector<4x1xf32> to vector<4x64xf32>
    %976 = arith.subf %972, %975 : vector<4x64xf32>
    %977 = vector.broadcast %965 : vector<1x64xf32> to vector<4x64xf32>
    %978 = arith.subf %972, %977 : vector<4x64xf32>
    %979 = arith.maximumf %978, %976 : vector<4x64xf32>
    %cst_206 = arith.constant dense<0xFF800000> : vector<64xf32>
    %980 = vector.multi_reduction <maximumf>, %979, %cst_206 [0] : vector<4x64xf32> to vector<64xf32>
    %981 = vector.shape_cast %980 : vector<64xf32> to vector<1x64xf32>
    %982 = vector.broadcast %981 : vector<1x64xf32> to vector<4x64xf32>
    %983 = arith.subf %976, %982 : vector<4x64xf32>
    %984 = math.exp %983 : vector<4x64xf32>
    %cst_207 = arith.constant dense<0.000000e+00> : vector<64xf32>
    %985 = vector.multi_reduction <add>, %984, %cst_207 [0] : vector<4x64xf32> to vector<64xf32>
    %986 = vector.shape_cast %985 : vector<64xf32> to vector<1x64xf32>
    %987 = vector.broadcast %981 : vector<1x64xf32> to vector<4x64xf32>
    %988 = arith.subf %978, %987 : vector<4x64xf32>
    %989 = math.exp %988 : vector<4x64xf32>
    %cst_208 = arith.constant dense<0.000000e+00> : vector<64xf32>
    %990 = vector.multi_reduction <add>, %989, %cst_208 [0] : vector<4x64xf32> to vector<64xf32>
    %991 = vector.shape_cast %990 : vector<64xf32> to vector<1x64xf32>
    %992 = arith.addf %986, %991 : vector<1x64xf32>
    %993 = arith.mulf %966, %992 : vector<1x64xf32>
    %994 = arith.cmpf olt, %993, %986 : vector<1x64xf32>
    %cst_209 = arith.constant 1.000000e+00 : f32
    %cst_210 = arith.constant -1.000000e+00 : f32
    %995 = vector.broadcast %cst_209 : f32 to vector<1x64xf32>
    %996 = vector.broadcast %cst_210 : f32 to vector<1x64xf32>
    %997 = arith.select %994, %995, %996 : vector<1x64xi1>, vector<1x64xf32>
    %998 = arith.subf %997, %963 : vector<1x64xf32>
    %999 = vector.broadcast %998 : vector<1x64xf32> to vector<4x64xf32>
    %1000 = vector.broadcast %964 : vector<4x1xf32> to vector<4x64xf32>
    %1001 = arith.mulf %999, %1000 : vector<4x64xf32>
    %1002 = arith.addf %961, %1001 : vector<4x64xf32>
    %c23 = arith.constant 23 : index
    %c0_211 = arith.constant 0 : index
    %1003 = vector.load %arg10[%c23, %c0_211] : memref<32x64xf32, #tpu.memory_space<vmem>>, vector<1x64xf32>
    tpu.vector_store %arg10[%c23, %c0_211], %997 {strides = array<i32>} : memref<32x64xf32, #tpu.memory_space<vmem>>, vector<1x64xf32>,
    %1004 = vector.extract_strided_slice %15 {offsets = [24, 0], sizes = [1, 64], strides = [1, 1]} : vector<32x64xf32> to vector<1x64xf32>
    %1005 = vector.extract_strided_slice %8 {offsets = [0, 24], sizes = [4, 1], strides = [1, 1]} : vector<4x32xf32> to vector<4x1xf32>
    %1006 = vector.extract_strided_slice %7 {offsets = [24, 0], sizes = [1, 64], strides = [1, 1]} : vector<32x64xf32> to vector<1x64xf32>
    %1007 = vector.extract_strided_slice %19 {offsets = [24, 0], sizes = [1, 64], strides = [1, 1]} : vector<32x64xf32> to vector<1x64xf32>
    %cst_212 = arith.constant 1.000000e+00 : f32
    %1008 = vector.broadcast %cst_212 : f32 to vector<1x64xf32>
    %1009 = arith.subf %1008, %1004 : vector<1x64xf32>
    %1010 = vector.broadcast %1009 : vector<1x64xf32> to vector<4x64xf32>
    %1011 = vector.broadcast %1005 : vector<4x1xf32> to vector<4x64xf32>
    %1012 = arith.mulf %1010, %1011 : vector<4x64xf32>
    %1013 = arith.addf %1002, %1012 : vector<4x64xf32>
    %cst_213 = arith.constant 2.000000e+00 : f32
    %1014 = vector.broadcast %cst_213 : f32 to vector<4x1xf32>
    %1015 = arith.mulf %1014, %1005 : vector<4x1xf32>
    %1016 = vector.broadcast %1015 : vector<4x1xf32> to vector<4x64xf32>
    %1017 = arith.subf %1013, %1016 : vector<4x64xf32>
    %1018 = vector.broadcast %1006 : vector<1x64xf32> to vector<4x64xf32>
    %1019 = arith.subf %1013, %1018 : vector<4x64xf32>
    %1020 = arith.maximumf %1019, %1017 : vector<4x64xf32>
    %cst_214 = arith.constant dense<0xFF800000> : vector<64xf32>
    %1021 = vector.multi_reduction <maximumf>, %1020, %cst_214 [0] : vector<4x64xf32> to vector<64xf32>
    %1022 = vector.shape_cast %1021 : vector<64xf32> to vector<1x64xf32>
    %1023 = vector.broadcast %1022 : vector<1x64xf32> to vector<4x64xf32>
    %1024 = arith.subf %1017, %1023 : vector<4x64xf32>
    %1025 = math.exp %1024 : vector<4x64xf32>
    %cst_215 = arith.constant dense<0.000000e+00> : vector<64xf32>
    %1026 = vector.multi_reduction <add>, %1025, %cst_215 [0] : vector<4x64xf32> to vector<64xf32>
    %1027 = vector.shape_cast %1026 : vector<64xf32> to vector<1x64xf32>
    %1028 = vector.broadcast %1022 : vector<1x64xf32> to vector<4x64xf32>
    %1029 = arith.subf %1019, %1028 : vector<4x64xf32>
    %1030 = math.exp %1029 : vector<4x64xf32>
    %cst_216 = arith.constant dense<0.000000e+00> : vector<64xf32>
    %1031 = vector.multi_reduction <add>, %1030, %cst_216 [0] : vector<4x64xf32> to vector<64xf32>
    %1032 = vector.shape_cast %1031 : vector<64xf32> to vector<1x64xf32>
    %1033 = arith.addf %1027, %1032 : vector<1x64xf32>
    %1034 = arith.mulf %1007, %1033 : vector<1x64xf32>
    %1035 = arith.cmpf olt, %1034, %1027 : vector<1x64xf32>
    %cst_217 = arith.constant 1.000000e+00 : f32
    %cst_218 = arith.constant -1.000000e+00 : f32
    %1036 = vector.broadcast %cst_217 : f32 to vector<1x64xf32>
    %1037 = vector.broadcast %cst_218 : f32 to vector<1x64xf32>
    %1038 = arith.select %1035, %1036, %1037 : vector<1x64xi1>, vector<1x64xf32>
    %1039 = arith.subf %1038, %1004 : vector<1x64xf32>
    %1040 = vector.broadcast %1039 : vector<1x64xf32> to vector<4x64xf32>
    %1041 = vector.broadcast %1005 : vector<4x1xf32> to vector<4x64xf32>
    %1042 = arith.mulf %1040, %1041 : vector<4x64xf32>
    %1043 = arith.addf %1002, %1042 : vector<4x64xf32>
    %c24 = arith.constant 24 : index
    %c0_219 = arith.constant 0 : index
    %1044 = vector.load %arg10[%c24, %c0_219] : memref<32x64xf32, #tpu.memory_space<vmem>>, vector<1x64xf32>
    tpu.vector_store %arg10[%c24, %c0_219], %1038 {strides = array<i32>} : memref<32x64xf32, #tpu.memory_space<vmem>>, vector<1x64xf32>,
    %1045 = vector.extract_strided_slice %15 {offsets = [25, 0], sizes = [1, 64], strides = [1, 1]} : vector<32x64xf32> to vector<1x64xf32>
    %1046 = vector.extract_strided_slice %8 {offsets = [0, 25], sizes = [4, 1], strides = [1, 1]} : vector<4x32xf32> to vector<4x1xf32>
    %1047 = vector.extract_strided_slice %7 {offsets = [25, 0], sizes = [1, 64], strides = [1, 1]} : vector<32x64xf32> to vector<1x64xf32>
    %1048 = vector.extract_strided_slice %19 {offsets = [25, 0], sizes = [1, 64], strides = [1, 1]} : vector<32x64xf32> to vector<1x64xf32>
    %cst_220 = arith.constant 1.000000e+00 : f32
    %1049 = vector.broadcast %cst_220 : f32 to vector<1x64xf32>
    %1050 = arith.subf %1049, %1045 : vector<1x64xf32>
    %1051 = vector.broadcast %1050 : vector<1x64xf32> to vector<4x64xf32>
    %1052 = vector.broadcast %1046 : vector<4x1xf32> to vector<4x64xf32>
    %1053 = arith.mulf %1051, %1052 : vector<4x64xf32>
    %1054 = arith.addf %1043, %1053 : vector<4x64xf32>
    %cst_221 = arith.constant 2.000000e+00 : f32
    %1055 = vector.broadcast %cst_221 : f32 to vector<4x1xf32>
    %1056 = arith.mulf %1055, %1046 : vector<4x1xf32>
    %1057 = vector.broadcast %1056 : vector<4x1xf32> to vector<4x64xf32>
    %1058 = arith.subf %1054, %1057 : vector<4x64xf32>
    %1059 = vector.broadcast %1047 : vector<1x64xf32> to vector<4x64xf32>
    %1060 = arith.subf %1054, %1059 : vector<4x64xf32>
    %1061 = arith.maximumf %1060, %1058 : vector<4x64xf32>
    %cst_222 = arith.constant dense<0xFF800000> : vector<64xf32>
    %1062 = vector.multi_reduction <maximumf>, %1061, %cst_222 [0] : vector<4x64xf32> to vector<64xf32>
    %1063 = vector.shape_cast %1062 : vector<64xf32> to vector<1x64xf32>
    %1064 = vector.broadcast %1063 : vector<1x64xf32> to vector<4x64xf32>
    %1065 = arith.subf %1058, %1064 : vector<4x64xf32>
    %1066 = math.exp %1065 : vector<4x64xf32>
    %cst_223 = arith.constant dense<0.000000e+00> : vector<64xf32>
    %1067 = vector.multi_reduction <add>, %1066, %cst_223 [0] : vector<4x64xf32> to vector<64xf32>
    %1068 = vector.shape_cast %1067 : vector<64xf32> to vector<1x64xf32>
    %1069 = vector.broadcast %1063 : vector<1x64xf32> to vector<4x64xf32>
    %1070 = arith.subf %1060, %1069 : vector<4x64xf32>
    %1071 = math.exp %1070 : vector<4x64xf32>
    %cst_224 = arith.constant dense<0.000000e+00> : vector<64xf32>
    %1072 = vector.multi_reduction <add>, %1071, %cst_224 [0] : vector<4x64xf32> to vector<64xf32>
    %1073 = vector.shape_cast %1072 : vector<64xf32> to vector<1x64xf32>
    %1074 = arith.addf %1068, %1073 : vector<1x64xf32>
    %1075 = arith.mulf %1048, %1074 : vector<1x64xf32>
    %1076 = arith.cmpf olt, %1075, %1068 : vector<1x64xf32>
    %cst_225 = arith.constant 1.000000e+00 : f32
    %cst_226 = arith.constant -1.000000e+00 : f32
    %1077 = vector.broadcast %cst_225 : f32 to vector<1x64xf32>
    %1078 = vector.broadcast %cst_226 : f32 to vector<1x64xf32>
    %1079 = arith.select %1076, %1077, %1078 : vector<1x64xi1>, vector<1x64xf32>
    %1080 = arith.subf %1079, %1045 : vector<1x64xf32>
    %1081 = vector.broadcast %1080 : vector<1x64xf32> to vector<4x64xf32>
    %1082 = vector.broadcast %1046 : vector<4x1xf32> to vector<4x64xf32>
    %1083 = arith.mulf %1081, %1082 : vector<4x64xf32>
    %1084 = arith.addf %1043, %1083 : vector<4x64xf32>
    %c25 = arith.constant 25 : index
    %c0_227 = arith.constant 0 : index
    %1085 = vector.load %arg10[%c25, %c0_227] : memref<32x64xf32, #tpu.memory_space<vmem>>, vector<1x64xf32>
    tpu.vector_store %arg10[%c25, %c0_227], %1079 {strides = array<i32>} : memref<32x64xf32, #tpu.memory_space<vmem>>, vector<1x64xf32>,
    %1086 = vector.extract_strided_slice %15 {offsets = [26, 0], sizes = [1, 64], strides = [1, 1]} : vector<32x64xf32> to vector<1x64xf32>
    %1087 = vector.extract_strided_slice %8 {offsets = [0, 26], sizes = [4, 1], strides = [1, 1]} : vector<4x32xf32> to vector<4x1xf32>
    %1088 = vector.extract_strided_slice %7 {offsets = [26, 0], sizes = [1, 64], strides = [1, 1]} : vector<32x64xf32> to vector<1x64xf32>
    %1089 = vector.extract_strided_slice %19 {offsets = [26, 0], sizes = [1, 64], strides = [1, 1]} : vector<32x64xf32> to vector<1x64xf32>
    %cst_228 = arith.constant 1.000000e+00 : f32
    %1090 = vector.broadcast %cst_228 : f32 to vector<1x64xf32>
    %1091 = arith.subf %1090, %1086 : vector<1x64xf32>
    %1092 = vector.broadcast %1091 : vector<1x64xf32> to vector<4x64xf32>
    %1093 = vector.broadcast %1087 : vector<4x1xf32> to vector<4x64xf32>
    %1094 = arith.mulf %1092, %1093 : vector<4x64xf32>
    %1095 = arith.addf %1084, %1094 : vector<4x64xf32>
    %cst_229 = arith.constant 2.000000e+00 : f32
    %1096 = vector.broadcast %cst_229 : f32 to vector<4x1xf32>
    %1097 = arith.mulf %1096, %1087 : vector<4x1xf32>
    %1098 = vector.broadcast %1097 : vector<4x1xf32> to vector<4x64xf32>
    %1099 = arith.subf %1095, %1098 : vector<4x64xf32>
    %1100 = vector.broadcast %1088 : vector<1x64xf32> to vector<4x64xf32>
    %1101 = arith.subf %1095, %1100 : vector<4x64xf32>
    %1102 = arith.maximumf %1101, %1099 : vector<4x64xf32>
    %cst_230 = arith.constant dense<0xFF800000> : vector<64xf32>
    %1103 = vector.multi_reduction <maximumf>, %1102, %cst_230 [0] : vector<4x64xf32> to vector<64xf32>
    %1104 = vector.shape_cast %1103 : vector<64xf32> to vector<1x64xf32>
    %1105 = vector.broadcast %1104 : vector<1x64xf32> to vector<4x64xf32>
    %1106 = arith.subf %1099, %1105 : vector<4x64xf32>
    %1107 = math.exp %1106 : vector<4x64xf32>
    %cst_231 = arith.constant dense<0.000000e+00> : vector<64xf32>
    %1108 = vector.multi_reduction <add>, %1107, %cst_231 [0] : vector<4x64xf32> to vector<64xf32>
    %1109 = vector.shape_cast %1108 : vector<64xf32> to vector<1x64xf32>
    %1110 = vector.broadcast %1104 : vector<1x64xf32> to vector<4x64xf32>
    %1111 = arith.subf %1101, %1110 : vector<4x64xf32>
    %1112 = math.exp %1111 : vector<4x64xf32>
    %cst_232 = arith.constant dense<0.000000e+00> : vector<64xf32>
    %1113 = vector.multi_reduction <add>, %1112, %cst_232 [0] : vector<4x64xf32> to vector<64xf32>
    %1114 = vector.shape_cast %1113 : vector<64xf32> to vector<1x64xf32>
    %1115 = arith.addf %1109, %1114 : vector<1x64xf32>
    %1116 = arith.mulf %1089, %1115 : vector<1x64xf32>
    %1117 = arith.cmpf olt, %1116, %1109 : vector<1x64xf32>
    %cst_233 = arith.constant 1.000000e+00 : f32
    %cst_234 = arith.constant -1.000000e+00 : f32
    %1118 = vector.broadcast %cst_233 : f32 to vector<1x64xf32>
    %1119 = vector.broadcast %cst_234 : f32 to vector<1x64xf32>
    %1120 = arith.select %1117, %1118, %1119 : vector<1x64xi1>, vector<1x64xf32>
    %1121 = arith.subf %1120, %1086 : vector<1x64xf32>
    %1122 = vector.broadcast %1121 : vector<1x64xf32> to vector<4x64xf32>
    %1123 = vector.broadcast %1087 : vector<4x1xf32> to vector<4x64xf32>
    %1124 = arith.mulf %1122, %1123 : vector<4x64xf32>
    %1125 = arith.addf %1084, %1124 : vector<4x64xf32>
    %c26 = arith.constant 26 : index
    %c0_235 = arith.constant 0 : index
    %1126 = vector.load %arg10[%c26, %c0_235] : memref<32x64xf32, #tpu.memory_space<vmem>>, vector<1x64xf32>
    tpu.vector_store %arg10[%c26, %c0_235], %1120 {strides = array<i32>} : memref<32x64xf32, #tpu.memory_space<vmem>>, vector<1x64xf32>,
    %1127 = vector.extract_strided_slice %15 {offsets = [27, 0], sizes = [1, 64], strides = [1, 1]} : vector<32x64xf32> to vector<1x64xf32>
    %1128 = vector.extract_strided_slice %8 {offsets = [0, 27], sizes = [4, 1], strides = [1, 1]} : vector<4x32xf32> to vector<4x1xf32>
    %1129 = vector.extract_strided_slice %7 {offsets = [27, 0], sizes = [1, 64], strides = [1, 1]} : vector<32x64xf32> to vector<1x64xf32>
    %1130 = vector.extract_strided_slice %19 {offsets = [27, 0], sizes = [1, 64], strides = [1, 1]} : vector<32x64xf32> to vector<1x64xf32>
    %cst_236 = arith.constant 1.000000e+00 : f32
    %1131 = vector.broadcast %cst_236 : f32 to vector<1x64xf32>
    %1132 = arith.subf %1131, %1127 : vector<1x64xf32>
    %1133 = vector.broadcast %1132 : vector<1x64xf32> to vector<4x64xf32>
    %1134 = vector.broadcast %1128 : vector<4x1xf32> to vector<4x64xf32>
    %1135 = arith.mulf %1133, %1134 : vector<4x64xf32>
    %1136 = arith.addf %1125, %1135 : vector<4x64xf32>
    %cst_237 = arith.constant 2.000000e+00 : f32
    %1137 = vector.broadcast %cst_237 : f32 to vector<4x1xf32>
    %1138 = arith.mulf %1137, %1128 : vector<4x1xf32>
    %1139 = vector.broadcast %1138 : vector<4x1xf32> to vector<4x64xf32>
    %1140 = arith.subf %1136, %1139 : vector<4x64xf32>
    %1141 = vector.broadcast %1129 : vector<1x64xf32> to vector<4x64xf32>
    %1142 = arith.subf %1136, %1141 : vector<4x64xf32>
    %1143 = arith.maximumf %1142, %1140 : vector<4x64xf32>
    %cst_238 = arith.constant dense<0xFF800000> : vector<64xf32>
    %1144 = vector.multi_reduction <maximumf>, %1143, %cst_238 [0] : vector<4x64xf32> to vector<64xf32>
    %1145 = vector.shape_cast %1144 : vector<64xf32> to vector<1x64xf32>
    %1146 = vector.broadcast %1145 : vector<1x64xf32> to vector<4x64xf32>
    %1147 = arith.subf %1140, %1146 : vector<4x64xf32>
    %1148 = math.exp %1147 : vector<4x64xf32>
    %cst_239 = arith.constant dense<0.000000e+00> : vector<64xf32>
    %1149 = vector.multi_reduction <add>, %1148, %cst_239 [0] : vector<4x64xf32> to vector<64xf32>
    %1150 = vector.shape_cast %1149 : vector<64xf32> to vector<1x64xf32>
    %1151 = vector.broadcast %1145 : vector<1x64xf32> to vector<4x64xf32>
    %1152 = arith.subf %1142, %1151 : vector<4x64xf32>
    %1153 = math.exp %1152 : vector<4x64xf32>
    %cst_240 = arith.constant dense<0.000000e+00> : vector<64xf32>
    %1154 = vector.multi_reduction <add>, %1153, %cst_240 [0] : vector<4x64xf32> to vector<64xf32>
    %1155 = vector.shape_cast %1154 : vector<64xf32> to vector<1x64xf32>
    %1156 = arith.addf %1150, %1155 : vector<1x64xf32>
    %1157 = arith.mulf %1130, %1156 : vector<1x64xf32>
    %1158 = arith.cmpf olt, %1157, %1150 : vector<1x64xf32>
    %cst_241 = arith.constant 1.000000e+00 : f32
    %cst_242 = arith.constant -1.000000e+00 : f32
    %1159 = vector.broadcast %cst_241 : f32 to vector<1x64xf32>
    %1160 = vector.broadcast %cst_242 : f32 to vector<1x64xf32>
    %1161 = arith.select %1158, %1159, %1160 : vector<1x64xi1>, vector<1x64xf32>
    %1162 = arith.subf %1161, %1127 : vector<1x64xf32>
    %1163 = vector.broadcast %1162 : vector<1x64xf32> to vector<4x64xf32>
    %1164 = vector.broadcast %1128 : vector<4x1xf32> to vector<4x64xf32>
    %1165 = arith.mulf %1163, %1164 : vector<4x64xf32>
    %1166 = arith.addf %1125, %1165 : vector<4x64xf32>
    %c27 = arith.constant 27 : index
    %c0_243 = arith.constant 0 : index
    %1167 = vector.load %arg10[%c27, %c0_243] : memref<32x64xf32, #tpu.memory_space<vmem>>, vector<1x64xf32>
    tpu.vector_store %arg10[%c27, %c0_243], %1161 {strides = array<i32>} : memref<32x64xf32, #tpu.memory_space<vmem>>, vector<1x64xf32>,
    %1168 = vector.extract_strided_slice %15 {offsets = [28, 0], sizes = [1, 64], strides = [1, 1]} : vector<32x64xf32> to vector<1x64xf32>
    %1169 = vector.extract_strided_slice %8 {offsets = [0, 28], sizes = [4, 1], strides = [1, 1]} : vector<4x32xf32> to vector<4x1xf32>
    %1170 = vector.extract_strided_slice %7 {offsets = [28, 0], sizes = [1, 64], strides = [1, 1]} : vector<32x64xf32> to vector<1x64xf32>
    %1171 = vector.extract_strided_slice %19 {offsets = [28, 0], sizes = [1, 64], strides = [1, 1]} : vector<32x64xf32> to vector<1x64xf32>
    %cst_244 = arith.constant 1.000000e+00 : f32
    %1172 = vector.broadcast %cst_244 : f32 to vector<1x64xf32>
    %1173 = arith.subf %1172, %1168 : vector<1x64xf32>
    %1174 = vector.broadcast %1173 : vector<1x64xf32> to vector<4x64xf32>
    %1175 = vector.broadcast %1169 : vector<4x1xf32> to vector<4x64xf32>
    %1176 = arith.mulf %1174, %1175 : vector<4x64xf32>
    %1177 = arith.addf %1166, %1176 : vector<4x64xf32>
    %cst_245 = arith.constant 2.000000e+00 : f32
    %1178 = vector.broadcast %cst_245 : f32 to vector<4x1xf32>
    %1179 = arith.mulf %1178, %1169 : vector<4x1xf32>
    %1180 = vector.broadcast %1179 : vector<4x1xf32> to vector<4x64xf32>
    %1181 = arith.subf %1177, %1180 : vector<4x64xf32>
    %1182 = vector.broadcast %1170 : vector<1x64xf32> to vector<4x64xf32>
    %1183 = arith.subf %1177, %1182 : vector<4x64xf32>
    %1184 = arith.maximumf %1183, %1181 : vector<4x64xf32>
    %cst_246 = arith.constant dense<0xFF800000> : vector<64xf32>
    %1185 = vector.multi_reduction <maximumf>, %1184, %cst_246 [0] : vector<4x64xf32> to vector<64xf32>
    %1186 = vector.shape_cast %1185 : vector<64xf32> to vector<1x64xf32>
    %1187 = vector.broadcast %1186 : vector<1x64xf32> to vector<4x64xf32>
    %1188 = arith.subf %1181, %1187 : vector<4x64xf32>
    %1189 = math.exp %1188 : vector<4x64xf32>
    %cst_247 = arith.constant dense<0.000000e+00> : vector<64xf32>
    %1190 = vector.multi_reduction <add>, %1189, %cst_247 [0] : vector<4x64xf32> to vector<64xf32>
    %1191 = vector.shape_cast %1190 : vector<64xf32> to vector<1x64xf32>
    %1192 = vector.broadcast %1186 : vector<1x64xf32> to vector<4x64xf32>
    %1193 = arith.subf %1183, %1192 : vector<4x64xf32>
    %1194 = math.exp %1193 : vector<4x64xf32>
    %cst_248 = arith.constant dense<0.000000e+00> : vector<64xf32>
    %1195 = vector.multi_reduction <add>, %1194, %cst_248 [0] : vector<4x64xf32> to vector<64xf32>
    %1196 = vector.shape_cast %1195 : vector<64xf32> to vector<1x64xf32>
    %1197 = arith.addf %1191, %1196 : vector<1x64xf32>
    %1198 = arith.mulf %1171, %1197 : vector<1x64xf32>
    %1199 = arith.cmpf olt, %1198, %1191 : vector<1x64xf32>
    %cst_249 = arith.constant 1.000000e+00 : f32
    %cst_250 = arith.constant -1.000000e+00 : f32
    %1200 = vector.broadcast %cst_249 : f32 to vector<1x64xf32>
    %1201 = vector.broadcast %cst_250 : f32 to vector<1x64xf32>
    %1202 = arith.select %1199, %1200, %1201 : vector<1x64xi1>, vector<1x64xf32>
    %1203 = arith.subf %1202, %1168 : vector<1x64xf32>
    %1204 = vector.broadcast %1203 : vector<1x64xf32> to vector<4x64xf32>
    %1205 = vector.broadcast %1169 : vector<4x1xf32> to vector<4x64xf32>
    %1206 = arith.mulf %1204, %1205 : vector<4x64xf32>
    %1207 = arith.addf %1166, %1206 : vector<4x64xf32>
    %c28 = arith.constant 28 : index
    %c0_251 = arith.constant 0 : index
    %1208 = vector.load %arg10[%c28, %c0_251] : memref<32x64xf32, #tpu.memory_space<vmem>>, vector<1x64xf32>
    tpu.vector_store %arg10[%c28, %c0_251], %1202 {strides = array<i32>} : memref<32x64xf32, #tpu.memory_space<vmem>>, vector<1x64xf32>,
    %1209 = vector.extract_strided_slice %15 {offsets = [29, 0], sizes = [1, 64], strides = [1, 1]} : vector<32x64xf32> to vector<1x64xf32>
    %1210 = vector.extract_strided_slice %8 {offsets = [0, 29], sizes = [4, 1], strides = [1, 1]} : vector<4x32xf32> to vector<4x1xf32>
    %1211 = vector.extract_strided_slice %7 {offsets = [29, 0], sizes = [1, 64], strides = [1, 1]} : vector<32x64xf32> to vector<1x64xf32>
    %1212 = vector.extract_strided_slice %19 {offsets = [29, 0], sizes = [1, 64], strides = [1, 1]} : vector<32x64xf32> to vector<1x64xf32>
    %cst_252 = arith.constant 1.000000e+00 : f32
    %1213 = vector.broadcast %cst_252 : f32 to vector<1x64xf32>
    %1214 = arith.subf %1213, %1209 : vector<1x64xf32>
    %1215 = vector.broadcast %1214 : vector<1x64xf32> to vector<4x64xf32>
    %1216 = vector.broadcast %1210 : vector<4x1xf32> to vector<4x64xf32>
    %1217 = arith.mulf %1215, %1216 : vector<4x64xf32>
    %1218 = arith.addf %1207, %1217 : vector<4x64xf32>
    %cst_253 = arith.constant 2.000000e+00 : f32
    %1219 = vector.broadcast %cst_253 : f32 to vector<4x1xf32>
    %1220 = arith.mulf %1219, %1210 : vector<4x1xf32>
    %1221 = vector.broadcast %1220 : vector<4x1xf32> to vector<4x64xf32>
    %1222 = arith.subf %1218, %1221 : vector<4x64xf32>
    %1223 = vector.broadcast %1211 : vector<1x64xf32> to vector<4x64xf32>
    %1224 = arith.subf %1218, %1223 : vector<4x64xf32>
    %1225 = arith.maximumf %1224, %1222 : vector<4x64xf32>
    %cst_254 = arith.constant dense<0xFF800000> : vector<64xf32>
    %1226 = vector.multi_reduction <maximumf>, %1225, %cst_254 [0] : vector<4x64xf32> to vector<64xf32>
    %1227 = vector.shape_cast %1226 : vector<64xf32> to vector<1x64xf32>
    %1228 = vector.broadcast %1227 : vector<1x64xf32> to vector<4x64xf32>
    %1229 = arith.subf %1222, %1228 : vector<4x64xf32>
    %1230 = math.exp %1229 : vector<4x64xf32>
    %cst_255 = arith.constant dense<0.000000e+00> : vector<64xf32>
    %1231 = vector.multi_reduction <add>, %1230, %cst_255 [0] : vector<4x64xf32> to vector<64xf32>
    %1232 = vector.shape_cast %1231 : vector<64xf32> to vector<1x64xf32>
    %1233 = vector.broadcast %1227 : vector<1x64xf32> to vector<4x64xf32>
    %1234 = arith.subf %1224, %1233 : vector<4x64xf32>
    %1235 = math.exp %1234 : vector<4x64xf32>
    %cst_256 = arith.constant dense<0.000000e+00> : vector<64xf32>
    %1236 = vector.multi_reduction <add>, %1235, %cst_256 [0] : vector<4x64xf32> to vector<64xf32>
    %1237 = vector.shape_cast %1236 : vector<64xf32> to vector<1x64xf32>
    %1238 = arith.addf %1232, %1237 : vector<1x64xf32>
    %1239 = arith.mulf %1212, %1238 : vector<1x64xf32>
    %1240 = arith.cmpf olt, %1239, %1232 : vector<1x64xf32>
    %cst_257 = arith.constant 1.000000e+00 : f32
    %cst_258 = arith.constant -1.000000e+00 : f32
    %1241 = vector.broadcast %cst_257 : f32 to vector<1x64xf32>
    %1242 = vector.broadcast %cst_258 : f32 to vector<1x64xf32>
    %1243 = arith.select %1240, %1241, %1242 : vector<1x64xi1>, vector<1x64xf32>
    %1244 = arith.subf %1243, %1209 : vector<1x64xf32>
    %1245 = vector.broadcast %1244 : vector<1x64xf32> to vector<4x64xf32>
    %1246 = vector.broadcast %1210 : vector<4x1xf32> to vector<4x64xf32>
    %1247 = arith.mulf %1245, %1246 : vector<4x64xf32>
    %1248 = arith.addf %1207, %1247 : vector<4x64xf32>
    %c29 = arith.constant 29 : index
    %c0_259 = arith.constant 0 : index
    %1249 = vector.load %arg10[%c29, %c0_259] : memref<32x64xf32, #tpu.memory_space<vmem>>, vector<1x64xf32>
    tpu.vector_store %arg10[%c29, %c0_259], %1243 {strides = array<i32>} : memref<32x64xf32, #tpu.memory_space<vmem>>, vector<1x64xf32>,
    %1250 = vector.extract_strided_slice %15 {offsets = [30, 0], sizes = [1, 64], strides = [1, 1]} : vector<32x64xf32> to vector<1x64xf32>
    %1251 = vector.extract_strided_slice %8 {offsets = [0, 30], sizes = [4, 1], strides = [1, 1]} : vector<4x32xf32> to vector<4x1xf32>
    %1252 = vector.extract_strided_slice %7 {offsets = [30, 0], sizes = [1, 64], strides = [1, 1]} : vector<32x64xf32> to vector<1x64xf32>
    %1253 = vector.extract_strided_slice %19 {offsets = [30, 0], sizes = [1, 64], strides = [1, 1]} : vector<32x64xf32> to vector<1x64xf32>
    %cst_260 = arith.constant 1.000000e+00 : f32
    %1254 = vector.broadcast %cst_260 : f32 to vector<1x64xf32>
    %1255 = arith.subf %1254, %1250 : vector<1x64xf32>
    %1256 = vector.broadcast %1255 : vector<1x64xf32> to vector<4x64xf32>
    %1257 = vector.broadcast %1251 : vector<4x1xf32> to vector<4x64xf32>
    %1258 = arith.mulf %1256, %1257 : vector<4x64xf32>
    %1259 = arith.addf %1248, %1258 : vector<4x64xf32>
    %cst_261 = arith.constant 2.000000e+00 : f32
    %1260 = vector.broadcast %cst_261 : f32 to vector<4x1xf32>
    %1261 = arith.mulf %1260, %1251 : vector<4x1xf32>
    %1262 = vector.broadcast %1261 : vector<4x1xf32> to vector<4x64xf32>
    %1263 = arith.subf %1259, %1262 : vector<4x64xf32>
    %1264 = vector.broadcast %1252 : vector<1x64xf32> to vector<4x64xf32>
    %1265 = arith.subf %1259, %1264 : vector<4x64xf32>
    %1266 = arith.maximumf %1265, %1263 : vector<4x64xf32>
    %cst_262 = arith.constant dense<0xFF800000> : vector<64xf32>
    %1267 = vector.multi_reduction <maximumf>, %1266, %cst_262 [0] : vector<4x64xf32> to vector<64xf32>
    %1268 = vector.shape_cast %1267 : vector<64xf32> to vector<1x64xf32>
    %1269 = vector.broadcast %1268 : vector<1x64xf32> to vector<4x64xf32>
    %1270 = arith.subf %1263, %1269 : vector<4x64xf32>
    %1271 = math.exp %1270 : vector<4x64xf32>
    %cst_263 = arith.constant dense<0.000000e+00> : vector<64xf32>
    %1272 = vector.multi_reduction <add>, %1271, %cst_263 [0] : vector<4x64xf32> to vector<64xf32>
    %1273 = vector.shape_cast %1272 : vector<64xf32> to vector<1x64xf32>
    %1274 = vector.broadcast %1268 : vector<1x64xf32> to vector<4x64xf32>
    %1275 = arith.subf %1265, %1274 : vector<4x64xf32>
    %1276 = math.exp %1275 : vector<4x64xf32>
    %cst_264 = arith.constant dense<0.000000e+00> : vector<64xf32>
    %1277 = vector.multi_reduction <add>, %1276, %cst_264 [0] : vector<4x64xf32> to vector<64xf32>
    %1278 = vector.shape_cast %1277 : vector<64xf32> to vector<1x64xf32>
    %1279 = arith.addf %1273, %1278 : vector<1x64xf32>
    %1280 = arith.mulf %1253, %1279 : vector<1x64xf32>
    %1281 = arith.cmpf olt, %1280, %1273 : vector<1x64xf32>
    %cst_265 = arith.constant 1.000000e+00 : f32
    %cst_266 = arith.constant -1.000000e+00 : f32
    %1282 = vector.broadcast %cst_265 : f32 to vector<1x64xf32>
    %1283 = vector.broadcast %cst_266 : f32 to vector<1x64xf32>
    %1284 = arith.select %1281, %1282, %1283 : vector<1x64xi1>, vector<1x64xf32>
    %1285 = arith.subf %1284, %1250 : vector<1x64xf32>
    %1286 = vector.broadcast %1285 : vector<1x64xf32> to vector<4x64xf32>
    %1287 = vector.broadcast %1251 : vector<4x1xf32> to vector<4x64xf32>
    %1288 = arith.mulf %1286, %1287 : vector<4x64xf32>
    %1289 = arith.addf %1248, %1288 : vector<4x64xf32>
    %c30 = arith.constant 30 : index
    %c0_267 = arith.constant 0 : index
    %1290 = vector.load %arg10[%c30, %c0_267] : memref<32x64xf32, #tpu.memory_space<vmem>>, vector<1x64xf32>
    tpu.vector_store %arg10[%c30, %c0_267], %1284 {strides = array<i32>} : memref<32x64xf32, #tpu.memory_space<vmem>>, vector<1x64xf32>,
    %1291 = vector.extract_strided_slice %15 {offsets = [31, 0], sizes = [1, 64], strides = [1, 1]} : vector<32x64xf32> to vector<1x64xf32>
    %1292 = vector.extract_strided_slice %8 {offsets = [0, 31], sizes = [4, 1], strides = [1, 1]} : vector<4x32xf32> to vector<4x1xf32>
    %1293 = vector.extract_strided_slice %7 {offsets = [31, 0], sizes = [1, 64], strides = [1, 1]} : vector<32x64xf32> to vector<1x64xf32>
    %1294 = vector.extract_strided_slice %19 {offsets = [31, 0], sizes = [1, 64], strides = [1, 1]} : vector<32x64xf32> to vector<1x64xf32>
    %cst_268 = arith.constant 1.000000e+00 : f32
    %1295 = vector.broadcast %cst_268 : f32 to vector<1x64xf32>
    %1296 = arith.subf %1295, %1291 : vector<1x64xf32>
    %1297 = vector.broadcast %1296 : vector<1x64xf32> to vector<4x64xf32>
    %1298 = vector.broadcast %1292 : vector<4x1xf32> to vector<4x64xf32>
    %1299 = arith.mulf %1297, %1298 : vector<4x64xf32>
    %1300 = arith.addf %1289, %1299 : vector<4x64xf32>
    %cst_269 = arith.constant 2.000000e+00 : f32
    %1301 = vector.broadcast %cst_269 : f32 to vector<4x1xf32>
    %1302 = arith.mulf %1301, %1292 : vector<4x1xf32>
    %1303 = vector.broadcast %1302 : vector<4x1xf32> to vector<4x64xf32>
    %1304 = arith.subf %1300, %1303 : vector<4x64xf32>
    %1305 = vector.broadcast %1293 : vector<1x64xf32> to vector<4x64xf32>
    %1306 = arith.subf %1300, %1305 : vector<4x64xf32>
    %1307 = arith.maximumf %1306, %1304 : vector<4x64xf32>
    %cst_270 = arith.constant dense<0xFF800000> : vector<64xf32>
    %1308 = vector.multi_reduction <maximumf>, %1307, %cst_270 [0] : vector<4x64xf32> to vector<64xf32>
    %1309 = vector.shape_cast %1308 : vector<64xf32> to vector<1x64xf32>
    %1310 = vector.broadcast %1309 : vector<1x64xf32> to vector<4x64xf32>
    %1311 = arith.subf %1304, %1310 : vector<4x64xf32>
    %1312 = math.exp %1311 : vector<4x64xf32>
    %cst_271 = arith.constant dense<0.000000e+00> : vector<64xf32>
    %1313 = vector.multi_reduction <add>, %1312, %cst_271 [0] : vector<4x64xf32> to vector<64xf32>
    %1314 = vector.shape_cast %1313 : vector<64xf32> to vector<1x64xf32>
    %1315 = vector.broadcast %1309 : vector<1x64xf32> to vector<4x64xf32>
    %1316 = arith.subf %1306, %1315 : vector<4x64xf32>
    %1317 = math.exp %1316 : vector<4x64xf32>
    %cst_272 = arith.constant dense<0.000000e+00> : vector<64xf32>
    %1318 = vector.multi_reduction <add>, %1317, %cst_272 [0] : vector<4x64xf32> to vector<64xf32>
    %1319 = vector.shape_cast %1318 : vector<64xf32> to vector<1x64xf32>
    %1320 = arith.addf %1314, %1319 : vector<1x64xf32>
    %1321 = arith.mulf %1294, %1320 : vector<1x64xf32>
    %1322 = arith.cmpf olt, %1321, %1314 : vector<1x64xf32>
    %cst_273 = arith.constant 1.000000e+00 : f32
    %cst_274 = arith.constant -1.000000e+00 : f32
    %1323 = vector.broadcast %cst_273 : f32 to vector<1x64xf32>
    %1324 = vector.broadcast %cst_274 : f32 to vector<1x64xf32>
    %1325 = arith.select %1322, %1323, %1324 : vector<1x64xi1>, vector<1x64xf32>
    %c31 = arith.constant 31 : index
    %c0_275 = arith.constant 0 : index
    %1326 = vector.load %arg10[%c31, %c0_275] : memref<32x64xf32, #tpu.memory_space<vmem>>, vector<1x64xf32>
    tpu.vector_store %arg10[%c31, %c0_275], %1325 {strides = array<i32>} : memref<32x64xf32, #tpu.memory_space<vmem>>, vector<1x64xf32>,
    %c0_276 = arith.constant 0 : index
    %c0_277 = arith.constant 0 : index
    %1327 = vector.load %arg10[%c0_276, %c0_277] : memref<32x64xf32, #tpu.memory_space<vmem>>, vector<32x64xf32>
    %cst_278 = arith.constant dense<0.000000e+00> : vector<4x64xf32>
    %1328 = tpu.matmul %8, %1327, %cst_278 {dimension_numbers = #tpu.dot_dimension_numbers<[1], [0], [0], [1], [0, 0, 1, 1], [], []>} : vector<4x32xf32>, vector<32x64xf32>, vector<4x64xf32> -> vector<4x64xf32>
    %1329 = vector.broadcast %9 : vector<4x1xf32> to vector<4x64xf32>
    %1330 = arith.addf %1329, %1328 : vector<4x64xf32>
    %cst_279 = arith.constant dense<0xFF800000> : vector<64xf32>
    %1331 = vector.multi_reduction <maximumf>, %1330, %cst_279 [0] : vector<4x64xf32> to vector<64xf32>
    %1332 = vector.shape_cast %1331 : vector<64xf32> to vector<1x64xf32>
    %1333 = vector.broadcast %1332 : vector<1x64xf32> to vector<4x64xf32>
    %1334 = arith.subf %1330, %1333 : vector<4x64xf32>
    %1335 = math.exp %1334 : vector<4x64xf32>
    %cst_280 = arith.constant dense<0.000000e+00> : vector<64xf32>
    %1336 = vector.multi_reduction <add>, %1335, %cst_280 [0] : vector<4x64xf32> to vector<64xf32>
    %1337 = vector.shape_cast %1336 : vector<64xf32> to vector<1x64xf32>
    %1338 = math.log %1337 : vector<1x64xf32>
    %1339 = arith.addf %1332, %1338 : vector<1x64xf32>
    %1340 = vector.shape_cast %1339 : vector<1x64xf32> to vector<1x1x64xf32>
    %cst_281 = arith.constant dense<0.000000e+00> : vector<1xf32>
    %1341 = vector.multi_reduction <add>, %1340, %cst_281 [1, 2] : vector<1x1x64xf32> to vector<1xf32>
    %1342 = vector.shape_cast %1341 : vector<1xf32> to vector<1x1x1xf32>
    %1343 = vector.extract %1342[0, 0, 0] : f32 from vector<1x1x1xf32>
    %cst_282 = arith.constant 1.250000e-01 : f32
    %1344 = arith.mulf %1343, %cst_282 : f32
    %c0_283 = arith.constant 0 : index
    %c0_284 = arith.constant 0 : index
    %1345 = memref.load %arg8[%c0_283, %c0_284] : memref<1x1xf32, #tpu.memory_space<smem>>
    %c0_285 = arith.constant 0 : index
    %c0_286 = arith.constant 0 : index
    %1346 = vector.load %arg3[%c0_285, %c0_286] : memref<32x64xf32, #tpu.memory_space<vmem>>, vector<32x64xf32>
    %1347 = arith.mulf %1327, %1346 : vector<32x64xf32>
    %1348 = vector.shape_cast %1347 : vector<32x64xf32> to vector<1x32x64xf32>
    %cst_287 = arith.constant dense<0.000000e+00> : vector<1xf32>
    %1349 = vector.multi_reduction <add>, %1348, %cst_287 [1, 2] : vector<1x32x64xf32> to vector<1xf32>
    %1350 = vector.shape_cast %1349 : vector<1xf32> to vector<1x1x1xf32>
    %1351 = vector.extract %1350[0, 0, 0] : f32 from vector<1x1x1xf32>
    %cst_288 = arith.constant 6.250000e-02 : f32
    %1352 = arith.mulf %cst_288, %1351 : f32
    %1353 = arith.addf %1345, %1352 : f32
    %cst_289 = arith.constant 1.000000e+00 : f32
    %1354 = vector.broadcast %cst_289 : f32 to vector<32x64xf32>
    %1355 = arith.addf %1327, %1354 : vector<32x64xf32>
    %1356 = arith.mulf %1355, %5 : vector<32x64xf32>
    %1357 = vector.shape_cast %1356 : vector<32x64xf32> to vector<1x32x64xf32>
    %cst_290 = arith.constant dense<0.000000e+00> : vector<1xf32>
    %1358 = vector.multi_reduction <add>, %1357, %cst_290 [1, 2] : vector<1x32x64xf32> to vector<1xf32>
    %1359 = vector.shape_cast %1358 : vector<1xf32> to vector<1x1x1xf32>
    %1360 = vector.extract %1359[0, 0, 0] : f32 from vector<1x1x1xf32>
    %cst_291 = arith.constant 6.250000e-02 : f32
    %1361 = arith.mulf %cst_291, %1360 : f32
    %cst_292 = arith.constant 0.000000e+00 : f32
    %1362 = vector.broadcast %cst_292 : f32 to vector<32x64xf32>
    %1363 = arith.maximumf %5, %1362 : vector<32x64xf32>
    %1364 = math.absf %5 : vector<32x64xf32>
    %cst_293 = arith.constant 0.000000e+00 : f32
    %1365 = vector.broadcast %cst_293 : f32 to vector<32x64xf32>
    %1366 = arith.subf %1365, %1364 : vector<32x64xf32>
    %1367 = math.exp %1366 : vector<32x64xf32>
    %cst_294 = arith.constant 1.000000e+00 : f32
    %1368 = vector.broadcast %cst_294 : f32 to vector<32x64xf32>
    %1369 = arith.addf %1368, %1367 : vector<32x64xf32>
    %1370 = math.log %1369 : vector<32x64xf32>
    %1371 = arith.addf %1363, %1370 : vector<32x64xf32>
    %1372 = vector.shape_cast %1371 : vector<32x64xf32> to vector<1x32x64xf32>
    %cst_295 = arith.constant dense<0.000000e+00> : vector<1xf32>
    %1373 = vector.multi_reduction <add>, %1372, %cst_295 [1, 2] : vector<1x32x64xf32> to vector<1xf32>
    %1374 = vector.shape_cast %1373 : vector<1xf32> to vector<1x1x1xf32>
    %1375 = vector.extract %1374[0, 0, 0] : f32 from vector<1x1x1xf32>
    %cst_296 = arith.constant 1.250000e-01 : f32
    %1376 = arith.mulf %cst_296, %1375 : f32
    %1377 = arith.subf %1353, %1344 : f32
    %1378 = arith.addf %1377, %1361 : f32
    %1379 = arith.subf %1378, %1376 : f32
    %c0_297 = arith.constant 0 : index
    %c0_298 = arith.constant 0 : index
    %1380 = memref.load %arg9[%c0_297, %c0_298] : memref<1x1xf32, #tpu.memory_space<smem>>
    memref.store %1379, %arg9[%c0_297, %c0_298] : memref<1x1xf32, #tpu.memory_space<smem>>
    return
  }
}

</mosaic_0001>

<bundles_post_ra>
// kernel: tpu_custom_call.1
= control target key start
LH: loop header
LB: loop body
LE: loop exit
PB: predicated region body
PF: predicated region fallthrough
CT: control target
= control target key end

     0   :  { %15 = vsyncpa [#allocation5], 0  ;;  %s3613_s0 = inlined_call_operand.vmem [shape: f32[32,16], index: 0, kind: input, shape index: {}]   ;;  %s3614_s1 = inlined_call_operand.hbm [shape: f32[16,64], index: 1, kind: input, shape index: {}]   ;;  %s3615_s2 = inlined_call_operand.vmem [shape: f32[32,1], index: 2, kind: input, shape index: {}]   ;;  %s3616_s3 = inlined_call_operand.vmem [shape: f32[32,64], index: 3, kind: input, shape index: {}]   ;;  %s3617_s4 = inlined_call_operand.vmem [shape: f32[4,32], index: 4, kind: input, shape index: {}]   ;;  %s3618_s5 = inlined_call_operand.vmem [shape: f32[4,1], index: 5, kind: input, shape index: {}]   ;;  %s3619_s6 = inlined_call_operand.vmem [shape: f32[32,64], index: 6, kind: input, shape index: {}]   ;;  %s3620_s7 = inlined_call_operand.vmem [shape: f32[32,64], index: 7, kind: input, shape index: {}]   ;;  %s3621_s8 = inlined_call_operand.<no memory space> [shape: f32[1,1], index: 8, kind: input, shape index: {}]   ;;  %s3622_s9 = inlined_call_operand.hbm [shape: f32[1,1], index: 9, kind: output, shape index: {}]  }
   0x1   :  { %16 = vsyncpa [#allocation6], 0  ;;  %s2808_s30 = smov [#allocation4]   ;;  %s2772_s13 = scalar_lea.hbm %s3614_s1, 256 }
   0x2   :  { %s24_s10 = sshll.u32 %s2808_s30, 4  ;;  %p2773_p0 = scmp.ne.s32.totalorder %s3614_s1, %s2772_s13  ;;  %s25_s10 = int_to_ptr.vmem [resolvable:$true] %s24_s10 }
   0x3   :  { %p2776_p1 = scmp.lt.u32.totalorder %s2772_s13, %s3614_s1 }
   0x5   :  { %p2778_p2 = pnand %p2776_p1, %p2773_p0 }
   0x7   :  { %2781 = shalt.err (!%p2778_p2)
}
   0x8   :  { %s2782_s18 = scalar_lea.vmem %s25_s10, 256  ;;  %p2787_p4 = scmp.lt.s32.totalorder %s25_s10, %s25_s10 }
   0x9   :  { %p2783_p3 = scmp.ne.s32.totalorder %s25_s10, %s2782_s18  ;;  %p2788_p5 = scmp.lt.s32.totalorder %s2782_s18, %s2782_s18 }
   0xb   :  { %p2789_p6 = por %p2788_p5, %p2787_p4 }
   0xd   :  { %p2790_p7 = pnand %p2789_p6, %p2783_p3 }
   0xf   :  { %2793 = shalt.err (!%p2790_p7)
}
  0x10   :  { %s2809_s19 = smov 128   ;;  %s2810_s20 = smov 8  }
  0x11   :  { %30 = dma.hbm_to_vmem [thread:$0]  %s3614_s1, 256, %s25_s10, [#allocation5], %s2809_s19, %s2809_s19, %s2810_s20  }
  0x12   :  { %2804 = dma.done.wait [#allocation5], 256  }
  0x13   :  { %2805 = vsyncadd [#allocation5], 4294967040  ;;  %v2811_v0 = vmov 0   ;;  %v2812_v1 = vmov 0.0|0.0   ;;  %vm2813_vm0 = vmmov 0   ;;  %v2814_v2 = vmov 0.0  }
  0x14   :  { %2564 = vset.pattern.permute.xlu1 %v2811_v0  ;;  %2503 = vmatprep.subr.bf16.mxu1 %v2812_v1  ;;  %vm58_vm1 = vcmask 130048   ;;  %v2917_v3 = vld [vmem:[%s3617_s4] sm:$0xf]  ;;  %v57_v5 = vld [vmem:[#allocation4 + $0x8] sm:$0xff]  ;;  %v192_v11 = vld [vmem:[%s3619_s6 + $0x10] sm:$0xff]  ;;  %v2815_v13 = vmov -1.0   ;;  %v287_v48 = vlaneseq }
  0x15   :  { %2485 = vmatprep.mubr.msk.f32.mxu1 %vm2813_vm0, %v2814_v2  ;;  %2563 = vset.pattern.permute.xlu0 %v2811_v0  ;;  %v56_v4 = vld [vmem:[#allocation4] sm:$0xff]  ;;  %v191_v8 = vld [vmem:[%s3619_s6 + $0x8] sm:$0xff]  ;;  %v2927_v9 = vmul.f32 2.0, %v2917_v3  ;;  %v193_v12 = vld [vmem:[%s3619_s6 + $0x18] sm:$0xff]  ;;  %vm196_vm4 = vcmp.lt.f32.partialorder %v192_v11, 0.5  ;;  %v2816_v25 = vmov 1  }
  0x16   :  { %292 = vperm.xlu1 %2564, %v2917_v3   ;;  %v2499_v6 = vpack.c.bf16 %v57_v5, %v56_v4  ;;  %v190_v7 = vld [vmem:[%s3619_s6] sm:$0xff]  ;;  %vm195_vm3 = vcmp.lt.f32.partialorder %v191_v8, 0.5  ;;  %vm197_vm5 = vcmp.lt.f32.partialorder %v193_v12, 0.5  ;;  %v53_v18 = vld [vmem:[%s3613_s0 + $0x8] sm:$0xff]  ;;  %v2954_v19 = vsel %vm196_vm4, 1.0, %v2815_v13  ;;  %v54_v21 = vld [vmem:[%s3613_s0 + $0x10] sm:$0xff] }
  0x17   :  { %v52_v10 = vld [vmem:[%s3613_s0] sm:$0xff]  ;;  %vm194_vm2 = vcmp.lt.f32.partialorder %v190_v7, 0.5  ;;  %v2943_v15 = vsel %vm195_vm3, 1.0, %v2815_v13  ;;  %v2957_v20 = vsel %vm197_vm5, 1.0, %v2815_v13  ;;  %v55_v24 = vld [vmem:[%s3613_s0 + $0x18] sm:$0xff]  ;;  %vm202_vm6 = vcmask 261120  }
  0x18   :  { %2471 = vmatprep.mubr.msk.f32.mxu0 %vm58_vm1, %v52_v10  ;;  %2500 = vmatprep.subr.bf16.mxu0 %v2499_v6  ;;  %v2940_v14 = vsel %vm194_vm2, 1.0, %v2815_v13  ;;  %v48_v16 = vld [vmem:[%s3615_s2] sm:$0xff]  ;;  %v2507_v23 = vpack.c.bf16 %v2957_v20, %v2954_v19  ;;  %v2817_v26 = vmov 2   ;;  %v2818_v27 = vmov 3   ;;  %v49_v35 = vld [vmem:[%s3615_s2 + $0x8] sm:$0xff]  ;;  %v51_v46 = vld [vmem:[%s3615_s2 + $0x18] sm:$0xff] }
  0x19   :  { %2502 = vmatpush3.bf16.msra.mxu0 %v2499_v6  ;;  %v2504_v17 = vpack.c.bf16 %v2943_v15, %v2940_v14  ;;  %158 = vperm.xlu0 %2563, %v48_v16   ;;  %v189_v22 = vld [vmem:[%s3618_s5] sm:$0xf]  ;;  %v2819_v28 = vmov 4   ;;  %v2820_v29 = vmov 5   ;;  %v2821_v30 = vmov 7   ;;  %v50_v47 = vld [vmem:[%s3615_s2 + $0x10] sm:$0xff] }
  0x1a   :  { %300 = vperm.xlu1 %2564, %v2927_v9   ;;  %2509 = vmatprep.subr.bf16.mxu0 %v2812_v1  ;;  %v2822_v31 = vmov 8   ;;  %v2823_v32 = vmov 6   ;;  %v2824_v33 = vmov 9   ;;  %v2825_v34 = vmov 11   ;;  %v180_v57 = vld [vmem:[%s3616_s3] sm:$0xff]  ;;  %s2794_s17 = scalar_lea.hbm %s3622_s9, 16 }
  0x1b   :  { %2505 = vmatpush3.bf16.msra.mxu1 %v2504_v17  ;;  %v2826_v36 = vmov 12   ;;  %v2827_v37 = vmov 14   ;;  %v2828_v38 = vmov 15   ;;  %v2829_v39 = vmov 10   ;;  %p2795_p8 = scmp.ne.s32.totalorder %s3622_s9, %s2794_s17  ;;  %p2798_p9 = scmp.lt.u32.totalorder %s2794_s17, %s3622_s9 }
  0x1c   :  { %2472 = vmatmul.mubr.msk.f32.vlgmr.msra.gmra.mrb[0].mxu0 %vm58_vm1, %v53_v18  ;;  %2506 = vmatprep.subr.bf16.mxu1 %v2812_v1  ;;  %v2830_v40 = vmov 16   ;;  %v2831_v41 = vmov 18   ;;  %v2832_v42 = vmov 19   ;;  %v2833_v43 = vmov 21  }
  0x1d   :  { %2474 = vmatprep.mubr.msk.f32.mxu0 %vm58_vm1, %v54_v21  ;;  %278 = vperm.xlu0 %2563, %v189_v22   ;;  %v2834_v44 = vmov 13   ;;  %v2835_v45 = vmov 22   ;;  %v3031_v49 = vshrl.u32 %v287_v48, 7  ;;  %v3034_v50 = vsub.f32 1.0, %v2940_v14  ;;  %p2800_p10 = pnand %p2798_p9, %p2795_p8 }
  0x1e   :  { %2566 = vset.pattern.permute.xlu1 %v2816_v25  ;;  %vm310_vm7 = vcmask 519168   ;;  %vm349_vm8 = vcmask 516096   ;;  %vm410_vm10 = vcmask 517121   ;;  %vm471_vm12 = vcmask 518146  }
  0x1f   :  { %2508 = vmatpush3.bf16.msra.mxu1 %v2507_v23  ;;  %362 = vperm.xlu1 %2566, %v2927_v9   ;;  %v3037_v51 = vsub.s32 0, %v3031_v49  ;;  %vm532_vm14 = vcmask 519171   ;;  %vm654_vm2 = vcmask 521221   ;;  %vm715_vm4 = vcmask 522246  }
  0x20   :  { %2475 = vmatmul.mubr.msk.f32.gmra.mrb[2].mxu0 %vm58_vm1, %v55_v24 }
  0x21   :  { %2565 = vset.pattern.permute.xlu0 %v2816_v25  ;;  %2496 = vmatprep.mubr.msk.f32.mxu0 %vm2813_vm0, %v2814_v2  ;;  %v290_v54 = vrot.slane %v3034_v50, %v3037_v51  ;;  %vm593_vm0 = vcmask 520196  }
  0x22   :  { %2486 = vmatmul.mubr.msk.f32.vlgmr.msra.gmra.mrb[0].mxu1 %vm202_vm6, %v2917_v3  ;;  %356 = vperm.xlu0 %2565, %v2917_v3  }
  0x23   :  { %2567 = vset.pattern.permute.xlu1 %v2817_v26 }
  0x24   :  { %417 = vperm.xlu1 %2567, %v2917_v3  }
  0x26   :  { %2568 = vset.pattern.permute.xlu0 %v2817_v26 }
  0x27   :  { %423 = vperm.xlu0 %2568, %v2927_v9  }
  0x28   :  { %2569 = vset.pattern.permute.xlu1 %v2818_v27 }
  0x29   :  { %478 = vperm.xlu1 %2569, %v2917_v3  }
  0x2b   :  { %2570 = vset.pattern.permute.xlu0 %v2819_v28 }
  0x2c   :  { %539 = vperm.xlu0 %2570, %v2917_v3  }
  0x2d   :  { %484 = vperm.xlu1 %2569, %v2927_v9  }
  0x30   :  { %2573 = vset.pattern.permute.xlu0 %v2820_v29 }
  0x31   :  { %2571 = vset.pattern.permute.xlu1 %v2819_v28  ;;  %606 = vperm.xlu0 %2573, %v2927_v9  }
  0x32   :  { %545 = vperm.xlu1 %2571, %v2927_v9  }
  0x35   :  { %2575 = vset.pattern.permute.xlu0 %v2821_v30 }
  0x36   :  { %2572 = vset.pattern.permute.xlu1 %v2820_v29  ;;  %722 = vperm.xlu0 %2575, %v2917_v3  }
  0x37   :  { %600 = vperm.xlu1 %2572, %v2917_v3  }
  0x3a   :  { %2578 = vset.pattern.permute.xlu0 %v2822_v31 }
  0x3b   :  { %2574 = vset.pattern.permute.xlu1 %v2823_v32  ;;  %784 = vperm.xlu0 %2578, %v2917_v3  }
  0x3c   :  { %661 = vperm.xlu1 %2574, %v2917_v3  }
  0x3f   :  { %2581 = vset.pattern.permute.xlu0 %v2824_v33 }
  0x40   :  { %667 = vperm.xlu1 %2574, %v2927_v9   ;;  %850 = vperm.xlu0 %2581, %v2927_v9  }
  0x44   :  { %2576 = vset.pattern.permute.xlu1 %v2821_v30  ;;  %2583 = vset.pattern.permute.xlu0 %v2825_v34 }
  0x45   :  { %728 = vperm.xlu1 %2576, %v2927_v9   ;;  %964 = vperm.xlu0 %2583, %v2917_v3  }
  0x49   :  { %2577 = vset.pattern.permute.xlu1 %v2811_v0  ;;  %2586 = vset.pattern.permute.xlu0 %v2826_v36 }
  0x4a   :  { %163 = vperm.xlu1 %2577, %v49_v35   ;;  %1030 = vperm.xlu0 %2586, %v2927_v9  }
  0x4e   :  { %2579 = vset.pattern.permute.xlu1 %v2822_v31  ;;  %2588 = vset.pattern.permute.xlu0 %v2827_v37 }
  0x4f   :  { %790 = vperm.xlu1 %2579, %v2927_v9   ;;  %1144 = vperm.xlu0 %2588, %v2917_v3  }
  0x53   :  { %2580 = vset.pattern.permute.xlu1 %v2824_v33  ;;  %2591 = vset.pattern.permute.xlu0 %v2828_v38 }
  0x54   :  { %844 = vperm.xlu1 %2580, %v2917_v3   ;;  %1210 = vperm.xlu0 %2591, %v2927_v9  }
  0x58   :  { %2582 = vset.pattern.permute.xlu1 %v2829_v39  ;;  %2594 = vset.pattern.permute.xlu0 %v2830_v40 }
  0x59   :  { %904 = vperm.xlu1 %2582, %v2917_v3   ;;  %1271 = vperm.xlu0 %2594, %v2927_v9  }
  0x5d   :  { %910 = vperm.xlu1 %2582, %v2927_v9   ;;  %2596 = vset.pattern.permute.xlu0 %v2831_v41 }
  0x5e   :  { %1385 = vperm.xlu0 %2596, %v2917_v3  }
  0x61   :  { %2584 = vset.pattern.permute.xlu1 %v2825_v34 }
  0x62   :  { %970 = vperm.xlu1 %2584, %v2927_v9   ;;  %2599 = vset.pattern.permute.xlu0 %v2832_v42 }
  0x63   :  { %1451 = vperm.xlu0 %2599, %v2927_v9  }
  0x66   :  { %2585 = vset.pattern.permute.xlu1 %v2826_v36 }
  0x67   :  { %1024 = vperm.xlu1 %2585, %v2917_v3   ;;  %2601 = vset.pattern.permute.xlu0 %v2833_v43 }
  0x68   :  { %1565 = vperm.xlu0 %2601, %v2917_v3  }
  0x6b   :  { %2587 = vset.pattern.permute.xlu1 %v2834_v44 }
  0x6c   :  { %1084 = vperm.xlu1 %2587, %v2917_v3   ;;  %2604 = vset.pattern.permute.xlu0 %v2835_v45 }
  0x6d   :  { %1631 = vperm.xlu0 %2604, %v2927_v9  }
  0x70   :  { %1090 = vperm.xlu1 %2587, %v2927_v9  }
  0x71   :  { %2606 = vset.pattern.permute.xlu0 %v2811_v0 }
  0x72   :  { %173 = vperm.xlu0 %2606, %v51_v46  }
  0x74   :  { %2589 = vset.pattern.permute.xlu1 %v2827_v37 }
  0x75   :  { %1150 = vperm.xlu1 %2589, %v2927_v9  }
  0x79   :  { %2590 = vset.pattern.permute.xlu1 %v2828_v38 }
  0x7a   :  { %1204 = vperm.xlu1 %2590, %v2917_v3  }
  0x7e   :  { %2592 = vset.pattern.permute.xlu1 %v2811_v0 }
  0x7f   :  { %168 = vperm.xlu1 %2592, %v50_v47   ;;  %v3066_v47 = vld [vmem:[%s3620_s7] sm:$0xff] }
  0x83   :  { %2593 = vset.pattern.permute.xlu1 %v2830_v40 }
  0x84   :  { %1265 = vperm.xlu1 %2593, %v2917_v3  }
  0x95   :  { %v293_v58 = vpop.permute.xlu1 %292 }
  0x96   :  { %v295_v60 = vmul.f32 %v293_v58, %v290_v54  ;;  %v3070_v54 = vsub.s32 1, %v3031_v49 }
  0x98   :  { %v159_v52 = vpop.permute.xlu0 %158 }
  0x99   :  { %v301_v6 = vpop.permute.xlu1 %300 }
  0x9c   :  { %v3055_v63 = vpop.permute.xlu0 %278 }
  0xef   :  { %v3039_v53 = vpop.f32.mrb[0].mxu0 }
  0xf0   :  { %v137_v55 = vpop.f32.mrb[1].mxu0 }
  0xf1   :  { %v3043_v56 = vadd.f32 %v159_v52, %v137_v55 }
  0xf3   :  { %v3048_v59 = vpop.f32.mrb[2].mxu0  ;;  %v3051_v61 = vadd.f32 %v180_v57, %v3043_v56  ;;  %v354_v57 = vrot.slane %v3034_v50, %v3070_v54 }
  0xf4   :  { %v3053_v62 = vpop.f32.mrb[3].mxu0 }
  0xf5   :  { %v272_v0 = vpop.f32.mrb[0].mxu1  ;;  %v307_v5 = vrot.slane %v3051_v61, %v3037_v51 }
  0xf6   :  { %v281_v2 = vadd.f32 %v3055_v63, %v272_v0  ;;  %v2487_v3 = vpop.f32.mrb[1].mxu1 }
  0xf7   :  { %v357_v3 = vpop.permute.xlu0 %356 }
  0xf8   :  { %v296_v4 = vadd.f32 %v295_v60, %v281_v2 }
  0xfa   :  { %v303_v7 = vsub.f32 %v296_v4, %v301_v6  ;;  %v308_v8 = vsub.f32 %v296_v4, %v307_v5  ;;  %v359_v4 = vmul.f32 %v357_v3, %v354_v57  ;;  %v3085_v57 = vsub.s32 2, %v3031_v49 }
  0xfc   :  { %v309_v10 = vmax.f32 %v308_v8, %v303_v7 }
  0xfe   :  { %v311_v11 = vsel %vm310_vm7, %v309_v10, -inf  ;;  %v363_v10 = vpop.permute.xlu1 %362 }
  0xff   :  { %v312_v12 = vrot.slane %v311_v11, 4 }
 0x101   :  { %v313_v16 = vmax.f32 %v311_v11, %v312_v12 }
 0x103   :  { %v314_v17 = vrot.slane %v313_v16, 2 }
 0x105   :  { %v315_v18 = vmax.f32 %v313_v16, %v314_v17 }
 0x107   :  { %v316_v21 = vrot.slane %v315_v18, 1 }
 0x109   :  { %v317_v22 = vmax.f32 %v315_v18, %v316_v21 }
 0x10b   :  { %v318_v23 = vsub.f32 %v303_v7, %v317_v22  ;;  %v328_v24 = vsub.f32 %v308_v8, %v317_v22  ;;  %v369_v8 = vrot.slane %v3051_v61, %v3070_v54 }
 0x10d   :  { %v319_v25 = vmul.f32 1.442695, %v318_v23  ;;  %v329_v26 = vmul.f32 1.442695, %v328_v24 }
 0x10f   :  { %2620 = vpow2.f32 %v319_v25 }
 0x110   :  { %2622 = vpow2.f32 %v329_v26 }
 0x119   :  { %v2621_v27 = vpop.eup %2620 }
 0x11a   :  { %v2623_v28 = vpop.eup %2622  ;;  %v321_v29 = vsel %vm310_vm7, %v2621_v27, 0.0 }
 0x11b   :  { %v322_v30 = vrot.slane %v321_v29, 4  ;;  %v331_v31 = vsel %vm310_vm7, %v2623_v28, 0.0 }
 0x11c   :  { %v332_v32 = vrot.slane %v331_v31, 4 }
 0x11d   :  { %v323_v33 = vadd.f32 %v322_v30, %v321_v29 }
 0x11e   :  { %v333_v34 = vadd.f32 %v332_v32, %v331_v31 }
 0x11f   :  { %v324_v35 = vrot.slane %v323_v33, 2 }
 0x120   :  { %v334_v36 = vrot.slane %v333_v34, 2 }
 0x121   :  { %v325_v37 = vadd.f32 %v324_v35, %v323_v33 }
 0x122   :  { %v335_v38 = vadd.f32 %v334_v36, %v333_v34 }
 0x123   :  { %v326_v39 = vrot.slane %v325_v37, 1 }
 0x124   :  { %v336_v40 = vrot.slane %v335_v38, 1 }
 0x125   :  { %v327_v44 = vadd.f32 %v326_v39, %v325_v37 }
 0x126   :  { %v337_v46 = vadd.f32 %v336_v40, %v335_v38 }
 0x128   :  { %v338_v48 = vadd.f32 %v337_v46, %v327_v44 }
 0x12a   :  { %v339_v52 = vmul.f32 %v338_v48, %v3066_v47 }
 0x12c   :  { %vm340_vm9 = vcmp.lt.f32.partialorder %v339_v52, %v327_v44 }
 0x12d   :  { %v341_v55 = vsel %vm340_vm9, 1.0, %v2815_v13  ;;  %vm776_vm9 = vcmask 523271  }
 0x12e   :  { %v342_v60 = vsub.f32 %v341_v55, %v2940_v14  ;;  %350 = vst.msk [vmem:[#allocation2] sm:$0x1] %vm349_vm8, %v341_v55 }
 0x130   :  { %v346_v0 = vrot.slane %v342_v60, %v3037_v51 }
 0x132   :  { %v347_v5 = vmul.f32 %v346_v0, %v293_v58  ;;  %v415_v0 = vrot.slane %v3034_v50, %v3085_v57 }
 0x134   :  { %v348_v6 = vadd.f32 %v347_v5, %v281_v2 }
 0x136   :  { %v360_v7 = vadd.f32 %v359_v4, %v348_v6 }
 0x138   :  { %v365_v11 = vsub.f32 %v360_v7, %v363_v10  ;;  %v370_v12 = vsub.f32 %v360_v7, %v369_v8  ;;  %v418_v7 = vpop.permute.xlu1 %417 }
 0x139   :  { %v420_v8 = vmul.f32 %v418_v7, %v415_v0 }
 0x13a   :  { %v371_v16 = vmax.f32 %v370_v12, %v365_v11 }
 0x13c   :  { %v372_v17 = vsel %vm310_vm7, %v371_v16, -inf  ;;  %v430_v16 = vrot.slane %v3051_v61, %v3085_v57 }
 0x13d   :  { %v373_v18 = vrot.slane %v372_v17, 4 }
 0x13f   :  { %v374_v21 = vmax.f32 %v372_v17, %v373_v18  ;;  %v424_v17 = vpop.permute.xlu0 %423 }
 0x141   :  { %v375_v22 = vrot.slane %v374_v21, 2 }
 0x143   :  { %v376_v23 = vmax.f32 %v374_v21, %v375_v22 }
 0x145   :  { %v377_v24 = vrot.slane %v376_v23, 1 }
 0x147   :  { %v378_v25 = vmax.f32 %v376_v23, %v377_v24 }
 0x149   :  { %v379_v26 = vsub.f32 %v365_v11, %v378_v25  ;;  %v389_v27 = vsub.f32 %v370_v12, %v378_v25 }
 0x14b   :  { %v380_v58 = vmul.f32 1.442695, %v379_v26  ;;  %v390_v2 = vmul.f32 1.442695, %v389_v27 }
 0x14d   :  { %2624 = vpow2.f32 %v380_v58 }
 0x14e   :  { %2626 = vpow2.f32 %v390_v2 }
 0x157   :  { %v2625_v28 = vpop.eup %2624 }
 0x158   :  { %v2627_v29 = vpop.eup %2626  ;;  %v382_v30 = vsel %vm310_vm7, %v2625_v28, 0.0 }
 0x159   :  { %v383_v31 = vrot.slane %v382_v30, 4  ;;  %v392_v32 = vsel %vm310_vm7, %v2627_v29, 0.0 }
 0x15a   :  { %v393_v33 = vrot.slane %v392_v32, 4 }
 0x15b   :  { %v384_v34 = vadd.f32 %v383_v31, %v382_v30 }
 0x15c   :  { %v394_v35 = vadd.f32 %v393_v33, %v392_v32 }
 0x15d   :  { %v385_v36 = vrot.slane %v384_v34, 2 }
 0x15e   :  { %v395_v37 = vrot.slane %v394_v35, 2 }
 0x15f   :  { %v386_v38 = vadd.f32 %v385_v36, %v384_v34 }
 0x160   :  { %v396_v39 = vadd.f32 %v395_v37, %v394_v35 }
 0x161   :  { %v387_v40 = vrot.slane %v386_v38, 1 }
 0x162   :  { %v397_v44 = vrot.slane %v396_v39, 1 }
 0x163   :  { %v388_v46 = vadd.f32 %v387_v40, %v386_v38 }
 0x164   :  { %v398_v48 = vadd.f32 %v397_v44, %v396_v39 }
 0x166   :  { %v399_v52 = vadd.f32 %v398_v48, %v388_v46 }
 0x168   :  { %v400_v55 = vmul.f32 %v399_v52, %v3066_v47 }
 0x16a   :  { %vm401_vm11 = vcmp.lt.f32.partialorder %v400_v55, %v388_v46 }
 0x16b   :  { %v402_v60 = vsel %vm401_vm11, 1.0, %v2815_v13 }
 0x16c   :  { %v403_v4 = vsub.f32 %v402_v60, %v2940_v14  ;;  %411 = vst.msk [vmem:[#allocation2] sm:$0x2] %vm410_vm10, %v402_v60 }
 0x16e   :  { %v407_v5 = vrot.slane %v403_v4, %v3070_v54  ;;  %v3100_v4 = vsub.s32 3, %v3031_v49 }
 0x170   :  { %v408_v10 = vmul.f32 %v407_v5, %v357_v3 }
 0x172   :  { %v409_v11 = vadd.f32 %v408_v10, %v348_v6 }
 0x174   :  { %v421_v12 = vadd.f32 %v420_v8, %v409_v11  ;;  %v476_v8 = vrot.slane %v3034_v50, %v3100_v4 }
 0x176   :  { %v426_v18 = vsub.f32 %v421_v12, %v424_v17  ;;  %v431_v21 = vsub.f32 %v421_v12, %v430_v16  ;;  %v479_v16 = vpop.permute.xlu1 %478 }
 0x177   :  { %v481_v17 = vmul.f32 %v479_v16, %v476_v8 }
 0x178   :  { %v432_v22 = vmax.f32 %v431_v21, %v426_v18 }
 0x17a   :  { %v433_v23 = vsel %vm310_vm7, %v432_v22, -inf }
 0x17b   :  { %v434_v24 = vrot.slane %v433_v23, 4 }
 0x17d   :  { %v435_v25 = vmax.f32 %v433_v23, %v434_v24  ;;  %v491_v23 = vrot.slane %v3051_v61, %v3100_v4  ;;  %v485_v24 = vpop.permute.xlu1 %484 }
 0x17f   :  { %v436_v26 = vrot.slane %v435_v25, 2 }
 0x181   :  { %v437_v27 = vmax.f32 %v435_v25, %v436_v26 }
 0x183   :  { %v438_v58 = vrot.slane %v437_v27, 1 }
 0x185   :  { %v439_v2 = vmax.f32 %v437_v27, %v438_v58 }
 0x187   :  { %v440_v28 = vsub.f32 %v426_v18, %v439_v2  ;;  %v450_v29 = vsub.f32 %v431_v21, %v439_v2 }
 0x189   :  { %v441_v3 = vmul.f32 1.442695, %v440_v28  ;;  %v451_v6 = vmul.f32 1.442695, %v450_v29 }
 0x18b   :  { %2628 = vpow2.f32 %v441_v3 }
 0x18c   :  { %2630 = vpow2.f32 %v451_v6 }
 0x195   :  { %v2629_v30 = vpop.eup %2628 }
 0x196   :  { %v2631_v31 = vpop.eup %2630  ;;  %v443_v32 = vsel %vm310_vm7, %v2629_v30, 0.0 }
 0x197   :  { %v444_v33 = vrot.slane %v443_v32, 4  ;;  %v453_v34 = vsel %vm310_vm7, %v2631_v31, 0.0 }
 0x198   :  { %v454_v35 = vrot.slane %v453_v34, 4 }
 0x199   :  { %v445_v36 = vadd.f32 %v444_v33, %v443_v32 }
 0x19a   :  { %v455_v37 = vadd.f32 %v454_v35, %v453_v34 }
 0x19b   :  { %v446_v38 = vrot.slane %v445_v36, 2 }
 0x19c   :  { %v456_v39 = vrot.slane %v455_v37, 2 }
 0x19d   :  { %v447_v40 = vadd.f32 %v446_v38, %v445_v36 }
 0x19e   :  { %v457_v44 = vadd.f32 %v456_v39, %v455_v37 }
 0x19f   :  { %v448_v46 = vrot.slane %v447_v40, 1 }
 0x1a0   :  { %v458_v48 = vrot.slane %v457_v44, 1 }
 0x1a1   :  { %v449_v52 = vadd.f32 %v448_v46, %v447_v40 }
 0x1a2   :  { %v459_v55 = vadd.f32 %v458_v48, %v457_v44 }
 0x1a4   :  { %v460_v60 = vadd.f32 %v459_v55, %v449_v52 }
 0x1a6   :  { %v461_v0 = vmul.f32 %v460_v60, %v3066_v47 }
 0x1a8   :  { %vm462_vm13 = vcmp.lt.f32.partialorder %v461_v0, %v449_v52 }
 0x1a9   :  { %v463_v5 = vsel %vm462_vm13, 1.0, %v2815_v13 }
 0x1aa   :  { %v464_v10 = vsub.f32 %v463_v5, %v2940_v14  ;;  %472 = vst.msk [vmem:[#allocation2] sm:$0x4] %vm471_vm12, %v463_v5 }
 0x1ac   :  { %v468_v12 = vrot.slane %v464_v10, %v3085_v57 }
 0x1ae   :  { %v469_v18 = vmul.f32 %v468_v12, %v418_v7  ;;  %v3115_v12 = vsub.s32 4, %v3031_v49 }
 0x1b0   :  { %v470_v21 = vadd.f32 %v469_v18, %v409_v11  ;;  %v537_v18 = vrot.slane %v3034_v50, %v3115_v12 }
 0x1b2   :  { %v482_v22 = vadd.f32 %v481_v17, %v470_v21 }
 0x1b4   :  { %v487_v25 = vsub.f32 %v482_v22, %v485_v24  ;;  %v492_v26 = vsub.f32 %v482_v22, %v491_v23  ;;  %v540_v24 = vpop.permute.xlu0 %539 }
 0x1b6   :  { %v493_v27 = vmax.f32 %v492_v26, %v487_v25 }
 0x1b8   :  { %v494_v58 = vsel %vm310_vm7, %v493_v27, -inf }
 0x1b9   :  { %v495_v2 = vrot.slane %v494_v58, 4 }
 0x1bb   :  { %v496_v28 = vmax.f32 %v494_v58, %v495_v2  ;;  %v552_v2 = vrot.slane %v3051_v61, %v3115_v12 }
 0x1bd   :  { %v497_v29 = vrot.slane %v496_v28, 2 }
 0x1bf   :  { %v498_v3 = vmax.f32 %v496_v28, %v497_v29  ;;  %v546_v28 = vpop.permute.xlu1 %545 }
 0x1c1   :  { %v499_v6 = vrot.slane %v498_v3, 1 }
 0x1c3   :  { %v500_v30 = vmax.f32 %v498_v3, %v499_v6 }
 0x1c5   :  { %v501_v31 = vsub.f32 %v487_v25, %v500_v30  ;;  %v511_v32 = vsub.f32 %v492_v26, %v500_v30  ;;  %v542_v25 = vmul.f32 %v540_v24, %v537_v18 }
 0x1c7   :  { %v502_v7 = vmul.f32 1.442695, %v501_v31  ;;  %v512_v11 = vmul.f32 1.442695, %v511_v32 }
 0x1c9   :  { %2632 = vpow2.f32 %v502_v7 }
 0x1ca   :  { %2634 = vpow2.f32 %v512_v11 }
 0x1d3   :  { %v2633_v33 = vpop.eup %2632 }
 0x1d4   :  { %v2635_v34 = vpop.eup %2634  ;;  %v504_v35 = vsel %vm310_vm7, %v2633_v33, 0.0 }
 0x1d5   :  { %v505_v36 = vrot.slane %v504_v35, 4  ;;  %v514_v37 = vsel %vm310_vm7, %v2635_v34, 0.0 }
 0x1d6   :  { %v515_v38 = vrot.slane %v514_v37, 4 }
 0x1d7   :  { %v506_v39 = vadd.f32 %v505_v36, %v504_v35 }
 0x1d8   :  { %v516_v40 = vadd.f32 %v515_v38, %v514_v37 }
 0x1d9   :  { %v507_v44 = vrot.slane %v506_v39, 2 }
 0x1da   :  { %v517_v46 = vrot.slane %v516_v40, 2 }
 0x1db   :  { %v508_v48 = vadd.f32 %v507_v44, %v506_v39 }
 0x1dc   :  { %v518_v52 = vadd.f32 %v517_v46, %v516_v40 }
 0x1dd   :  { %v509_v55 = vrot.slane %v508_v48, 1 }
 0x1de   :  { %v519_v60 = vrot.slane %v518_v52, 1 }
 0x1df   :  { %v510_v0 = vadd.f32 %v509_v55, %v508_v48 }
 0x1e0   :  { %v520_v5 = vadd.f32 %v519_v60, %v518_v52 }
 0x1e2   :  { %v521_v8 = vadd.f32 %v520_v5, %v510_v0 }
 0x1e4   :  { %v522_v10 = vmul.f32 %v521_v8, %v3066_v47 }
 0x1e6   :  { %vm523_vm15 = vcmp.lt.f32.partialorder %v522_v10, %v510_v0 }
 0x1e7   :  { %v524_v17 = vsel %vm523_vm15, 1.0, %v2815_v13 }
 0x1e8   :  { %v525_v22 = vsub.f32 %v524_v17, %v2940_v14  ;;  %533 = vst.msk [vmem:[#allocation2] sm:$0x8] %vm532_vm14, %v524_v17 }
 0x1ea   :  { %v529_v23 = vrot.slane %v525_v22, %v3100_v4 }
 0x1ec   :  { %v530_v26 = vmul.f32 %v529_v23, %v479_v16 }
 0x1ee   :  { %v531_v27 = vadd.f32 %v530_v26, %v470_v21 }
 0x1f0   :  { %v543_v58 = vadd.f32 %v542_v25, %v531_v27  ;;  %v3130_v25 = vsub.s32 5, %v3031_v49 }
 0x1f2   :  { %v548_v29 = vsub.f32 %v543_v58, %v546_v28  ;;  %v553_v3 = vsub.f32 %v543_v58, %v552_v2  ;;  %v598_v58 = vrot.slane %v3034_v50, %v3130_v25 }
 0x1f4   :  { %v554_v6 = vmax.f32 %v553_v3, %v548_v29 }
 0x1f6   :  { %v555_v30 = vsel %vm310_vm7, %v554_v6, -inf }
 0x1f7   :  { %v556_v31 = vrot.slane %v555_v30, 4 }
 0x1f9   :  { %v557_v32 = vmax.f32 %v555_v30, %v556_v31 }
 0x1fb   :  { %v558_v7 = vrot.slane %v557_v32, 2 }
 0x1fd   :  { %v559_v11 = vmax.f32 %v557_v32, %v558_v7  ;;  %v613_v32 = vrot.slane %v3051_v61, %v3130_v25  ;;  %v607_v7 = vpop.permute.xlu0 %606 }
 0x1ff   :  { %v560_v33 = vrot.slane %v559_v11, 1 }
 0x201   :  { %v561_v34 = vmax.f32 %v559_v11, %v560_v33 }
 0x203   :  { %v562_v35 = vsub.f32 %v548_v29, %v561_v34  ;;  %v572_v36 = vsub.f32 %v553_v3, %v561_v34  ;;  %v601_v29 = vpop.permute.xlu1 %600 }
 0x204   :  { %v603_v3 = vmul.f32 %v601_v29, %v598_v58 }
 0x205   :  { %v563_v16 = vmul.f32 1.442695, %v562_v35  ;;  %v573_v21 = vmul.f32 1.442695, %v572_v36 }
 0x207   :  { %2636 = vpow2.f32 %v563_v16 }
 0x208   :  { %2638 = vpow2.f32 %v573_v21 }
 0x211   :  { %v2637_v37 = vpop.eup %2636 }
 0x212   :  { %v2639_v38 = vpop.eup %2638  ;;  %v565_v39 = vsel %vm310_vm7, %v2637_v37, 0.0 }
 0x213   :  { %v566_v40 = vrot.slane %v565_v39, 4  ;;  %v575_v44 = vsel %vm310_vm7, %v2639_v38, 0.0 }
 0x214   :  { %v576_v46 = vrot.slane %v575_v44, 4 }
 0x215   :  { %v567_v48 = vadd.f32 %v566_v40, %v565_v39 }
 0x216   :  { %v577_v52 = vadd.f32 %v576_v46, %v575_v44 }
 0x217   :  { %v568_v55 = vrot.slane %v567_v48, 2 }
 0x218   :  { %v578_v60 = vrot.slane %v577_v52, 2 }
 0x219   :  { %v569_v0 = vadd.f32 %v568_v55, %v567_v48 }
 0x21a   :  { %v579_v5 = vadd.f32 %v578_v60, %v577_v52 }
 0x21b   :  { %v570_v8 = vrot.slane %v569_v0, 1 }
 0x21c   :  { %v580_v10 = vrot.slane %v579_v5, 1 }
 0x21d   :  { %v571_v17 = vadd.f32 %v570_v8, %v569_v0 }
 0x21e   :  { %v581_v18 = vadd.f32 %v580_v10, %v579_v5 }
 0x220   :  { %v582_v22 = vadd.f32 %v581_v18, %v571_v17 }
 0x222   :  { %v583_v23 = vmul.f32 %v582_v22, %v3066_v47 }
 0x224   :  { %vm584_vm1 = vcmp.lt.f32.partialorder %v583_v23, %v571_v17 }
 0x225   :  { %v585_v26 = vsel %vm584_vm1, 1.0, %v2815_v13 }
 0x226   :  { %v586_v2 = vsub.f32 %v585_v26, %v2940_v14  ;;  %594 = vst.msk [vmem:[#allocation2] sm:$0x10] %vm593_vm0, %v585_v26 }
 0x228   :  { %v590_v28 = vrot.slane %v586_v2, %v3115_v12 }
 0x22a   :  { %v591_v6 = vmul.f32 %v590_v28, %v540_v24 }
 0x22c   :  { %v592_v30 = vadd.f32 %v591_v6, %v531_v27  ;;  %v3145_v6 = vsub.s32 6, %v3031_v49 }
 0x22e   :  { %v604_v31 = vadd.f32 %v603_v3, %v592_v30 }
 0x230   :  { %v609_v11 = vsub.f32 %v604_v31, %v607_v7  ;;  %v614_v33 = vsub.f32 %v604_v31, %v613_v32  ;;  %v659_v32 = vrot.slane %v3034_v50, %v3145_v6 }
 0x232   :  { %v615_v34 = vmax.f32 %v614_v33, %v609_v11 }
 0x234   :  { %v616_v35 = vsel %vm310_vm7, %v615_v34, -inf }
 0x235   :  { %v617_v36 = vrot.slane %v616_v35, 4 }
 0x237   :  { %v618_v16 = vmax.f32 %v616_v35, %v617_v36 }
 0x239   :  { %v619_v21 = vrot.slane %v618_v16, 2 }
 0x23b   :  { %v620_v37 = vmax.f32 %v618_v16, %v619_v21  ;;  %v674_v21 = vrot.slane %v3051_v61, %v3145_v6 }
 0x23d   :  { %v621_v38 = vrot.slane %v620_v37, 1 }
 0x23f   :  { %v622_v39 = vmax.f32 %v620_v37, %v621_v38 }
 0x241   :  { %v623_v40 = vsub.f32 %v609_v11, %v622_v39  ;;  %v633_v44 = vsub.f32 %v614_v33, %v622_v39  ;;  %v662_v33 = vpop.permute.xlu1 %661 }
 0x242   :  { %v664_v34 = vmul.f32 %v662_v33, %v659_v32 }
 0x243   :  { %v624_v24 = vmul.f32 1.442695, %v623_v40  ;;  %v634_v27 = vmul.f32 1.442695, %v633_v44 }
 0x245   :  { %2640 = vpow2.f32 %v624_v24  ;;  %v668_v37 = vpop.permute.xlu1 %667 }
 0x246   :  { %2642 = vpow2.f32 %v634_v27 }
 0x24f   :  { %v2641_v46 = vpop.eup %2640 }
 0x250   :  { %v2643_v48 = vpop.eup %2642  ;;  %v626_v52 = vsel %vm310_vm7, %v2641_v46, 0.0 }
 0x251   :  { %v627_v55 = vrot.slane %v626_v52, 4  ;;  %v636_v60 = vsel %vm310_vm7, %v2643_v48, 0.0 }
 0x252   :  { %v637_v0 = vrot.slane %v636_v60, 4 }
 0x253   :  { %v628_v5 = vadd.f32 %v627_v55, %v626_v52 }
 0x254   :  { %v638_v8 = vadd.f32 %v637_v0, %v636_v60 }
 0x255   :  { %v629_v10 = vrot.slane %v628_v5, 2 }
 0x256   :  { %v639_v17 = vrot.slane %v638_v8, 2 }
 0x257   :  { %v630_v18 = vadd.f32 %v629_v10, %v628_v5 }
 0x258   :  { %v640_v22 = vadd.f32 %v639_v17, %v638_v8 }
 0x259   :  { %v631_v23 = vrot.slane %v630_v18, 1 }
 0x25a   :  { %v641_v26 = vrot.slane %v640_v22, 1 }
 0x25b   :  { %v632_v58 = vadd.f32 %v631_v23, %v630_v18 }
 0x25c   :  { %v642_v2 = vadd.f32 %v641_v26, %v640_v22 }
 0x25e   :  { %v643_v28 = vadd.f32 %v642_v2, %v632_v58 }
 0x260   :  { %v644_v3 = vmul.f32 %v643_v28, %v3066_v47 }
 0x262   :  { %vm645_vm3 = vcmp.lt.f32.partialorder %v644_v3, %v632_v58 }
 0x263   :  { %v646_v31 = vsel %vm645_vm3, 1.0, %v2815_v13 }
 0x264   :  { %v647_v7 = vsub.f32 %v646_v31, %v2940_v14  ;;  %655 = vst.msk [vmem:[#allocation2] sm:$0x20] %vm654_vm2, %v646_v31 }
 0x266   :  { %v651_v11 = vrot.slane %v647_v7, %v3130_v25 }
 0x268   :  { %v652_v35 = vmul.f32 %v651_v11, %v601_v29 }
 0x26a   :  { %v653_v36 = vadd.f32 %v652_v35, %v592_v30 }
 0x26c   :  { %v665_v16 = vadd.f32 %v664_v34, %v653_v36 }
 0x26e   :  { %v670_v38 = vsub.f32 %v665_v16, %v668_v37  ;;  %v675_v39 = vsub.f32 %v665_v16, %v674_v21  ;;  %v3160_v16 = vsub.s32 7, %v3031_v49 }
 0x270   :  { %v676_v40 = vmax.f32 %v675_v39, %v670_v38  ;;  %v720_v37 = vrot.slane %v3034_v50, %v3160_v16  ;;  %v735_v49 = vrot.slane %v3051_v61, %v3160_v16 }
 0x272   :  { %v677_v44 = vsel %vm310_vm7, %v676_v40, -inf  ;;  %v723_v40 = vpop.permute.xlu0 %722 }
 0x273   :  { %v678_v24 = vrot.slane %v677_v44, 4 }
 0x275   :  { %v679_v27 = vmax.f32 %v677_v44, %v678_v24  ;;  %v725_v44 = vmul.f32 %v723_v40, %v720_v37 }
 0x277   :  { %v680_v46 = vrot.slane %v679_v27, 2 }
 0x279   :  { %v681_v48 = vmax.f32 %v679_v27, %v680_v46 }
 0x27b   :  { %v682_v52 = vrot.slane %v681_v48, 1 }
 0x27d   :  { %v683_v55 = vmax.f32 %v681_v48, %v682_v52  ;;  %v729_v48 = vpop.permute.xlu1 %728 }
 0x27f   :  { %v684_v60 = vsub.f32 %v670_v38, %v683_v55  ;;  %v694_v0 = vsub.f32 %v675_v39, %v683_v55 }
 0x281   :  { %v685_v29 = vmul.f32 1.442695, %v684_v60  ;;  %v695_v30 = vmul.f32 1.442695, %v694_v0 }
 0x283   :  { %2644 = vpow2.f32 %v685_v29 }
 0x284   :  { %2646 = vpow2.f32 %v695_v30 }
 0x28d   :  { %v2645_v5 = vpop.eup %2644 }
 0x28e   :  { %v2647_v8 = vpop.eup %2646  ;;  %v687_v10 = vsel %vm310_vm7, %v2645_v5, 0.0 }
 0x28f   :  { %v688_v17 = vrot.slane %v687_v10, 4  ;;  %v697_v18 = vsel %vm310_vm7, %v2647_v8, 0.0 }
 0x290   :  { %v698_v22 = vrot.slane %v697_v18, 4 }
 0x291   :  { %v689_v23 = vadd.f32 %v688_v17, %v687_v10 }
 0x292   :  { %v699_v26 = vadd.f32 %v698_v22, %v697_v18 }
 0x293   :  { %v690_v58 = vrot.slane %v689_v23, 2 }
 0x294   :  { %v700_v2 = vrot.slane %v699_v26, 2 }
 0x295   :  { %v691_v28 = vadd.f32 %v690_v58, %v689_v23 }
 0x296   :  { %v701_v3 = vadd.f32 %v700_v2, %v699_v26 }
 0x297   :  { %v692_v31 = vrot.slane %v691_v28, 1 }
 0x298   :  { %v702_v32 = vrot.slane %v701_v3, 1 }
 0x299   :  { %v693_v7 = vadd.f32 %v692_v31, %v691_v28 }
 0x29a   :  { %v703_v11 = vadd.f32 %v702_v32, %v701_v3 }
 0x29c   :  { %v704_v34 = vadd.f32 %v703_v11, %v693_v7 }
 0x29e   :  { %v705_v35 = vmul.f32 %v704_v34, %v3066_v47 }
 0x2a0   :  { %vm706_vm5 = vcmp.lt.f32.partialorder %v705_v35, %v693_v7 }
 0x2a1   :  { %v707_v21 = vsel %vm706_vm5, 1.0, %v2815_v13 }
 0x2a2   :  { %v708_v38 = vsub.f32 %v707_v21, %v2940_v14  ;;  %716 = vst.msk [vmem:[#allocation2] sm:$0x40] %vm715_vm4, %v707_v21 }
 0x2a4   :  { %v712_v39 = vrot.slane %v708_v38, %v3145_v6 }
 0x2a6   :  { %v713_v24 = vmul.f32 %v712_v39, %v662_v33  ;;  %v3174_v39 = vsub.f32 1.0, %v2943_v15 }
 0x2a8   :  { %v714_v27 = vadd.f32 %v713_v24, %v653_v36 }
 0x2aa   :  { %v726_v46 = vadd.f32 %v725_v44, %v714_v27 }
 0x2ac   :  { %v731_v52 = vsub.f32 %v726_v46, %v729_v48  ;;  %v736_v55 = vsub.f32 %v726_v46, %v735_v49  ;;  %v782_v46 = vrot.slane %v3174_v39, %v3037_v51  ;;  %v164_v48 = vpop.permute.xlu1 %163 }
 0x2ae   :  { %v737_v60 = vmax.f32 %v736_v55, %v731_v52 }
 0x2b0   :  { %v738_v50 = vsel %vm310_vm7, %v737_v60, -inf  ;;  %v785_v60 = vpop.permute.xlu0 %784 }
 0x2b1   :  { %v739_v0 = vrot.slane %v738_v50, 4 }
 0x2b3   :  { %v740_v29 = vmax.f32 %v738_v50, %v739_v0  ;;  %v787_v50 = vmul.f32 %v785_v60, %v782_v46 }
 0x2b5   :  { %v741_v30 = vrot.slane %v740_v29, 2 }
 0x2b7   :  { %v742_v5 = vmax.f32 %v740_v29, %v741_v30 }
 0x2b9   :  { %v743_v8 = vrot.slane %v742_v5, 1 }
 0x2bb   :  { %v744_v10 = vmax.f32 %v742_v5, %v743_v8  ;;  %v791_v8 = vpop.permute.xlu1 %790 }
 0x2bd   :  { %v745_v17 = vsub.f32 %v731_v52, %v744_v10  ;;  %v755_v18 = vsub.f32 %v736_v55, %v744_v10  ;;  %v181_v52 = vld [vmem:[%s3616_s3 + $0x8] sm:$0xff]  ;;  %v3186_v55 = vadd.f32 %v3039_v53, %v164_v48 }
 0x2bf   :  { %v746_v33 = vmul.f32 1.442695, %v745_v17  ;;  %v756_v36 = vmul.f32 1.442695, %v755_v18  ;;  %v3190_v0 = vadd.f32 %v181_v52, %v3186_v55  ;;  %v3200_v52 = vld [vmem:[%s3620_s7 + $0x8] sm:$0xff] }
 0x2c1   :  { %2648 = vpow2.f32 %v746_v33 }
 0x2c2   :  { %2650 = vpow2.f32 %v756_v36 }
 0x2cb   :  { %v2649_v22 = vpop.eup %2648 }
 0x2cc   :  { %v2651_v61 = vpop.eup %2650  ;;  %v748_v23 = vsel %vm310_vm7, %v2649_v22, 0.0 }
 0x2cd   :  { %v758_v26 = vsel %vm310_vm7, %v2651_v61, 0.0  ;;  %v749_v58 = vrot.slane %v748_v23, 4 }
 0x2ce   :  { %v759_v2 = vrot.slane %v758_v26, 4 }
 0x2cf   :  { %v750_v28 = vadd.f32 %v749_v58, %v748_v23 }
 0x2d0   :  { %v760_v3 = vadd.f32 %v759_v2, %v758_v26 }
 0x2d1   :  { %v751_v31 = vrot.slane %v750_v28, 2 }
 0x2d2   :  { %v761_v32 = vrot.slane %v760_v3, 2 }
 0x2d3   :  { %v752_v7 = vadd.f32 %v751_v31, %v750_v28 }
 0x2d4   :  { %v762_v11 = vadd.f32 %v761_v32, %v760_v3 }
 0x2d5   :  { %v753_v34 = vrot.slane %v752_v7, 1 }
 0x2d6   :  { %v763_v35 = vrot.slane %v762_v11, 1 }
 0x2d7   :  { %v754_v21 = vadd.f32 %v753_v34, %v752_v7 }
 0x2d8   :  { %v764_v37 = vadd.f32 %v763_v35, %v762_v11 }
 0x2da   :  { %v765_v38 = vadd.f32 %v764_v37, %v754_v21 }
 0x2dc   :  { %v766_v44 = vmul.f32 %v765_v38, %v3066_v47 }
 0x2de   :  { %vm767_vm11 = vcmp.lt.f32.partialorder %v766_v44, %v754_v21 }
 0x2df   :  { %v768_v24 = vsel %vm767_vm11, 1.0, %v2815_v13 }
 0x2e0   :  { %v769_v49 = vsub.f32 %v768_v24, %v2940_v14  ;;  %777 = vst.msk [vmem:[#allocation2] sm:$0x80] %vm776_vm9, %v768_v24  ;;  %v797_v14 = vrot.slane %v3190_v0, %v3037_v51 }
 0x2e2   :  { %v773_v47 = vrot.slane %v769_v49, %v3160_v16 }
 0x2e4   :  { %v774_v29 = vmul.f32 %v773_v47, %v723_v40 }
 0x2e6   :  { %v775_v30 = vadd.f32 %v774_v29, %v714_v27 }
 0x2e8   :  { %v788_v5 = vadd.f32 %v787_v50, %v775_v30 }
 0x2ea   :  { %v793_v10 = vsub.f32 %v788_v5, %v791_v8  ;;  %v798_v17 = vsub.f32 %v788_v5, %v797_v14  ;;  %v842_v14 = vrot.slane %v3174_v39, %v3070_v54 }
 0x2ec   :  { %v799_v18 = vmax.f32 %v798_v17, %v793_v10 }
 0x2ee   :  { %v800_v53 = vsel %vm310_vm7, %v799_v18, -inf }
 0x2ef   :  { %v801_v33 = vrot.slane %v800_v53, 4 }
 0x2f1   :  { %v802_v36 = vmax.f32 %v800_v53, %v801_v33  ;;  %v857_v33 = vrot.slane %v3190_v0, %v3070_v54 }
 0x2f3   :  { %v803_v22 = vrot.slane %v802_v36, 2 }
 0x2f5   :  { %v804_v61 = vmax.f32 %v802_v36, %v803_v22  ;;  %v851_v22 = vpop.permute.xlu0 %850 }
 0x2f7   :  { %v805_v23 = vrot.slane %v804_v61, 1 }
 0x2f9   :  { %v806_v26 = vmax.f32 %v804_v61, %v805_v23 }
 0x2fb   :  { %v807_v58 = vsub.f32 %v793_v10, %v806_v26  ;;  %v817_v2 = vsub.f32 %v798_v17, %v806_v26  ;;  %v845_v10 = vpop.permute.xlu1 %844 }
 0x2fc   :  { %v847_v17 = vmul.f32 %v845_v10, %v842_v14 }
 0x2fd   :  { %v808_v40 = vmul.f32 1.442695, %v807_v58  ;;  %v818_v27 = vmul.f32 1.442695, %v817_v2 }
 0x2ff   :  { %2652 = vpow2.f32 %v808_v40 }
 0x300   :  { %2654 = vpow2.f32 %v818_v27 }
 0x309   :  { %v2653_v28 = vpop.eup %2652 }
 0x30a   :  { %v2655_v3 = vpop.eup %2654  ;;  %v810_v31 = vsel %vm310_vm7, %v2653_v28, 0.0 }
 0x30b   :  { %v811_v32 = vrot.slane %v810_v31, 4  ;;  %v820_v7 = vsel %vm310_vm7, %v2655_v3, 0.0 }
 0x30c   :  { %v821_v11 = vrot.slane %v820_v7, 4 }
 0x30d   :  { %v812_v34 = vadd.f32 %v811_v32, %v810_v31 }
 0x30e   :  { %v822_v35 = vadd.f32 %v821_v11, %v820_v7 }
 0x30f   :  { %v813_v21 = vrot.slane %v812_v34, 2 }
 0x310   :  { %v823_v37 = vrot.slane %v822_v35, 2 }
 0x311   :  { %v814_v38 = vadd.f32 %v813_v21, %v812_v34 }
 0x312   :  { %v824_v44 = vadd.f32 %v823_v37, %v822_v35 }
 0x313   :  { %v815_v24 = vrot.slane %v814_v38, 1 }
 0x314   :  { %v825_v46 = vrot.slane %v824_v44, 1 }
 0x315   :  { %v816_v49 = vadd.f32 %v815_v24, %v814_v38 }
 0x316   :  { %v826_v48 = vadd.f32 %v825_v46, %v824_v44 }
 0x318   :  { %v827_v47 = vadd.f32 %v826_v48, %v816_v49 }
 0x31a   :  { %v828_v50 = vmul.f32 %v827_v47, %v3200_v52 }
 0x31c   :  { %vm829_vm13 = vcmp.lt.f32.partialorder %v828_v50, %v816_v49 }
 0x31d   :  { %v830_v29 = vsel %vm829_vm13, 1.0, %v2815_v13 }
 0x31e   :  { %v831_v5 = vsub.f32 %v830_v29, %v2943_v15  ;;  %838 = vst.msk [vmem:[#allocation2 + $0x8] sm:$0x1] %vm349_vm8, %v830_v29 }
 0x320   :  { %v835_v8 = vrot.slane %v831_v5, %v3037_v51 }
 0x322   :  { %v836_v18 = vmul.f32 %v835_v8, %v785_v60 }
 0x324   :  { %v837_v53 = vadd.f32 %v836_v18, %v775_v30 }
 0x326   :  { %v848_v36 = vadd.f32 %v847_v17, %v837_v53 }
 0x328   :  { %v853_v61 = vsub.f32 %v848_v36, %v851_v22  ;;  %v858_v23 = vsub.f32 %v848_v36, %v857_v33  ;;  %v902_v33 = vrot.slane %v3174_v39, %v3085_v57 }
 0x32a   :  { %v859_v26 = vmax.f32 %v858_v23, %v853_v61 }
 0x32c   :  { %v860_v58 = vsel %vm310_vm7, %v859_v26, -inf }
 0x32d   :  { %v861_v2 = vrot.slane %v860_v58, 4 }
 0x32f   :  { %v862_v40 = vmax.f32 %v860_v58, %v861_v2  ;;  %v917_v2 = vrot.slane %v3190_v0, %v3085_v57 }
 0x331   :  { %v863_v27 = vrot.slane %v862_v40, 2 }
 0x333   :  { %v864_v28 = vmax.f32 %v862_v40, %v863_v27 }
 0x335   :  { %v865_v3 = vrot.slane %v864_v28, 1 }
 0x337   :  { %v866_v31 = vmax.f32 %v864_v28, %v865_v3 }
 0x339   :  { %v867_v32 = vsub.f32 %v853_v61, %v866_v31  ;;  %v877_v7 = vsub.f32 %v858_v23, %v866_v31  ;;  %v905_v61 = vpop.permute.xlu1 %904 }
 0x33a   :  { %v907_v23 = vmul.f32 %v905_v61, %v902_v33 }
 0x33b   :  { %v868_v60 = vmul.f32 1.442695, %v867_v32  ;;  %v878_v30 = vmul.f32 1.442695, %v877_v7 }
 0x33d   :  { %2656 = vpow2.f32 %v868_v60  ;;  %v911_v27 = vpop.permute.xlu1 %910 }
 0x33e   :  { %2658 = vpow2.f32 %v878_v30 }
 0x347   :  { %v2657_v11 = vpop.eup %2656 }
 0x348   :  { %v2659_v34 = vpop.eup %2658  ;;  %v870_v35 = vsel %vm310_vm7, %v2657_v11, 0.0 }
 0x349   :  { %v871_v21 = vrot.slane %v870_v35, 4  ;;  %v880_v37 = vsel %vm310_vm7, %v2659_v34, 0.0 }
 0x34a   :  { %v881_v38 = vrot.slane %v880_v37, 4 }
 0x34b   :  { %v872_v44 = vadd.f32 %v871_v21, %v870_v35 }
 0x34c   :  { %v882_v24 = vadd.f32 %v881_v38, %v880_v37 }
 0x34d   :  { %v873_v46 = vrot.slane %v872_v44, 2 }
 0x34e   :  { %v883_v49 = vrot.slane %v882_v24, 2 }
 0x34f   :  { %v874_v48 = vadd.f32 %v873_v46, %v872_v44 }
 0x350   :  { %v884_v47 = vadd.f32 %v883_v49, %v882_v24 }
 0x351   :  { %v875_v50 = vrot.slane %v874_v48, 1 }
 0x352   :  { %v885_v29 = vrot.slane %v884_v47, 1 }
 0x353   :  { %v876_v14 = vadd.f32 %v875_v50, %v874_v48 }
 0x354   :  { %v886_v5 = vadd.f32 %v885_v29, %v884_v47 }
 0x356   :  { %v887_v8 = vadd.f32 %v886_v5, %v876_v14 }
 0x358   :  { %v888_v17 = vmul.f32 %v887_v8, %v3200_v52 }
 0x35a   :  { %vm889_vm15 = vcmp.lt.f32.partialorder %v888_v17, %v876_v14 }
 0x35b   :  { %v890_v18 = vsel %vm889_vm15, 1.0, %v2815_v13 }
 0x35c   :  { %v891_v36 = vsub.f32 %v890_v18, %v2943_v15  ;;  %898 = vst.msk [vmem:[#allocation2 + $0x8] sm:$0x2] %vm410_vm10, %v890_v18 }
 0x35e   :  { %v895_v22 = vrot.slane %v891_v36, %v3070_v54 }
 0x360   :  { %v896_v26 = vmul.f32 %v895_v22, %v845_v10 }
 0x362   :  { %v897_v58 = vadd.f32 %v896_v26, %v837_v53 }
 0x364   :  { %v908_v40 = vadd.f32 %v907_v23, %v897_v58 }
 0x366   :  { %v913_v28 = vsub.f32 %v908_v40, %v911_v27  ;;  %v918_v3 = vsub.f32 %v908_v40, %v917_v2  ;;  %v962_v2 = vrot.slane %v3174_v39, %v3100_v4 }
 0x368   :  { %v919_v31 = vmax.f32 %v918_v3, %v913_v28 }
 0x36a   :  { %v920_v32 = vsel %vm310_vm7, %v919_v31, -inf }
 0x36b   :  { %v921_v7 = vrot.slane %v920_v32, 4 }
 0x36d   :  { %v922_v60 = vmax.f32 %v920_v32, %v921_v7  ;;  %v977_v7 = vrot.slane %v3190_v0, %v3100_v4 }
 0x36f   :  { %v923_v30 = vrot.slane %v922_v60, 2 }
 0x371   :  { %v924_v11 = vmax.f32 %v922_v60, %v923_v30  ;;  %v971_v30 = vpop.permute.xlu1 %970 }
 0x373   :  { %v925_v34 = vrot.slane %v924_v11, 1 }
 0x375   :  { %v926_v35 = vmax.f32 %v924_v11, %v925_v34 }
 0x377   :  { %v927_v21 = vsub.f32 %v913_v28, %v926_v35  ;;  %v937_v37 = vsub.f32 %v918_v3, %v926_v35  ;;  %v965_v28 = vpop.permute.xlu0 %964 }
 0x378   :  { %v967_v3 = vmul.f32 %v965_v28, %v962_v2 }
 0x379   :  { %v928_v10 = vmul.f32 1.442695, %v927_v21  ;;  %v938_v53 = vmul.f32 1.442695, %v937_v37 }
 0x37b   :  { %2660 = vpow2.f32 %v928_v10 }
 0x37c   :  { %2662 = vpow2.f32 %v938_v53 }
 0x385   :  { %v2661_v38 = vpop.eup %2660 }
 0x386   :  { %v2663_v44 = vpop.eup %2662  ;;  %v930_v24 = vsel %vm310_vm7, %v2661_v38, 0.0 }
 0x387   :  { %v931_v46 = vrot.slane %v930_v24, 4  ;;  %v940_v49 = vsel %vm310_vm7, %v2663_v44, 0.0 }
 0x388   :  { %v941_v48 = vrot.slane %v940_v49, 4 }
 0x389   :  { %v932_v47 = vadd.f32 %v931_v46, %v930_v24 }
 0x38a   :  { %v942_v50 = vadd.f32 %v941_v48, %v940_v49 }
 0x38b   :  { %v933_v29 = vrot.slane %v932_v47, 2 }
 0x38c   :  { %v943_v14 = vrot.slane %v942_v50, 2 }
 0x38d   :  { %v934_v5 = vadd.f32 %v933_v29, %v932_v47 }
 0x38e   :  { %v944_v8 = vadd.f32 %v943_v14, %v942_v50 }
 0x38f   :  { %v935_v17 = vrot.slane %v934_v5, 1 }
 0x390   :  { %v945_v18 = vrot.slane %v944_v8, 1 }
 0x391   :  { %v936_v33 = vadd.f32 %v935_v17, %v934_v5 }
 0x392   :  { %v946_v36 = vadd.f32 %v945_v18, %v944_v8 }
 0x394   :  { %v947_v22 = vadd.f32 %v946_v36, %v936_v33 }
 0x396   :  { %v948_v23 = vmul.f32 %v947_v22, %v3200_v52 }
 0x398   :  { %vm949_vm1 = vcmp.lt.f32.partialorder %v948_v23, %v936_v33 }
 0x399   :  { %v950_v26 = vsel %vm949_vm1, 1.0, %v2815_v13 }
 0x39a   :  { %v951_v40 = vsub.f32 %v950_v26, %v2943_v15  ;;  %958 = vst.msk [vmem:[#allocation2 + $0x8] sm:$0x4] %vm471_vm12, %v950_v26 }
 0x39c   :  { %v955_v27 = vrot.slane %v951_v40, %v3085_v57 }
 0x39e   :  { %v956_v31 = vmul.f32 %v955_v27, %v905_v61 }
 0x3a0   :  { %v957_v32 = vadd.f32 %v956_v31, %v897_v58 }
 0x3a2   :  { %v968_v60 = vadd.f32 %v967_v3, %v957_v32 }
 0x3a4   :  { %v973_v11 = vsub.f32 %v968_v60, %v971_v30  ;;  %v978_v34 = vsub.f32 %v968_v60, %v977_v7  ;;  %v1022_v7 = vrot.slane %v3174_v39, %v3115_v12 }
 0x3a6   :  { %v979_v35 = vmax.f32 %v978_v34, %v973_v11 }
 0x3a8   :  { %v980_v21 = vsel %vm310_vm7, %v979_v35, -inf }
 0x3a9   :  { %v981_v37 = vrot.slane %v980_v21, 4 }
 0x3ab   :  { %v982_v10 = vmax.f32 %v980_v21, %v981_v37  ;;  %v1037_v37 = vrot.slane %v3190_v0, %v3115_v12 }
 0x3ad   :  { %v983_v53 = vrot.slane %v982_v10, 2 }
 0x3af   :  { %v984_v38 = vmax.f32 %v982_v10, %v983_v53  ;;  %v1031_v53 = vpop.permute.xlu0 %1030 }
 0x3b1   :  { %v985_v44 = vrot.slane %v984_v38, 1 }
 0x3b3   :  { %v986_v24 = vmax.f32 %v984_v38, %v985_v44 }
 0x3b5   :  { %v987_v46 = vsub.f32 %v973_v11, %v986_v24  ;;  %v997_v49 = vsub.f32 %v978_v34, %v986_v24  ;;  %v1025_v11 = vpop.permute.xlu1 %1024 }
 0x3b6   :  { %v1027_v34 = vmul.f32 %v1025_v11, %v1022_v7 }
 0x3b7   :  { %v988_v61 = vmul.f32 1.442695, %v987_v46  ;;  %v998_v58 = vmul.f32 1.442695, %v997_v49 }
 0x3b9   :  { %2664 = vpow2.f32 %v988_v61 }
 0x3ba   :  { %2666 = vpow2.f32 %v998_v58 }
 0x3c3   :  { %v2665_v48 = vpop.eup %2664 }
 0x3c4   :  { %v2667_v47 = vpop.eup %2666  ;;  %v990_v50 = vsel %vm310_vm7, %v2665_v48, 0.0 }
 0x3c5   :  { %v991_v29 = vrot.slane %v990_v50, 4  ;;  %v1000_v14 = vsel %vm310_vm7, %v2667_v47, 0.0 }
 0x3c6   :  { %v1001_v5 = vrot.slane %v1000_v14, 4 }
 0x3c7   :  { %v992_v8 = vadd.f32 %v991_v29, %v990_v50 }
 0x3c8   :  { %v1002_v17 = vadd.f32 %v1001_v5, %v1000_v14 }
 0x3c9   :  { %v993_v18 = vrot.slane %v992_v8, 2 }
 0x3ca   :  { %v1003_v33 = vrot.slane %v1002_v17, 2 }
 0x3cb   :  { %v994_v36 = vadd.f32 %v993_v18, %v992_v8 }
 0x3cc   :  { %v1004_v22 = vadd.f32 %v1003_v33, %v1002_v17 }
 0x3cd   :  { %v995_v23 = vrot.slane %v994_v36, 1 }
 0x3ce   :  { %v1005_v26 = vrot.slane %v1004_v22, 1 }
 0x3cf   :  { %v996_v2 = vadd.f32 %v995_v23, %v994_v36 }
 0x3d0   :  { %v1006_v40 = vadd.f32 %v1005_v26, %v1004_v22 }
 0x3d2   :  { %v1007_v27 = vadd.f32 %v1006_v40, %v996_v2 }
 0x3d4   :  { %v1008_v3 = vmul.f32 %v1007_v27, %v3200_v52 }
 0x3d6   :  { %vm1009_vm3 = vcmp.lt.f32.partialorder %v1008_v3, %v996_v2 }
 0x3d7   :  { %v1010_v31 = vsel %vm1009_vm3, 1.0, %v2815_v13 }
 0x3d8   :  { %v1011_v60 = vsub.f32 %v1010_v31, %v2943_v15  ;;  %1018 = vst.msk [vmem:[#allocation2 + $0x8] sm:$0x8] %vm532_vm14, %v1010_v31 }
 0x3da   :  { %v1015_v30 = vrot.slane %v1011_v60, %v3100_v4 }
 0x3dc   :  { %v1016_v35 = vmul.f32 %v1015_v30, %v965_v28  ;;  %v2836_v30 = vmov 17  }
 0x3dd   :  { %2595 = vset.pattern.permute.xlu1 %v2836_v30 }
 0x3de   :  { %v1017_v21 = vadd.f32 %v1016_v35, %v957_v32 }
 0x3e0   :  { %v1028_v10 = vadd.f32 %v1027_v34, %v1017_v21  ;;  %v3253_v34 = vld [vmem:[%s3617_s4] sm:$0xf] }
 0x3e1   :  { %1325 = vperm.xlu1 %2595, %v3253_v34  }
 0x3e2   :  { %v1033_v38 = vsub.f32 %v1028_v10, %v1031_v53  ;;  %v1038_v44 = vsub.f32 %v1028_v10, %v1037_v37  ;;  %v1082_v53 = vrot.slane %v3174_v39, %v3130_v25 }
 0x3e4   :  { %v1039_v24 = vmax.f32 %v1038_v44, %v1033_v38 }
 0x3e5   :  { %1331 = vperm.xlu1 %2595, %v2927_v9  }
 0x3e6   :  { %v1040_v46 = vsel %vm310_vm7, %v1039_v24, -inf  ;;  %v1085_v24 = vpop.permute.xlu1 %1084 }
 0x3e7   :  { %v1041_v49 = vrot.slane %v1040_v46, 4 }
 0x3e9   :  { %v1042_v61 = vmax.f32 %v1040_v46, %v1041_v49  ;;  %2597 = vset.pattern.permute.xlu1 %v2831_v41  ;;  %v1087_v46 = vmul.f32 %v1085_v24, %v1082_v53 }
 0x3ea   :  { %1391 = vperm.xlu1 %2597, %v2927_v9  }
 0x3eb   :  { %v1043_v58 = vrot.slane %v1042_v61, 2 }
 0x3ed   :  { %v1044_v48 = vmax.f32 %v1042_v61, %v1043_v58  ;;  %v1097_v58 = vrot.slane %v3190_v0, %v3130_v25 }
 0x3ee   :  { %2598 = vset.pattern.permute.xlu1 %v2832_v42 }
 0x3ef   :  { %v1045_v47 = vrot.slane %v1044_v48, 1  ;;  %1445 = vperm.xlu1 %2598, %v3253_v34  }
 0x3f1   :  { %v1046_v50 = vmax.f32 %v1044_v48, %v1045_v47  ;;  %v1091_v47 = vpop.permute.xlu1 %1090 }
 0x3f3   :  { %v1047_v29 = vsub.f32 %v1033_v38, %v1046_v50  ;;  %v1057_v14 = vsub.f32 %v1038_v44, %v1046_v50 }
 0x3f5   :  { %v1048_v28 = vmul.f32 1.442695, %v1047_v29  ;;  %v1058_v32 = vmul.f32 1.442695, %v1057_v14 }
 0x3f7   :  { %2668 = vpow2.f32 %v1048_v28 }
 0x3f8   :  { %2670 = vpow2.f32 %v1058_v32 }
 0x401   :  { %v2669_v5 = vpop.eup %2668 }
 0x402   :  { %v2671_v8 = vpop.eup %2670  ;;  %v1050_v17 = vsel %vm310_vm7, %v2669_v5, 0.0 }
 0x403   :  { %v1051_v18 = vrot.slane %v1050_v17, 4  ;;  %v1060_v33 = vsel %vm310_vm7, %v2671_v8, 0.0 }
 0x404   :  { %v1061_v36 = vrot.slane %v1060_v33, 4 }
 0x405   :  { %v1052_v22 = vadd.f32 %v1051_v18, %v1050_v17 }
 0x406   :  { %v1062_v23 = vadd.f32 %v1061_v36, %v1060_v33 }
 0x407   :  { %v1053_v26 = vrot.slane %v1052_v22, 2 }
 0x408   :  { %v1063_v2 = vrot.slane %v1062_v23, 2 }
 0x409   :  { %v1054_v40 = vadd.f32 %v1053_v26, %v1052_v22 }
 0x40a   :  { %v1064_v27 = vadd.f32 %v1063_v2, %v1062_v23 }
 0x40b   :  { %v1055_v3 = vrot.slane %v1054_v40, 1 }
 0x40c   :  { %v1065_v31 = vrot.slane %v1064_v27, 1 }
 0x40d   :  { %v1056_v7 = vadd.f32 %v1055_v3, %v1054_v40 }
 0x40e   :  { %v1066_v60 = vadd.f32 %v1065_v31, %v1064_v27 }
 0x410   :  { %v1067_v35 = vadd.f32 %v1066_v60, %v1056_v7 }
 0x412   :  { %v1068_v37 = vmul.f32 %v1067_v35, %v3200_v52 }
 0x414   :  { %vm1069_vm5 = vcmp.lt.f32.partialorder %v1068_v37, %v1056_v7 }
 0x415   :  { %v1070_v10 = vsel %vm1069_vm5, 1.0, %v2815_v13 }
 0x416   :  { %v1071_v38 = vsub.f32 %v1070_v10, %v2943_v15  ;;  %1078 = vst.msk [vmem:[#allocation2 + $0x8] sm:$0x10] %vm593_vm0, %v1070_v10 }
 0x418   :  { %v1075_v44 = vrot.slane %v1071_v38, %v3115_v12 }
 0x41a   :  { %v1076_v49 = vmul.f32 %v1075_v44, %v1025_v11 }
 0x41c   :  { %v1077_v61 = vadd.f32 %v1076_v49, %v1017_v21  ;;  %v1142_v49 = vrot.slane %v3174_v39, %v3145_v6 }
 0x41e   :  { %v1088_v48 = vadd.f32 %v1087_v46, %v1077_v61 }
 0x420   :  { %v1093_v50 = vsub.f32 %v1088_v48, %v1091_v47  ;;  %v1098_v29 = vsub.f32 %v1088_v48, %v1097_v58  ;;  %v1145_v47 = vpop.permute.xlu0 %1144 }
 0x422   :  { %v1099_v41 = vmax.f32 %v1098_v29, %v1093_v50 }
 0x424   :  { %v1100_v14 = vsel %vm310_vm7, %v1099_v41, -inf }
 0x425   :  { %v1101_v28 = vrot.slane %v1100_v14, 4 }
 0x427   :  { %v1102_v32 = vmax.f32 %v1100_v14, %v1101_v28  ;;  %v1157_v14 = vrot.slane %v3190_v0, %v3145_v6 }
 0x429   :  { %v1103_v5 = vrot.slane %v1102_v32, 2 }
 0x42b   :  { %v1104_v8 = vmax.f32 %v1102_v32, %v1103_v5  ;;  %v1151_v32 = vpop.permute.xlu1 %1150 }
 0x42d   :  { %v1105_v11 = vrot.slane %v1104_v8, 1 }
 0x42f   :  { %v1106_v21 = vmax.f32 %v1104_v8, %v1105_v11 }
 0x431   :  { %v1107_v17 = vsub.f32 %v1093_v50, %v1106_v21  ;;  %v1117_v42 = vsub.f32 %v1098_v29, %v1106_v21  ;;  %v1147_v50 = vmul.f32 %v1145_v47, %v1142_v49 }
 0x433   :  { %v1108_v18 = vmul.f32 1.442695, %v1107_v17  ;;  %v1118_v33 = vmul.f32 1.442695, %v1117_v42 }
 0x435   :  { %2672 = vpow2.f32 %v1108_v18 }
 0x436   :  { %2674 = vpow2.f32 %v1118_v33 }
 0x43f   :  { %v2673_v36 = vpop.eup %2672 }
 0x440   :  { %v2675_v22 = vpop.eup %2674  ;;  %v1110_v23 = vsel %vm310_vm7, %v2673_v36, 0.0 }
 0x441   :  { %v1111_v26 = vrot.slane %v1110_v23, 4  ;;  %v1120_v2 = vsel %vm310_vm7, %v2675_v22, 0.0 }
 0x442   :  { %v1121_v40 = vrot.slane %v1120_v2, 4 }
 0x443   :  { %v1112_v27 = vadd.f32 %v1111_v26, %v1110_v23 }
 0x444   :  { %v1122_v3 = vadd.f32 %v1121_v40, %v1120_v2 }
 0x445   :  { %v1113_v31 = vrot.slane %v1112_v27, 2 }
 0x446   :  { %v1123_v7 = vrot.slane %v1122_v3, 2 }
 0x447   :  { %v1114_v60 = vadd.f32 %v1113_v31, %v1112_v27 }
 0x448   :  { %v1124_v30 = vadd.f32 %v1123_v7, %v1122_v3 }
 0x449   :  { %v1115_v35 = vrot.slane %v1114_v60, 1 }
 0x44a   :  { %v1125_v37 = vrot.slane %v1124_v30, 1 }
 0x44b   :  { %v1116_v10 = vadd.f32 %v1115_v35, %v1114_v60 }
 0x44c   :  { %v1126_v53 = vadd.f32 %v1125_v37, %v1124_v30 }
 0x44e   :  { %v1127_v38 = vadd.f32 %v1126_v53, %v1116_v10 }
 0x450   :  { %v1128_v44 = vmul.f32 %v1127_v38, %v3200_v52 }
 0x452   :  { %vm1129_vm11 = vcmp.lt.f32.partialorder %v1128_v44, %v1116_v10 }
 0x453   :  { %v1130_v46 = vsel %vm1129_vm11, 1.0, %v2815_v13 }
 0x454   :  { %v1131_v58 = vsub.f32 %v1130_v46, %v2943_v15  ;;  %1138 = vst.msk [vmem:[#allocation2 + $0x8] sm:$0x20] %vm654_vm2, %v1130_v46 }
 0x456   :  { %v1135_v48 = vrot.slane %v1131_v58, %v3130_v25 }
 0x458   :  { %v1136_v29 = vmul.f32 %v1135_v48, %v1085_v24 }
 0x45a   :  { %v1137_v41 = vadd.f32 %v1136_v29, %v1077_v61  ;;  %v1202_v29 = vrot.slane %v3174_v39, %v3160_v16 }
 0x45c   :  { %v1148_v28 = vadd.f32 %v1147_v50, %v1137_v41 }
 0x45e   :  { %v1153_v5 = vsub.f32 %v1148_v28, %v1151_v32  ;;  %v1158_v8 = vsub.f32 %v1148_v28, %v1157_v14  ;;  %v1205_v32 = vpop.permute.xlu1 %1204 }
 0x460   :  { %v1159_v11 = vmax.f32 %v1158_v8, %v1153_v5 }
 0x462   :  { %v1160_v21 = vsel %vm310_vm7, %v1159_v11, -inf }
 0x463   :  { %v1161_v17 = vrot.slane %v1160_v21, 4 }
 0x465   :  { %v1162_v42 = vmax.f32 %v1160_v21, %v1161_v17  ;;  %v1217_v21 = vrot.slane %v3190_v0, %v3160_v16 }
 0x467   :  { %v1163_v18 = vrot.slane %v1162_v42, 2 }
 0x469   :  { %v1164_v33 = vmax.f32 %v1162_v42, %v1163_v18  ;;  %v1211_v42 = vpop.permute.xlu0 %1210 }
 0x46b   :  { %v1165_v36 = vrot.slane %v1164_v33, 1 }
 0x46d   :  { %v1166_v22 = vmax.f32 %v1164_v33, %v1165_v36 }
 0x46f   :  { %v1167_v23 = vsub.f32 %v1153_v5, %v1166_v22  ;;  %v1177_v26 = vsub.f32 %v1158_v8, %v1166_v22  ;;  %v1207_v8 = vmul.f32 %v1205_v32, %v1202_v29 }
 0x471   :  { %v1168_v24 = vmul.f32 1.442695, %v1167_v23  ;;  %v1178_v61 = vmul.f32 1.442695, %v1177_v26 }
 0x473   :  { %2676 = vpow2.f32 %v1168_v24 }
 0x474   :  { %2678 = vpow2.f32 %v1178_v61 }
 0x47d   :  { %v2677_v2 = vpop.eup %2676 }
 0x47e   :  { %v2679_v40 = vpop.eup %2678  ;;  %v1170_v27 = vsel %vm310_vm7, %v2677_v2, 0.0 }
 0x47f   :  { %v1171_v3 = vrot.slane %v1170_v27, 4  ;;  %v1180_v31 = vsel %vm310_vm7, %v2679_v40, 0.0 }
 0x480   :  { %v1181_v7 = vrot.slane %v1180_v31, 4 }
 0x481   :  { %v1172_v60 = vadd.f32 %v1171_v3, %v1170_v27 }
 0x482   :  { %v1182_v30 = vadd.f32 %v1181_v7, %v1180_v31 }
 0x483   :  { %v1173_v35 = vrot.slane %v1172_v60, 2 }
 0x484   :  { %v1183_v37 = vrot.slane %v1182_v30, 2 }
 0x485   :  { %v1174_v10 = vadd.f32 %v1173_v35, %v1172_v60 }
 0x486   :  { %v1184_v53 = vadd.f32 %v1183_v37, %v1182_v30  ;;  %v2837_v37 = vmov 20  }
 0x487   :  { %v1175_v38 = vrot.slane %v1174_v10, 1  ;;  %2600 = vset.pattern.permute.xlu1 %v2837_v37 }
 0x488   :  { %v1185_v44 = vrot.slane %v1184_v53, 1  ;;  %1505 = vperm.xlu1 %2600, %v3253_v34  }
 0x489   :  { %v1176_v46 = vadd.f32 %v1175_v38, %v1174_v10 }
 0x48a   :  { %v1186_v49 = vadd.f32 %v1185_v44, %v1184_v53 }
 0x48c   :  { %v1187_v58 = vadd.f32 %v1186_v49, %v1176_v46  ;;  %1511 = vperm.xlu1 %2600, %v2927_v9  }
 0x48e   :  { %v1188_v48 = vmul.f32 %v1187_v58, %v3200_v52 }
 0x490   :  { %vm1189_vm13 = vcmp.lt.f32.partialorder %v1188_v48, %v1176_v46  ;;  %2602 = vset.pattern.permute.xlu1 %v2833_v43 }
 0x491   :  { %v1190_v50 = vsel %vm1189_vm13, 1.0, %v2815_v13  ;;  %1571 = vperm.xlu1 %2602, %v2927_v9  }
 0x492   :  { %v1191_v14 = vsub.f32 %v1190_v50, %v2943_v15  ;;  %1198 = vst.msk [vmem:[#allocation2 + $0x8] sm:$0x40] %vm715_vm4, %v1190_v50 }
 0x494   :  { %v1195_v28 = vrot.slane %v1191_v14, %v3145_v6  ;;  %v3302_v14 = vsub.f32 1.0, %v2954_v19 }
 0x495   :  { %2603 = vset.pattern.permute.xlu1 %v2835_v45 }
 0x496   :  { %v1196_v5 = vmul.f32 %v1195_v28, %v1145_v47  ;;  %1625 = vperm.xlu1 %2603, %v3253_v34   ;;  %v1263_v43 = vrot.slane %v3302_v14, %v3037_v51 }
 0x498   :  { %v1197_v11 = vadd.f32 %v1196_v5, %v1137_v41  ;;  %v169_v5 = vpop.permute.xlu1 %168 }
 0x499   :  { %v3317_v45 = vadd.f32 %v169_v5, %v3053_v62 }
 0x49a   :  { %v1208_v17 = vadd.f32 %v1207_v8, %v1197_v11 }
 0x49c   :  { %v1213_v18 = vsub.f32 %v1208_v17, %v1211_v42  ;;  %v1218_v33 = vsub.f32 %v1208_v17, %v1217_v21  ;;  %v182_v17 = vld [vmem:[%s3616_s3 + $0x10] sm:$0xff] }
 0x49e   :  { %v1219_v36 = vmax.f32 %v1218_v33, %v1213_v18 }
 0x4a0   :  { %v1220_v39 = vsel %vm310_vm7, %v1219_v36, -inf }
 0x4a1   :  { %v1221_v22 = vrot.slane %v1220_v39, 4 }
 0x4a3   :  { %v1222_v23 = vmax.f32 %v1220_v39, %v1221_v22  ;;  %v2214_v39 = vld [vmem:[#allocation2] sm:$0xff] }
 0x4a5   :  { %v1223_v26 = vrot.slane %v1222_v23, 2 }
 0x4a7   :  { %v1224_v24 = vmax.f32 %v1222_v23, %v1223_v26 }
 0x4a9   :  { %v1225_v61 = vrot.slane %v1224_v24, 1 }
 0x4ab   :  { %v1226_v2 = vmax.f32 %v1224_v24, %v1225_v61  ;;  %v1272_v61 = vpop.permute.xlu0 %1271 }
 0x4ad   :  { %v1227_v40 = vsub.f32 %v1213_v18, %v1226_v2  ;;  %v1237_v47 = vsub.f32 %v1218_v33, %v1226_v2  ;;  %v3320_v33 = vadd.f32 %v182_v17, %v3317_v45 }
 0x4af   :  { %v1228_v27 = vmul.f32 1.442695, %v1227_v40  ;;  %v1238_v41 = vmul.f32 1.442695, %v1237_v47  ;;  %v1278_v23 = vrot.slane %v3320_v33, %v3037_v51 }
 0x4b1   :  { %2680 = vpow2.f32 %v1228_v27 }
 0x4b2   :  { %2682 = vpow2.f32 %v1238_v41 }
 0x4bb   :  { %v2681_v0 = vpop.eup %2680 }
 0x4bc   :  { %v2683_v3 = vpop.eup %2682  ;;  %v1230_v31 = vsel %vm310_vm7, %v2681_v0, 0.0 }
 0x4bd   :  { %v1231_v7 = vrot.slane %v1230_v31, 4  ;;  %v1240_v60 = vsel %vm310_vm7, %v2683_v3, 0.0 }
 0x4be   :  { %v1241_v30 = vrot.slane %v1240_v60, 4 }
 0x4bf   :  { %v1232_v35 = vadd.f32 %v1231_v7, %v1230_v31 }
 0x4c0   :  { %v1242_v10 = vadd.f32 %v1241_v30, %v1240_v60 }
 0x4c1   :  { %v1233_v53 = vrot.slane %v1232_v35, 2 }
 0x4c2   :  { %v1243_v38 = vrot.slane %v1242_v10, 2 }
 0x4c3   :  { %v1234_v44 = vadd.f32 %v1233_v53, %v1232_v35 }
 0x4c4   :  { %v1244_v46 = vadd.f32 %v1243_v38, %v1242_v10 }
 0x4c5   :  { %v1235_v49 = vrot.slane %v1234_v44, 1 }
 0x4c6   :  { %v1245_v58 = vrot.slane %v1244_v46, 1 }
 0x4c7   :  { %v1236_v48 = vadd.f32 %v1235_v49, %v1234_v44 }
 0x4c8   :  { %v1246_v50 = vadd.f32 %v1245_v58, %v1244_v46 }
 0x4ca   :  { %v1247_v29 = vadd.f32 %v1246_v50, %v1236_v48 }
 0x4cc   :  { %v1248_v28 = vmul.f32 %v1247_v29, %v3200_v52  ;;  %v1266_v52 = vpop.permute.xlu1 %1265 }
 0x4ce   :  { %vm1249_vm15 = vcmp.lt.f32.partialorder %v1248_v28, %v1236_v48 }
 0x4cf   :  { %v1250_v8 = vsel %vm1249_vm15, 1.0, %v2815_v13 }
 0x4d0   :  { %v1251_v21 = vsub.f32 %v1250_v8, %v2943_v15  ;;  %1258 = vst.msk [vmem:[#allocation2 + $0x8] sm:$0x80] %vm776_vm9, %v1250_v8  ;;  %v1268_v15 = vmul.f32 %v1266_v52, %v1263_v43 }
 0x4d2   :  { %v1255_v42 = vrot.slane %v1251_v21, %v3160_v16  ;;  %v3331_v21 = vld [vmem:[%s3620_s7 + $0x10] sm:$0xff] }
 0x4d4   :  { %v1256_v18 = vmul.f32 %v1255_v42, %v1205_v32 }
 0x4d6   :  { %v1257_v36 = vadd.f32 %v1256_v18, %v1197_v11 }
 0x4d7   :  { %v2215_v22 = vld [vmem:[#allocation2 + $0x8] sm:$0xff] }
 0x4d8   :  { %v1269_v26 = vadd.f32 %v1268_v15, %v1257_v36  ;;  %v2510_v24 = vpack.c.bf16 %v2215_v22, %v2214_v39  ;;  %v1323_v15 = vrot.slane %v3302_v14, %v3070_v54  ;;  %v1326_v22 = vpop.permute.xlu1 %1325 }
 0x4da   :  { %v1274_v2 = vsub.f32 %v1269_v26, %v1272_v61  ;;  %v1279_v40 = vsub.f32 %v1269_v26, %v1278_v23  ;;  %2511 = vmatpush3.bf16.msra.mxu0 %v2510_v24  ;;  %v1328_v26 = vmul.f32 %v1326_v22, %v1323_v15  ;;  %v1338_v61 = vrot.slane %v3320_v33, %v3070_v54 }
 0x4db   :  { %2512 = vmatprep.subr.bf16.mxu0 %v2812_v1 }
 0x4dc   :  { %v1280_v62 = vmax.f32 %v1279_v40, %v1274_v2 }
 0x4de   :  { %v1281_v32 = vsel %vm310_vm7, %v1280_v62, -inf }
 0x4df   :  { %v1282_v47 = vrot.slane %v1281_v32, 4 }
 0x4e1   :  { %v1283_v27 = vmax.f32 %v1281_v32, %v1282_v47 }
 0x4e3   :  { %v1284_v41 = vrot.slane %v1283_v27, 2 }
 0x4e5   :  { %v1285_v11 = vmax.f32 %v1283_v27, %v1284_v41 }
 0x4e7   :  { %v1286_v0 = vrot.slane %v1285_v11, 1 }
 0x4e9   :  { %v1287_v3 = vmax.f32 %v1285_v11, %v1286_v0 }
 0x4eb   :  { %v1288_v31 = vsub.f32 %v1274_v2, %v1287_v3  ;;  %v1298_v7 = vsub.f32 %v1279_v40, %v1287_v3  ;;  %v1332_v40 = vpop.permute.xlu1 %1331 }
 0x4ed   :  { %v1289_v60 = vmul.f32 1.442695, %v1288_v31  ;;  %v1299_v30 = vmul.f32 1.442695, %v1298_v7 }
 0x4ef   :  { %2684 = vpow2.f32 %v1289_v60 }
 0x4f0   :  { %2686 = vpow2.f32 %v1299_v30 }
 0x4f9   :  { %v2685_v35 = vpop.eup %2684 }
 0x4fa   :  { %v2687_v37 = vpop.eup %2686  ;;  %v1291_v10 = vsel %vm310_vm7, %v2685_v35, 0.0 }
 0x4fb   :  { %v1292_v1 = vrot.slane %v1291_v10, 4  ;;  %v1301_v53 = vsel %vm310_vm7, %v2687_v37, 0.0 }
 0x4fc   :  { %v1302_v38 = vrot.slane %v1301_v53, 4 }
 0x4fd   :  { %v1293_v44 = vadd.f32 %v1292_v1, %v1291_v10 }
 0x4fe   :  { %v1303_v46 = vadd.f32 %v1302_v38, %v1301_v53 }
 0x4ff   :  { %v1294_v49 = vrot.slane %v1293_v44, 2 }
 0x500   :  { %v1304_v58 = vrot.slane %v1303_v46, 2 }
 0x501   :  { %v1295_v48 = vadd.f32 %v1294_v49, %v1293_v44 }
 0x502   :  { %v1305_v50 = vadd.f32 %v1304_v58, %v1303_v46 }
 0x503   :  { %v1296_v29 = vrot.slane %v1295_v48, 1 }
 0x504   :  { %v1306_v28 = vrot.slane %v1305_v50, 1 }
 0x505   :  { %v1297_v5 = vadd.f32 %v1296_v29, %v1295_v48 }
 0x506   :  { %v1307_v8 = vadd.f32 %v1306_v28, %v1305_v50 }
 0x508   :  { %v1308_v43 = vadd.f32 %v1307_v8, %v1297_v5 }
 0x50a   :  { %v1309_v17 = vmul.f32 %v1308_v43, %v3331_v21 }
 0x50c   :  { %vm1310_vm1 = vcmp.lt.f32.partialorder %v1309_v17, %v1297_v5 }
 0x50d   :  { %v1311_v42 = vsel %vm1310_vm1, 1.0, %v2815_v13 }
 0x50e   :  { %v1312_v18 = vsub.f32 %v1311_v42, %v2954_v19  ;;  %1319 = vst.msk [vmem:[#allocation2 + $0x10] sm:$0x1] %vm349_vm8, %v1311_v42 }
 0x510   :  { %v1316_v39 = vrot.slane %v1312_v18, %v3037_v51  ;;  %v1383_v18 = vrot.slane %v3302_v14, %v3085_v57 }
 0x512   :  { %v1317_v23 = vmul.f32 %v1316_v39, %v1266_v52 }
 0x514   :  { %v1318_v24 = vadd.f32 %v1317_v23, %v1257_v36  ;;  %v1386_v23 = vpop.permute.xlu0 %1385 }
 0x516   :  { %v1329_v2 = vadd.f32 %v1328_v26, %v1318_v24  ;;  %v1388_v26 = vmul.f32 %v1386_v23, %v1383_v18 }
 0x518   :  { %v1334_v62 = vsub.f32 %v1329_v2, %v1332_v40  ;;  %v1339_v32 = vsub.f32 %v1329_v2, %v1338_v61  ;;  %v1392_v40 = vpop.permute.xlu1 %1391 }
 0x51a   :  { %v1340_v47 = vmax.f32 %v1339_v32, %v1334_v62 }
 0x51c   :  { %v1341_v27 = vsel %vm310_vm7, %v1340_v47, -inf }
 0x51d   :  { %v1342_v41 = vrot.slane %v1341_v27, 4 }
 0x51f   :  { %v1343_v11 = vmax.f32 %v1341_v27, %v1342_v41 }
 0x521   :  { %v1344_v0 = vrot.slane %v1343_v11, 2 }
 0x523   :  { %v1345_v3 = vmax.f32 %v1343_v11, %v1344_v0 }
 0x525   :  { %v1346_v31 = vrot.slane %v1345_v3, 1 }
 0x527   :  { %v1347_v7 = vmax.f32 %v1345_v3, %v1346_v31 }
 0x529   :  { %v1348_v60 = vsub.f32 %v1334_v62, %v1347_v7  ;;  %v1358_v52 = vsub.f32 %v1339_v32, %v1347_v7  ;;  %v1398_v62 = vrot.slane %v3320_v33, %v3085_v57 }
 0x52b   :  { %v1349_v30 = vmul.f32 1.442695, %v1348_v60  ;;  %v1359_v36 = vmul.f32 1.442695, %v1358_v52 }
 0x52d   :  { %2688 = vpow2.f32 %v1349_v30 }
 0x52e   :  { %2690 = vpow2.f32 %v1359_v36 }
 0x537   :  { %v2689_v35 = vpop.eup %2688 }
 0x538   :  { %v2691_v37 = vpop.eup %2690  ;;  %v1351_v10 = vsel %vm310_vm7, %v2689_v35, 0.0 }
 0x539   :  { %v1352_v1 = vrot.slane %v1351_v10, 4  ;;  %v1361_v53 = vsel %vm310_vm7, %v2691_v37, 0.0 }
 0x53a   :  { %v1362_v38 = vrot.slane %v1361_v53, 4 }
 0x53b   :  { %v1353_v44 = vadd.f32 %v1352_v1, %v1351_v10 }
 0x53c   :  { %v1363_v46 = vadd.f32 %v1362_v38, %v1361_v53 }
 0x53d   :  { %v1354_v49 = vrot.slane %v1353_v44, 2 }
 0x53e   :  { %v1364_v58 = vrot.slane %v1363_v46, 2 }
 0x53f   :  { %v1355_v48 = vadd.f32 %v1354_v49, %v1353_v44 }
 0x540   :  { %v1365_v50 = vadd.f32 %v1364_v58, %v1363_v46  ;;  %v2838_v46 = vmov 23  }
 0x541   :  { %v1356_v29 = vrot.slane %v1355_v48, 1  ;;  %2605 = vset.pattern.permute.xlu1 %v2838_v46 }
 0x542   :  { %v1366_v28 = vrot.slane %v1365_v50, 1  ;;  %1685 = vperm.xlu1 %2605, %v3253_v34  }
 0x543   :  { %v1357_v5 = vadd.f32 %v1356_v29, %v1355_v48 }
 0x544   :  { %v1367_v8 = vadd.f32 %v1366_v28, %v1365_v50 }
 0x546   :  { %v1368_v43 = vadd.f32 %v1367_v8, %v1357_v5  ;;  %1691 = vperm.xlu1 %2605, %v2927_v9  }
 0x548   :  { %v1369_v17 = vmul.f32 %v1368_v43, %v3331_v21 }
 0x54a   :  { %vm1370_vm3 = vcmp.lt.f32.partialorder %v1369_v17, %v1357_v5 }
 0x54b   :  { %v1371_v42 = vsel %vm1370_vm3, 1.0, %v2815_v13 }
 0x54c   :  { %v1372_v15 = vsub.f32 %v1371_v42, %v2954_v19  ;;  %1379 = vst.msk [vmem:[#allocation2 + $0x10] sm:$0x2] %vm410_vm10, %v1371_v42 }
 0x54e   :  { %v1376_v39 = vrot.slane %v1372_v15, %v3070_v54  ;;  %v1443_v15 = vrot.slane %v3302_v14, %v3100_v4 }
 0x550   :  { %v1377_v61 = vmul.f32 %v1376_v39, %v1326_v22 }
 0x552   :  { %v1378_v2 = vadd.f32 %v1377_v61, %v1318_v24 }
 0x554   :  { %v1389_v32 = vadd.f32 %v1388_v26, %v1378_v2  ;;  %v1446_v26 = vpop.permute.xlu1 %1445 }
 0x556   :  { %v1394_v47 = vsub.f32 %v1389_v32, %v1392_v40  ;;  %v1399_v27 = vsub.f32 %v1389_v32, %v1398_v62  ;;  %v1448_v62 = vmul.f32 %v1446_v26, %v1443_v15 }
 0x558   :  { %v1400_v41 = vmax.f32 %v1399_v27, %v1394_v47 }
 0x55a   :  { %v1401_v11 = vsel %vm310_vm7, %v1400_v41, -inf  ;;  %v1452_v41 = vpop.permute.xlu0 %1451 }
 0x55b   :  { %v1402_v0 = vrot.slane %v1401_v11, 4 }
 0x55d   :  { %v1403_v3 = vmax.f32 %v1401_v11, %v1402_v0 }
 0x55f   :  { %v1404_v31 = vrot.slane %v1403_v3, 2 }
 0x561   :  { %v1405_v7 = vmax.f32 %v1403_v3, %v1404_v31 }
 0x563   :  { %v1406_v60 = vrot.slane %v1405_v7, 1 }
 0x565   :  { %v1407_v52 = vmax.f32 %v1405_v7, %v1406_v60 }
 0x567   :  { %v1408_v30 = vsub.f32 %v1394_v47, %v1407_v52  ;;  %v1418_v36 = vsub.f32 %v1399_v27, %v1407_v52  ;;  %v1458_v47 = vrot.slane %v3320_v33, %v3100_v4 }
 0x569   :  { %v1409_v22 = vmul.f32 1.442695, %v1408_v30  ;;  %v1419_v24 = vmul.f32 1.442695, %v1418_v36 }
 0x56b   :  { %2692 = vpow2.f32 %v1409_v22 }
 0x56c   :  { %2694 = vpow2.f32 %v1419_v24 }
 0x575   :  { %v2693_v35 = vpop.eup %2692 }
 0x576   :  { %v2695_v37 = vpop.eup %2694  ;;  %v1411_v10 = vsel %vm310_vm7, %v2693_v35, 0.0 }
 0x577   :  { %v1412_v1 = vrot.slane %v1411_v10, 4  ;;  %v1421_v53 = vsel %vm310_vm7, %v2695_v37, 0.0 }
 0x578   :  { %v1422_v38 = vrot.slane %v1421_v53, 4 }
 0x579   :  { %v1413_v44 = vadd.f32 %v1412_v1, %v1411_v10 }
 0x57a   :  { %v1423_v49 = vadd.f32 %v1422_v38, %v1421_v53 }
 0x57b   :  { %v1414_v58 = vrot.slane %v1413_v44, 2 }
 0x57c   :  { %v1424_v48 = vrot.slane %v1423_v49, 2 }
 0x57d   :  { %v1415_v50 = vadd.f32 %v1414_v58, %v1413_v44 }
 0x57e   :  { %v1425_v29 = vadd.f32 %v1424_v48, %v1423_v49  ;;  %v2839_v48 = vmov 24  }
 0x57f   :  { %v1416_v28 = vrot.slane %v1415_v50, 1  ;;  %2607 = vset.pattern.permute.xlu1 %v2839_v48 }
 0x580   :  { %v1426_v5 = vrot.slane %v1425_v29, 1  ;;  %1746 = vperm.xlu1 %2607, %v3253_v34  }
 0x581   :  { %v1417_v8 = vadd.f32 %v1416_v28, %v1415_v50 }
 0x582   :  { %v1427_v43 = vadd.f32 %v1426_v5, %v1425_v29 }
 0x584   :  { %v1428_v17 = vadd.f32 %v1427_v43, %v1417_v8  ;;  %1752 = vperm.xlu1 %2607, %v2927_v9  }
 0x586   :  { %v1429_v42 = vmul.f32 %v1428_v17, %v3331_v21 }
 0x588   :  { %vm1430_vm5 = vcmp.lt.f32.partialorder %v1429_v42, %v1417_v8 }
 0x589   :  { %v1431_v18 = vsel %vm1430_vm5, 1.0, %v2815_v13 }
 0x58a   :  { %v1432_v39 = vsub.f32 %v1431_v18, %v2954_v19  ;;  %1439 = vst.msk [vmem:[#allocation2 + $0x10] sm:$0x4] %vm471_vm12, %v1431_v18 }
 0x58c   :  { %v1436_v61 = vrot.slane %v1432_v39, %v3085_v57 }
 0x58e   :  { %v1437_v40 = vmul.f32 %v1436_v61, %v1386_v23  ;;  %v1503_v61 = vrot.slane %v3302_v14, %v3115_v12 }
 0x590   :  { %v1438_v32 = vadd.f32 %v1437_v40, %v1378_v2 }
 0x592   :  { %v1449_v27 = vadd.f32 %v1448_v62, %v1438_v32  ;;  %v1506_v62 = vpop.permute.xlu1 %1505 }
 0x594   :  { %v1454_v11 = vsub.f32 %v1449_v27, %v1452_v41  ;;  %v1459_v0 = vsub.f32 %v1449_v27, %v1458_v47  ;;  %v1508_v27 = vmul.f32 %v1506_v62, %v1503_v61  ;;  %v1563_v61 = vrot.slane %v3302_v14, %v3130_v25 }
 0x596   :  { %v1460_v3 = vmax.f32 %v1459_v0, %v1454_v11 }
 0x598   :  { %v1461_v31 = vsel %vm310_vm7, %v1460_v3, -inf  ;;  %v1512_v3 = vpop.permute.xlu1 %1511 }
 0x599   :  { %v1462_v7 = vrot.slane %v1461_v31, 4 }
 0x59b   :  { %v1463_v60 = vmax.f32 %v1461_v31, %v1462_v7 }
 0x59d   :  { %v1464_v52 = vrot.slane %v1463_v60, 2 }
 0x59f   :  { %v1465_v30 = vmax.f32 %v1463_v60, %v1464_v52 }
 0x5a1   :  { %v1466_v36 = vrot.slane %v1465_v30, 1 }
 0x5a3   :  { %v1467_v22 = vmax.f32 %v1465_v30, %v1466_v36 }
 0x5a5   :  { %v1468_v24 = vsub.f32 %v1454_v11, %v1467_v22  ;;  %v1478_v23 = vsub.f32 %v1459_v0, %v1467_v22  ;;  %v1518_v11 = vrot.slane %v3320_v33, %v3115_v12 }
 0x5a7   :  { %v1469_v35 = vmul.f32 1.442695, %v1468_v24  ;;  %v1479_v2 = vmul.f32 1.442695, %v1478_v23 }
 0x5a9   :  { %2696 = vpow2.f32 %v1469_v35 }
 0x5aa   :  { %2698 = vpow2.f32 %v1479_v2 }
 0x5b3   :  { %v2697_v37 = vpop.eup %2696 }
 0x5b4   :  { %v2699_v10 = vpop.eup %2698  ;;  %v1471_v1 = vsel %vm310_vm7, %v2697_v37, 0.0 }
 0x5b5   :  { %v1472_v53 = vrot.slane %v1471_v1, 4  ;;  %v1481_v38 = vsel %vm310_vm7, %v2699_v10, 0.0 }
 0x5b6   :  { %v1482_v44 = vrot.slane %v1481_v38, 4 }
 0x5b7   :  { %v1473_v46 = vadd.f32 %v1472_v53, %v1471_v1 }
 0x5b8   :  { %v1483_v49 = vadd.f32 %v1482_v44, %v1481_v38 }
 0x5b9   :  { %v1474_v58 = vrot.slane %v1473_v46, 2 }
 0x5ba   :  { %v1484_v50 = vrot.slane %v1483_v49, 2 }
 0x5bb   :  { %v1475_v29 = vadd.f32 %v1474_v58, %v1473_v46 }
 0x5bc   :  { %v1485_v28 = vadd.f32 %v1484_v50, %v1483_v49 }
 0x5bd   :  { %v1476_v5 = vrot.slane %v1475_v29, 1 }
 0x5be   :  { %v1486_v8 = vrot.slane %v1485_v28, 1 }
 0x5bf   :  { %v1477_v43 = vadd.f32 %v1476_v5, %v1475_v29 }
 0x5c0   :  { %v1487_v17 = vadd.f32 %v1486_v8, %v1485_v28 }
 0x5c2   :  { %v1488_v42 = vadd.f32 %v1487_v17, %v1477_v43 }
 0x5c4   :  { %v1489_v18 = vmul.f32 %v1488_v42, %v3331_v21 }
 0x5c6   :  { %vm1490_vm11 = vcmp.lt.f32.partialorder %v1489_v18, %v1477_v43  ;;  %v2840_v18 = vmov 25  }
 0x5c7   :  { %v1491_v15 = vsel %vm1490_vm11, 1.0, %v2815_v13  ;;  %2608 = vset.pattern.permute.xlu0 %v2840_v18  ;;  %2609 = vset.pattern.permute.xlu1 %v2840_v18 }
 0x5c8   :  { %v1492_v39 = vsub.f32 %v1491_v15, %v2954_v19  ;;  %1499 = vst.msk [vmem:[#allocation2 + $0x10] sm:$0x8] %vm532_vm14, %v1491_v15  ;;  %1806 = vperm.xlu0 %2608, %v3253_v34   ;;  %1812 = vperm.xlu1 %2609, %v2927_v9  }
 0x5ca   :  { %v1496_v40 = vrot.slane %v1492_v39, %v3100_v4 }
 0x5cc   :  { %v1497_v47 = vmul.f32 %v1496_v40, %v1446_v26 }
 0x5ce   :  { %v1498_v41 = vadd.f32 %v1497_v47, %v1438_v32 }
 0x5d0   :  { %v1509_v0 = vadd.f32 %v1508_v27, %v1498_v41  ;;  %v1566_v27 = vpop.permute.xlu0 %1565 }
 0x5d2   :  { %v1514_v31 = vsub.f32 %v1509_v0, %v1512_v3  ;;  %v1519_v7 = vsub.f32 %v1509_v0, %v1518_v11  ;;  %v1568_v11 = vmul.f32 %v1566_v27, %v1563_v61 }
 0x5d4   :  { %v1520_v60 = vmax.f32 %v1519_v7, %v1514_v31 }
 0x5d6   :  { %v1521_v52 = vsel %vm310_vm7, %v1520_v60, -inf }
 0x5d7   :  { %v1522_v30 = vrot.slane %v1521_v52, 4 }
 0x5d9   :  { %v1523_v36 = vmax.f32 %v1521_v52, %v1522_v30 }
 0x5db   :  { %v1524_v22 = vrot.slane %v1523_v36, 2 }
 0x5dd   :  { %v1525_v24 = vmax.f32 %v1523_v36, %v1524_v22 }
 0x5df   :  { %v1526_v23 = vrot.slane %v1525_v24, 1 }
 0x5e1   :  { %v1527_v35 = vmax.f32 %v1525_v24, %v1526_v23 }
 0x5e3   :  { %v1528_v2 = vsub.f32 %v1514_v31, %v1527_v35  ;;  %v1538_v26 = vsub.f32 %v1519_v7, %v1527_v35  ;;  %v1572_v31 = vpop.permute.xlu1 %1571  ;;  %v1578_v7 = vrot.slane %v3320_v33, %v3130_v25 }
 0x5e5   :  { %v1529_v37 = vmul.f32 1.442695, %v1528_v2  ;;  %v1539_v32 = vmul.f32 1.442695, %v1538_v26 }
 0x5e7   :  { %2700 = vpow2.f32 %v1529_v37 }
 0x5e8   :  { %2702 = vpow2.f32 %v1539_v32 }
 0x5f1   :  { %v2701_v10 = vpop.eup %2700 }
 0x5f2   :  { %v2703_v1 = vpop.eup %2702  ;;  %v1531_v53 = vsel %vm310_vm7, %v2701_v10, 0.0 }
 0x5f3   :  { %v1532_v38 = vrot.slane %v1531_v53, 4  ;;  %v1541_v44 = vsel %vm310_vm7, %v2703_v1, 0.0 }
 0x5f4   :  { %v1542_v46 = vrot.slane %v1541_v44, 4 }
 0x5f5   :  { %v1533_v49 = vadd.f32 %v1532_v38, %v1531_v53 }
 0x5f6   :  { %v1543_v58 = vadd.f32 %v1542_v46, %v1541_v44 }
 0x5f7   :  { %v1534_v48 = vrot.slane %v1533_v49, 2 }
 0x5f8   :  { %v1544_v50 = vrot.slane %v1543_v58, 2 }
 0x5f9   :  { %v1535_v29 = vadd.f32 %v1534_v48, %v1533_v49  ;;  %v2841_v48 = vmov 26  }
 0x5fa   :  { %v1545_v28 = vadd.f32 %v1544_v50, %v1543_v58  ;;  %2610 = vset.pattern.permute.xlu1 %v2841_v48  ;;  %2611 = vset.pattern.permute.xlu0 %v2841_v48 }
 0x5fb   :  { %v1536_v5 = vrot.slane %v1535_v29, 1  ;;  %1866 = vperm.xlu1 %2610, %v3253_v34   ;;  %1872 = vperm.xlu0 %2611, %v2927_v9  }
 0x5fc   :  { %v1546_v8 = vrot.slane %v1545_v28, 1 }
 0x5fd   :  { %v1537_v43 = vadd.f32 %v1536_v5, %v1535_v29 }
 0x5fe   :  { %v1547_v17 = vadd.f32 %v1546_v8, %v1545_v28 }
 0x600   :  { %v1548_v42 = vadd.f32 %v1547_v17, %v1537_v43 }
 0x602   :  { %v1549_v15 = vmul.f32 %v1548_v42, %v3331_v21 }
 0x604   :  { %vm1550_vm13 = vcmp.lt.f32.partialorder %v1549_v15, %v1537_v43 }
 0x605   :  { %v1551_v39 = vsel %vm1550_vm13, 1.0, %v2815_v13  ;;  %vm2329_vm13 = vcmask 523264  }
 0x606   :  { %v1552_v40 = vsub.f32 %v1551_v39, %v2954_v19  ;;  %1559 = vst.msk [vmem:[#allocation2 + $0x10] sm:$0x10] %vm593_vm0, %v1551_v39 }
 0x608   :  { %v1556_v47 = vrot.slane %v1552_v40, %v3115_v12  ;;  %v1623_v40 = vrot.slane %v3302_v14, %v3145_v6 }
 0x60a   :  { %v1557_v0 = vmul.f32 %v1556_v47, %v1506_v62 }
 0x60c   :  { %v1558_v3 = vadd.f32 %v1557_v0, %v1498_v41 }
 0x60e   :  { %v1569_v60 = vadd.f32 %v1568_v11, %v1558_v3  ;;  %v1626_v11 = vpop.permute.xlu1 %1625 }
 0x610   :  { %v1574_v52 = vsub.f32 %v1569_v60, %v1572_v31  ;;  %v1579_v30 = vsub.f32 %v1569_v60, %v1578_v7  ;;  %v1628_v7 = vmul.f32 %v1626_v11, %v1623_v40 }
 0x612   :  { %v1580_v36 = vmax.f32 %v1579_v30, %v1574_v52 }
 0x614   :  { %v1581_v22 = vsel %vm310_vm7, %v1580_v36, -inf  ;;  %v1632_v36 = vpop.permute.xlu0 %1631 }
 0x615   :  { %v1582_v24 = vrot.slane %v1581_v22, 4 }
 0x617   :  { %v1583_v23 = vmax.f32 %v1581_v22, %v1582_v24 }
 0x619   :  { %v1584_v35 = vrot.slane %v1583_v23, 2 }
 0x61b   :  { %v1585_v2 = vmax.f32 %v1583_v23, %v1584_v35 }
 0x61d   :  { %v1586_v26 = vrot.slane %v1585_v2, 1 }
 0x61f   :  { %v1587_v37 = vmax.f32 %v1585_v2, %v1586_v26 }
 0x621   :  { %v1588_v32 = vsub.f32 %v1574_v52, %v1587_v37  ;;  %v1598_v10 = vsub.f32 %v1579_v30, %v1587_v37  ;;  %v1638_v52 = vrot.slane %v3320_v33, %v3145_v6 }
 0x623   :  { %v1589_v62 = vmul.f32 1.442695, %v1588_v32  ;;  %v1599_v41 = vmul.f32 1.442695, %v1598_v10 }
 0x625   :  { %2704 = vpow2.f32 %v1589_v62 }
 0x626   :  { %2706 = vpow2.f32 %v1599_v41 }
 0x62f   :  { %v2705_v1 = vpop.eup %2704 }
 0x630   :  { %v2707_v53 = vpop.eup %2706  ;;  %v1591_v38 = vsel %vm310_vm7, %v2705_v1, 0.0 }
 0x631   :  { %v1592_v44 = vrot.slane %v1591_v38, 4  ;;  %v1601_v46 = vsel %vm310_vm7, %v2707_v53, 0.0 }
 0x632   :  { %v1602_v49 = vrot.slane %v1601_v46, 4 }
 0x633   :  { %v1593_v58 = vadd.f32 %v1592_v44, %v1591_v38 }
 0x634   :  { %v1603_v50 = vadd.f32 %v1602_v49, %v1601_v46 }
 0x635   :  { %v1594_v29 = vrot.slane %v1593_v58, 2 }
 0x636   :  { %v1604_v28 = vrot.slane %v1603_v50, 2 }
 0x637   :  { %v1595_v5 = vadd.f32 %v1594_v29, %v1593_v58 }
 0x638   :  { %v1605_v8 = vadd.f32 %v1604_v28, %v1603_v50  ;;  %v2842_v50 = vmov 27  }
 0x639   :  { %v1596_v43 = vrot.slane %v1595_v5, 1  ;;  %2612 = vset.pattern.permute.xlu1 %v2842_v50  ;;  %v3430_v50 = vld [vmem:[%s3617_s4] sm:$0xf] }
 0x63a   :  { %v1606_v17 = vrot.slane %v1605_v8, 1  ;;  %1926 = vperm.xlu1 %2612, %v3253_v34   ;;  %v1683_v34 = vrot.slane %v3302_v14, %v3160_v16 }
 0x63b   :  { %v1597_v42 = vadd.f32 %v1596_v43, %v1595_v5 }
 0x63c   :  { %v1607_v18 = vadd.f32 %v1606_v17, %v1605_v8 }
 0x63e   :  { %v1608_v15 = vadd.f32 %v1607_v18, %v1597_v42  ;;  %1932 = vperm.xlu1 %2612, %v2927_v9  }
 0x640   :  { %v1609_v39 = vmul.f32 %v1608_v15, %v3331_v21 }
 0x642   :  { %vm1610_vm15 = vcmp.lt.f32.partialorder %v1609_v39, %v1597_v42 }
 0x643   :  { %v1611_v61 = vsel %vm1610_vm15, 1.0, %v2815_v13 }
 0x644   :  { %v1612_v47 = vsub.f32 %v1611_v61, %v2954_v19  ;;  %1619 = vst.msk [vmem:[#allocation2 + $0x10] sm:$0x20] %vm654_vm2, %v1611_v61 }
 0x646   :  { %v1616_v0 = vrot.slane %v1612_v47, %v3130_v25 }
 0x648   :  { %v1617_v31 = vmul.f32 %v1616_v0, %v1566_v27 }
 0x64a   :  { %v1618_v60 = vadd.f32 %v1617_v31, %v1558_v3  ;;  %v1686_v31 = vpop.permute.xlu1 %1685 }
 0x64c   :  { %v1629_v30 = vadd.f32 %v1628_v7, %v1618_v60 }
 0x64e   :  { %v1634_v22 = vsub.f32 %v1629_v30, %v1632_v36  ;;  %v1639_v24 = vsub.f32 %v1629_v30, %v1638_v52  ;;  %v1688_v52 = vmul.f32 %v1686_v31, %v1683_v34  ;;  %v1698_v36 = vrot.slane %v3320_v33, %v3160_v16 }
 0x650   :  { %v1640_v23 = vmax.f32 %v1639_v24, %v1634_v22 }
 0x652   :  { %v1641_v35 = vsel %vm310_vm7, %v1640_v23, -inf }
 0x653   :  { %v1642_v2 = vrot.slane %v1641_v35, 4 }
 0x655   :  { %v1643_v26 = vmax.f32 %v1641_v35, %v1642_v2 }
 0x657   :  { %v1644_v37 = vrot.slane %v1643_v26, 2 }
 0x659   :  { %v1645_v32 = vmax.f32 %v1643_v26, %v1644_v37 }
 0x65b   :  { %v1646_v10 = vrot.slane %v1645_v32, 1 }
 0x65d   :  { %v1647_v62 = vmax.f32 %v1645_v32, %v1646_v10 }
 0x65f   :  { %v1648_v41 = vsub.f32 %v1634_v22, %v1647_v62  ;;  %v1658_v27 = vsub.f32 %v1639_v24, %v1647_v62  ;;  %v1692_v24 = vpop.permute.xlu1 %1691 }
 0x661   :  { %v1649_v1 = vmul.f32 1.442695, %v1648_v41  ;;  %v1659_v3 = vmul.f32 1.442695, %v1658_v27 }
 0x663   :  { %2708 = vpow2.f32 %v1649_v1 }
 0x664   :  { %2710 = vpow2.f32 %v1659_v3 }
 0x66d   :  { %v2709_v53 = vpop.eup %2708 }
 0x66e   :  { %v2711_v38 = vpop.eup %2710  ;;  %v1651_v44 = vsel %vm310_vm7, %v2709_v53, 0.0 }
 0x66f   :  { %v1652_v46 = vrot.slane %v1651_v44, 4  ;;  %v1661_v49 = vsel %vm310_vm7, %v2711_v38, 0.0 }
 0x670   :  { %v1662_v58 = vrot.slane %v1661_v49, 4 }
 0x671   :  { %v1653_v48 = vadd.f32 %v1652_v46, %v1651_v44 }
 0x672   :  { %v1663_v29 = vadd.f32 %v1662_v58, %v1661_v49  ;;  %v2843_v58 = vmov 28  }
 0x673   :  { %v1654_v28 = vrot.slane %v1653_v48, 2  ;;  %2613 = vset.pattern.permute.xlu0 %v2843_v58  ;;  %2614 = vset.pattern.permute.xlu1 %v2843_v58 }
 0x674   :  { %v1664_v5 = vrot.slane %v1663_v29, 2  ;;  %1986 = vperm.xlu0 %2613, %v3430_v50   ;;  %1992 = vperm.xlu1 %2614, %v2927_v9  }
 0x675   :  { %v1655_v8 = vadd.f32 %v1654_v28, %v1653_v48 }
 0x676   :  { %v1665_v43 = vadd.f32 %v1664_v5, %v1663_v29 }
 0x677   :  { %v1656_v17 = vrot.slane %v1655_v8, 1 }
 0x678   :  { %v1666_v42 = vrot.slane %v1665_v43, 1 }
 0x679   :  { %v1657_v18 = vadd.f32 %v1656_v17, %v1655_v8 }
 0x67a   :  { %v1667_v15 = vadd.f32 %v1666_v42, %v1665_v43 }
 0x67c   :  { %v1668_v39 = vadd.f32 %v1667_v15, %v1657_v18 }
 0x67e   :  { %v1669_v61 = vmul.f32 %v1668_v39, %v3331_v21  ;;  %v3435_v39 = vsub.f32 1.0, %v2957_v20 }
 0x680   :  { %vm1670_vm1 = vcmp.lt.f32.partialorder %v1669_v61, %v1657_v18  ;;  %v1744_v34 = vrot.slane %v3435_v39, %v3037_v51 }
 0x681   :  { %v1671_v40 = vsel %vm1670_vm1, 1.0, %v2815_v13 }
 0x682   :  { %v1672_v47 = vsub.f32 %v1671_v40, %v2954_v19  ;;  %1679 = vst.msk [vmem:[#allocation2 + $0x10] sm:$0x40] %vm715_vm4, %v1671_v40  ;;  %v174_v40 = vpop.permute.xlu0 %173 }
 0x684   :  { %v1676_v0 = vrot.slane %v1672_v47, %v3145_v6 }
 0x686   :  { %v1677_v7 = vmul.f32 %v1676_v0, %v1626_v11 }
 0x688   :  { %v1678_v30 = vadd.f32 %v1677_v7, %v1618_v60  ;;  %v183_v7 = vld [vmem:[%s3616_s3 + $0x18] sm:$0xff] }
 0x68a   :  { %v1689_v22 = vadd.f32 %v1688_v52, %v1678_v30  ;;  %v3447_v52 = vadd.f32 %v3048_v59, %v174_v40 }
 0x68c   :  { %v1694_v23 = vsub.f32 %v1689_v22, %v1692_v24  ;;  %v1699_v35 = vsub.f32 %v1689_v22, %v1698_v36  ;;  %v1747_v36 = vpop.permute.xlu1 %1746  ;;  %v3451_v22 = vadd.f32 %v183_v7, %v3447_v52 }
 0x68d   :  { %v1749_v24 = vmul.f32 %v1747_v36, %v1744_v34 }
 0x68e   :  { %v1700_v2 = vmax.f32 %v1699_v35, %v1694_v23 }
 0x690   :  { %v1701_v26 = vsel %vm310_vm7, %v1700_v2, -inf }
 0x691   :  { %v1702_v37 = vrot.slane %v1701_v26, 4 }
 0x693   :  { %v1703_v32 = vmax.f32 %v1701_v26, %v1702_v37  ;;  %v1753_v26 = vpop.permute.xlu1 %1752 }
 0x695   :  { %v1704_v10 = vrot.slane %v1703_v32, 2 }
 0x697   :  { %v1705_v14 = vmax.f32 %v1703_v32, %v1704_v10 }
 0x699   :  { %v1706_v62 = vrot.slane %v1705_v14, 1 }
 0x69b   :  { %v1707_v41 = vmax.f32 %v1705_v14, %v1706_v62 }
 0x69d   :  { %v1708_v27 = vsub.f32 %v1694_v23, %v1707_v41  ;;  %v1718_v11 = vsub.f32 %v1699_v35, %v1707_v41 }
 0x69f   :  { %v1709_v1 = vmul.f32 1.442695, %v1708_v27  ;;  %v1719_v60 = vmul.f32 1.442695, %v1718_v11 }
 0x6a1   :  { %2712 = vpow2.f32 %v1709_v1 }
 0x6a2   :  { %2714 = vpow2.f32 %v1719_v60 }
 0x6ab   :  { %v2713_v33 = vpop.eup %2712 }
 0x6ac   :  { %v2715_v3 = vpop.eup %2714  ;;  %v1711_v53 = vsel %vm310_vm7, %v2713_v33, 0.0 }
 0x6ad   :  { %v1712_v38 = vrot.slane %v1711_v53, 4  ;;  %v1721_v44 = vsel %vm310_vm7, %v2715_v3, 0.0 }
 0x6ae   :  { %v1722_v46 = vrot.slane %v1721_v44, 4 }
 0x6af   :  { %v1713_v49 = vadd.f32 %v1712_v38, %v1711_v53 }
 0x6b0   :  { %v1723_v48 = vadd.f32 %v1722_v46, %v1721_v44 }
 0x6b1   :  { %v1714_v29 = vrot.slane %v1713_v49, 2 }
 0x6b2   :  { %v1724_v28 = vrot.slane %v1723_v48, 2 }
 0x6b3   :  { %v1715_v5 = vadd.f32 %v1714_v29, %v1713_v49 }
 0x6b4   :  { %v1725_v8 = vadd.f32 %v1724_v28, %v1723_v48  ;;  %v2844_v48 = vmov 29  }
 0x6b5   :  { %v1716_v43 = vrot.slane %v1715_v5, 1  ;;  %2615 = vset.pattern.permute.xlu1 %v2844_v48  ;;  %2616 = vset.pattern.permute.xlu0 %v2844_v48 }
 0x6b6   :  { %v1726_v17 = vrot.slane %v1725_v8, 1  ;;  %2046 = vperm.xlu1 %2615, %v3430_v50   ;;  %2052 = vperm.xlu0 %2616, %v2927_v9  }
 0x6b7   :  { %v1717_v42 = vadd.f32 %v1716_v43, %v1715_v5 }
 0x6b8   :  { %v1727_v18 = vadd.f32 %v1726_v17, %v1725_v8 }
 0x6ba   :  { %v1728_v15 = vadd.f32 %v1727_v18, %v1717_v42 }
 0x6bc   :  { %v1729_v61 = vmul.f32 %v1728_v15, %v3331_v21 }
 0x6be   :  { %vm1730_vm3 = vcmp.lt.f32.partialorder %v1729_v61, %v1717_v42  ;;  %v3463_v61 = vld [vmem:[%s3620_s7 + $0x18] sm:$0xff] }
 0x6bf   :  { %v1731_v47 = vsel %vm1730_vm3, 1.0, %v2815_v13 }
 0x6c0   :  { %v1732_v0 = vsub.f32 %v1731_v47, %v2954_v19  ;;  %1739 = vst.msk [vmem:[#allocation2 + $0x10] sm:$0x80] %vm776_vm9, %v1731_v47  ;;  %v1759_v19 = vrot.slane %v3451_v22, %v3037_v51 }
 0x6c2   :  { %v1736_v21 = vrot.slane %v1732_v0, %v3160_v16  ;;  %v1804_v0 = vrot.slane %v3435_v39, %v3070_v54 }
 0x6c4   :  { %v1737_v23 = vmul.f32 %v1736_v21, %v1686_v31  ;;  %v1807_v21 = vpop.permute.xlu0 %1806 }
 0x6c6   :  { %v1738_v35 = vadd.f32 %v1737_v23, %v1678_v30  ;;  %v1809_v23 = vmul.f32 %v1807_v21, %v1804_v0 }
 0x6c8   :  { %v1750_v2 = vadd.f32 %v1749_v24, %v1738_v35 }
 0x6ca   :  { %v1755_v37 = vsub.f32 %v1750_v2, %v1753_v26  ;;  %v1760_v32 = vsub.f32 %v1750_v2, %v1759_v19  ;;  %v1813_v26 = vpop.permute.xlu1 %1812 }
 0x6cc   :  { %v1761_v10 = vmax.f32 %v1760_v32, %v1755_v37 }
 0x6ce   :  { %v1762_v59 = vsel %vm310_vm7, %v1761_v10, -inf }
 0x6cf   :  { %v1763_v14 = vrot.slane %v1762_v59, 4 }
 0x6d1   :  { %v1764_v62 = vmax.f32 %v1762_v59, %v1763_v14 }
 0x6d3   :  { %v1765_v41 = vrot.slane %v1764_v62, 2 }
 0x6d5   :  { %v1766_v27 = vmax.f32 %v1764_v62, %v1765_v41 }
 0x6d7   :  { %v1767_v11 = vrot.slane %v1766_v27, 1 }
 0x6d9   :  { %v1768_v1 = vmax.f32 %v1766_v27, %v1767_v11 }
 0x6db   :  { %v1769_v60 = vsub.f32 %v1755_v37, %v1768_v1  ;;  %v1779_v33 = vsub.f32 %v1760_v32, %v1768_v1  ;;  %v1819_v32 = vrot.slane %v3451_v22, %v3070_v54 }
 0x6dd   :  { %v1770_v31 = vmul.f32 1.442695, %v1769_v60  ;;  %v1780_v30 = vmul.f32 1.442695, %v1779_v33 }
 0x6df   :  { %2716 = vpow2.f32 %v1770_v31 }
 0x6e0   :  { %2718 = vpow2.f32 %v1780_v30 }
 0x6e9   :  { %v2717_v3 = vpop.eup %2716 }
 0x6ea   :  { %v2719_v53 = vpop.eup %2718  ;;  %v1772_v38 = vsel %vm310_vm7, %v2717_v3, 0.0 }
 0x6eb   :  { %v1773_v44 = vrot.slane %v1772_v38, 4  ;;  %v1782_v46 = vsel %vm310_vm7, %v2719_v53, 0.0 }
 0x6ec   :  { %v1783_v49 = vrot.slane %v1782_v46, 4 }
 0x6ed   :  { %v1774_v58 = vadd.f32 %v1773_v44, %v1772_v38 }
 0x6ee   :  { %v1784_v29 = vadd.f32 %v1783_v49, %v1782_v46 }
 0x6ef   :  { %v1775_v28 = vrot.slane %v1774_v58, 2 }
 0x6f0   :  { %v1785_v5 = vrot.slane %v1784_v29, 2 }
 0x6f1   :  { %v1776_v8 = vadd.f32 %v1775_v28, %v1774_v58  ;;  %v2845_v58 = vmov 30  }
 0x6f2   :  { %v1786_v43 = vadd.f32 %v1785_v5, %v1784_v29  ;;  %2617 = vset.pattern.permute.xlu1 %v2845_v58 }
 0x6f3   :  { %v1777_v17 = vrot.slane %v1776_v8, 1  ;;  %2106 = vperm.xlu1 %2617, %v3430_v50  }
 0x6f4   :  { %v1787_v42 = vrot.slane %v1786_v43, 1 }
 0x6f5   :  { %v1778_v18 = vadd.f32 %v1777_v17, %v1776_v8 }
 0x6f6   :  { %v1788_v15 = vadd.f32 %v1787_v42, %v1786_v43 }
 0x6f7   :  { %2112 = vperm.xlu1 %2617, %v2927_v9  }
 0x6f8   :  { %v1789_v40 = vadd.f32 %v1788_v15, %v1778_v18 }
 0x6fa   :  { %v1790_v47 = vmul.f32 %v1789_v40, %v3463_v61 }
 0x6fc   :  { %vm1791_vm5 = vcmp.lt.f32.partialorder %v1790_v47, %v1778_v18 }
 0x6fd   :  { %v1792_v34 = vsel %vm1791_vm5, 1.0, %v2815_v13 }
 0x6fe   :  { %v1793_v7 = vsub.f32 %v1792_v34, %v2957_v20  ;;  %1800 = vst.msk [vmem:[#allocation2 + $0x18] sm:$0x1] %vm349_vm8, %v1792_v34  ;;  %v1864_v34 = vrot.slane %v3435_v39, %v3085_v57 }
 0x700   :  { %v1797_v24 = vrot.slane %v1793_v7, %v3037_v51  ;;  %v1867_v7 = vpop.permute.xlu1 %1866 }
 0x702   :  { %v1798_v2 = vmul.f32 %v1797_v24, %v1747_v36 }
 0x704   :  { %v1799_v19 = vadd.f32 %v1798_v2, %v1738_v35 }
 0x706   :  { %v1810_v37 = vadd.f32 %v1809_v23, %v1799_v19  ;;  %v1869_v23 = vmul.f32 %v1867_v7, %v1864_v34  ;;  %v1927_v34 = vpop.permute.xlu1 %1926 }
 0x708   :  { %v1815_v10 = vsub.f32 %v1810_v37, %v1813_v26  ;;  %v1820_v59 = vsub.f32 %v1810_v37, %v1819_v32  ;;  %v1873_v37 = vpop.permute.xlu0 %1872 }
 0x70a   :  { %v1821_v14 = vmax.f32 %v1820_v59, %v1815_v10 }
 0x70c   :  { %v1822_v62 = vsel %vm310_vm7, %v1821_v14, -inf }
 0x70d   :  { %v1823_v41 = vrot.slane %v1822_v62, 4 }
 0x70f   :  { %v1824_v27 = vmax.f32 %v1822_v62, %v1823_v41 }
 0x711   :  { %v1825_v11 = vrot.slane %v1824_v27, 2 }
 0x713   :  { %v1826_v1 = vmax.f32 %v1824_v27, %v1825_v11 }
 0x715   :  { %v1827_v60 = vrot.slane %v1826_v1, 1 }
 0x717   :  { %v1828_v33 = vmax.f32 %v1826_v1, %v1827_v60 }
 0x719   :  { %v1829_v51 = vsub.f32 %v1815_v10, %v1828_v33  ;;  %v1839_v31 = vsub.f32 %v1820_v59, %v1828_v33  ;;  %v1879_v10 = vrot.slane %v3451_v22, %v3085_v57 }
 0x71b   :  { %v1830_v36 = vmul.f32 1.442695, %v1829_v51  ;;  %v1840_v35 = vmul.f32 1.442695, %v1839_v31 }
 0x71d   :  { %2720 = vpow2.f32 %v1830_v36 }
 0x71e   :  { %2722 = vpow2.f32 %v1840_v35 }
 0x727   :  { %v2721_v30 = vpop.eup %2720 }
 0x728   :  { %v2723_v3 = vpop.eup %2722  ;;  %v1832_v53 = vsel %vm310_vm7, %v2721_v30, 0.0 }
 0x729   :  { %v1833_v38 = vrot.slane %v1832_v53, 4  ;;  %v1842_v44 = vsel %vm310_vm7, %v2723_v3, 0.0 }
 0x72a   :  { %v1843_v46 = vrot.slane %v1842_v44, 4 }
 0x72b   :  { %v1834_v49 = vadd.f32 %v1833_v38, %v1832_v53 }
 0x72c   :  { %v1844_v48 = vadd.f32 %v1843_v46, %v1842_v44  ;;  %v2846_v46 = vmov 31  }
 0x72d   :  { %v1835_v29 = vrot.slane %v1834_v49, 2  ;;  %2618 = vset.pattern.permute.xlu0 %v2846_v46  ;;  %2619 = vset.pattern.permute.xlu1 %v2846_v46 }
 0x72e   :  { %v1845_v28 = vrot.slane %v1844_v48, 2  ;;  %2166 = vperm.xlu0 %2618, %v3430_v50   ;;  %2172 = vperm.xlu1 %2619, %v2927_v9  }
 0x72f   :  { %v1836_v5 = vadd.f32 %v1835_v29, %v1834_v49 }
 0x730   :  { %v1846_v8 = vadd.f32 %v1845_v28, %v1844_v48 }
 0x731   :  { %v1837_v43 = vrot.slane %v1836_v5, 1 }
 0x732   :  { %v1847_v17 = vrot.slane %v1846_v8, 1 }
 0x733   :  { %v1838_v42 = vadd.f32 %v1837_v43, %v1836_v5 }
 0x734   :  { %v1848_v18 = vadd.f32 %v1847_v17, %v1846_v8 }
 0x736   :  { %v1849_v15 = vadd.f32 %v1848_v18, %v1838_v42 }
 0x738   :  { %v1850_v40 = vmul.f32 %v1849_v15, %v3463_v61 }
 0x73a   :  { %vm1851_vm11 = vcmp.lt.f32.partialorder %v1850_v40, %v1838_v42  ;;  %v1924_v40 = vrot.slane %v3435_v39, %v3100_v4 }
 0x73b   :  { %v1852_v47 = vsel %vm1851_vm11, 1.0, %v2815_v13 }
 0x73c   :  { %v1853_v0 = vsub.f32 %v1852_v47, %v2957_v20  ;;  %1860 = vst.msk [vmem:[#allocation2 + $0x18] sm:$0x2] %vm410_vm10, %v1852_v47 }
 0x73e   :  { %v1857_v24 = vrot.slane %v1853_v0, %v3070_v54  ;;  %v1929_v0 = vmul.f32 %v1927_v34, %v1924_v40 }
 0x740   :  { %v1858_v2 = vmul.f32 %v1857_v24, %v1807_v21 }
 0x742   :  { %v1859_v26 = vadd.f32 %v1858_v2, %v1799_v19 }
 0x744   :  { %v1870_v32 = vadd.f32 %v1869_v23, %v1859_v26 }
 0x746   :  { %v1880_v59 = vsub.f32 %v1870_v32, %v1879_v10  ;;  %v1875_v14 = vsub.f32 %v1870_v32, %v1873_v37  ;;  %v1939_v37 = vrot.slane %v3451_v22, %v3100_v4  ;;  %v1933_v32 = vpop.permute.xlu1 %1932 }
 0x748   :  { %v1881_v62 = vmax.f32 %v1880_v59, %v1875_v14 }
 0x74a   :  { %v1882_v41 = vsel %vm310_vm7, %v1881_v62, -inf }
 0x74b   :  { %v1883_v27 = vrot.slane %v1882_v41, 4 }
 0x74d   :  { %v1884_v11 = vmax.f32 %v1882_v41, %v1883_v27 }
 0x74f   :  { %v1885_v1 = vrot.slane %v1884_v11, 2 }
 0x751   :  { %v1886_v60 = vmax.f32 %v1884_v11, %v1885_v1 }
 0x753   :  { %v1887_v33 = vrot.slane %v1886_v60, 1 }
 0x755   :  { %v1888_v51 = vmax.f32 %v1886_v60, %v1887_v33 }
 0x757   :  { %v1889_v54 = vsub.f32 %v1875_v14, %v1888_v51  ;;  %v1899_v31 = vsub.f32 %v1880_v59, %v1888_v51 }
 0x759   :  { %v1890_v21 = vmul.f32 1.442695, %v1889_v54  ;;  %v1900_v19 = vmul.f32 1.442695, %v1899_v31 }
 0x75b   :  { %2724 = vpow2.f32 %v1890_v21 }
 0x75c   :  { %2726 = vpow2.f32 %v1900_v19 }
 0x765   :  { %v2725_v36 = vpop.eup %2724 }
 0x766   :  { %v2727_v35 = vpop.eup %2726  ;;  %v1892_v30 = vsel %vm310_vm7, %v2725_v36, 0.0 }
 0x767   :  { %v1893_v3 = vrot.slane %v1892_v30, 4  ;;  %v1902_v53 = vsel %vm310_vm7, %v2727_v35, 0.0 }
 0x768   :  { %v1903_v38 = vrot.slane %v1902_v53, 4 }
 0x769   :  { %v1894_v44 = vadd.f32 %v1893_v3, %v1892_v30 }
 0x76a   :  { %v1904_v49 = vadd.f32 %v1903_v38, %v1902_v53 }
 0x76b   :  { %v1895_v58 = vrot.slane %v1894_v44, 2 }
 0x76c   :  { %v1905_v48 = vrot.slane %v1904_v49, 2 }
 0x76d   :  { %v1896_v29 = vadd.f32 %v1895_v58, %v1894_v44 }
 0x76e   :  { %v1906_v28 = vadd.f32 %v1905_v48, %v1904_v49 }
 0x76f   :  { %v1897_v5 = vrot.slane %v1896_v29, 1 }
 0x770   :  { %v1907_v8 = vrot.slane %v1906_v28, 1 }
 0x771   :  { %v1898_v43 = vadd.f32 %v1897_v5, %v1896_v29 }
 0x772   :  { %v1908_v17 = vadd.f32 %v1907_v8, %v1906_v28 }
 0x774   :  { %v1909_v42 = vadd.f32 %v1908_v17, %v1898_v43 }
 0x776   :  { %v1910_v18 = vmul.f32 %v1909_v42, %v3463_v61  ;;  %v1987_v42 = vpop.permute.xlu0 %1986 }
 0x778   :  { %vm1911_vm10 = vcmp.lt.f32.partialorder %v1910_v18, %v1898_v43  ;;  %v1984_v43 = vrot.slane %v3435_v39, %v3115_v12 }
 0x779   :  { %v1912_v15 = vsel %vm1911_vm10, 1.0, %v2815_v13 }
 0x77a   :  { %v1913_v47 = vsub.f32 %v1912_v15, %v2957_v20  ;;  %1920 = vst.msk [vmem:[#allocation2 + $0x18] sm:$0x4] %vm471_vm12, %v1912_v15  ;;  %v1989_v15 = vmul.f32 %v1987_v42, %v1984_v43 }
 0x77c   :  { %v1917_v9 = vrot.slane %v1913_v47, %v3085_v57 }
 0x77e   :  { %v1918_v24 = vmul.f32 %v1917_v9, %v1867_v7  ;;  %v1993_v9 = vpop.permute.xlu1 %1992 }
 0x780   :  { %v1919_v23 = vadd.f32 %v1918_v24, %v1859_v26  ;;  %v1999_v24 = vrot.slane %v3451_v22, %v3115_v12 }
 0x782   :  { %v1930_v2 = vadd.f32 %v1929_v0, %v1919_v23 }
 0x784   :  { %v1935_v10 = vsub.f32 %v1930_v2, %v1933_v32  ;;  %v1940_v59 = vsub.f32 %v1930_v2, %v1939_v37 }
 0x786   :  { %v1941_v14 = vmax.f32 %v1940_v59, %v1935_v10 }
 0x788   :  { %v1942_v62 = vsel %vm310_vm7, %v1941_v14, -inf }
 0x789   :  { %v1943_v41 = vrot.slane %v1942_v62, 4 }
 0x78b   :  { %v1944_v27 = vmax.f32 %v1942_v62, %v1943_v41 }
 0x78d   :  { %v1945_v11 = vrot.slane %v1944_v27, 2 }
 0x78f   :  { %v1946_v1 = vmax.f32 %v1944_v27, %v1945_v11 }
 0x791   :  { %v1947_v60 = vrot.slane %v1946_v1, 1 }
 0x793   :  { %v1948_v57 = vmax.f32 %v1946_v1, %v1947_v60 }
 0x795   :  { %v1949_v33 = vsub.f32 %v1935_v10, %v1948_v57  ;;  %v1959_v51 = vsub.f32 %v1940_v59, %v1948_v57 }
 0x797   :  { %v1950_v7 = vmul.f32 1.442695, %v1949_v33  ;;  %v1960_v26 = vmul.f32 1.442695, %v1959_v51 }
 0x799   :  { %2728 = vpow2.f32 %v1950_v7 }
 0x79a   :  { %2730 = vpow2.f32 %v1960_v26 }
 0x7a3   :  { %v2729_v54 = vpop.eup %2728 }
 0x7a4   :  { %v2731_v31 = vpop.eup %2730  ;;  %v1952_v21 = vsel %vm310_vm7, %v2729_v54, 0.0 }
 0x7a5   :  { %v1953_v19 = vrot.slane %v1952_v21, 4  ;;  %v1962_v36 = vsel %vm310_vm7, %v2731_v31, 0.0 }
 0x7a6   :  { %v1963_v35 = vrot.slane %v1962_v36, 4 }
 0x7a7   :  { %v1954_v30 = vadd.f32 %v1953_v19, %v1952_v21 }
 0x7a8   :  { %v1964_v3 = vadd.f32 %v1963_v35, %v1962_v36 }
 0x7a9   :  { %v1955_v53 = vrot.slane %v1954_v30, 2 }
 0x7aa   :  { %v1965_v38 = vrot.slane %v1964_v3, 2 }
 0x7ab   :  { %v1956_v44 = vadd.f32 %v1955_v53, %v1954_v30 }
 0x7ac   :  { %v1966_v46 = vadd.f32 %v1965_v38, %v1964_v3 }
 0x7ad   :  { %v1957_v49 = vrot.slane %v1956_v44, 1 }
 0x7ae   :  { %v1967_v58 = vrot.slane %v1966_v46, 1 }
 0x7af   :  { %v1958_v48 = vadd.f32 %v1957_v49, %v1956_v44 }
 0x7b0   :  { %v1968_v29 = vadd.f32 %v1967_v58, %v1966_v46  ;;  %v2044_v58 = vrot.slane %v3435_v39, %v3130_v25 }
 0x7b2   :  { %v1969_v28 = vadd.f32 %v1968_v29, %v1958_v48  ;;  %v2047_v29 = vpop.permute.xlu1 %2046 }
 0x7b4   :  { %v1970_v5 = vmul.f32 %v1969_v28, %v3463_v61 }
 0x7b6   :  { %vm1971_vm12 = vcmp.lt.f32.partialorder %v1970_v5, %v1958_v48  ;;  %v2049_v5 = vmul.f32 %v2047_v29, %v2044_v58 }
 0x7b7   :  { %v1972_v8 = vsel %vm1971_vm12, 1.0, %v2815_v13 }
 0x7b8   :  { %v1973_v17 = vsub.f32 %v1972_v8, %v2957_v20  ;;  %1980 = vst.msk [vmem:[#allocation2 + $0x18] sm:$0x8] %vm532_vm14, %v1972_v8 }
 0x7ba   :  { %v1977_v18 = vrot.slane %v1973_v17, %v3100_v4  ;;  %v2053_v17 = vpop.permute.xlu0 %2052 }
 0x7bc   :  { %v1978_v40 = vmul.f32 %v1977_v18, %v1927_v34 }
 0x7be   :  { %v1979_v47 = vadd.f32 %v1978_v40, %v1919_v23 }
 0x7c0   :  { %v1990_v0 = vadd.f32 %v1989_v15, %v1979_v47  ;;  %v2059_v15 = vrot.slane %v3451_v22, %v3130_v25 }
 0x7c2   :  { %v1995_v2 = vsub.f32 %v1990_v0, %v1993_v9  ;;  %v2000_v37 = vsub.f32 %v1990_v0, %v1999_v24 }
 0x7c4   :  { %v2001_v32 = vmax.f32 %v2000_v37, %v1995_v2 }
 0x7c6   :  { %v2002_v10 = vsel %vm310_vm7, %v2001_v32, -inf }
 0x7c7   :  { %v2003_v59 = vrot.slane %v2002_v10, 4 }
 0x7c9   :  { %v2004_v14 = vmax.f32 %v2002_v10, %v2003_v59 }
 0x7cb   :  { %v2005_v62 = vrot.slane %v2004_v14, 2 }
 0x7cd   :  { %v2006_v41 = vmax.f32 %v2004_v14, %v2005_v62 }
 0x7cf   :  { %v2007_v27 = vrot.slane %v2006_v41, 1 }
 0x7d1   :  { %v2008_v11 = vmax.f32 %v2006_v41, %v2007_v27 }
 0x7d3   :  { %v2009_v4 = vsub.f32 %v1995_v2, %v2008_v11  ;;  %v2019_v1 = vsub.f32 %v2000_v37, %v2008_v11 }
 0x7d5   :  { %v2010_v34 = vmul.f32 1.442695, %v2009_v4  ;;  %v2020_v23 = vmul.f32 1.442695, %v2019_v1 }
 0x7d7   :  { %2732 = vpow2.f32 %v2010_v34 }
 0x7d8   :  { %2734 = vpow2.f32 %v2020_v23 }
 0x7e1   :  { %v2733_v60 = vpop.eup %2732 }
 0x7e2   :  { %v2735_v57 = vpop.eup %2734  ;;  %v2012_v33 = vsel %vm310_vm7, %v2733_v60, 0.0 }
 0x7e3   :  { %v2013_v51 = vrot.slane %v2012_v33, 4  ;;  %v2022_v7 = vsel %vm310_vm7, %v2735_v57, 0.0 }
 0x7e4   :  { %v2023_v26 = vrot.slane %v2022_v7, 4 }
 0x7e5   :  { %v2014_v54 = vadd.f32 %v2013_v51, %v2012_v33 }
 0x7e6   :  { %v2024_v31 = vadd.f32 %v2023_v26, %v2022_v7 }
 0x7e7   :  { %v2015_v21 = vrot.slane %v2014_v54, 2 }
 0x7e8   :  { %v2025_v19 = vrot.slane %v2024_v31, 2 }
 0x7e9   :  { %v2016_v36 = vadd.f32 %v2015_v21, %v2014_v54 }
 0x7ea   :  { %v2026_v35 = vadd.f32 %v2025_v19, %v2024_v31 }
 0x7eb   :  { %v2017_v30 = vrot.slane %v2016_v36, 1 }
 0x7ec   :  { %v2027_v3 = vrot.slane %v2026_v35, 1 }
 0x7ed   :  { %v2018_v53 = vadd.f32 %v2017_v30, %v2016_v36  ;;  %v2104_v30 = vrot.slane %v3435_v39, %v3145_v6 }
 0x7ee   :  { %v2028_v38 = vadd.f32 %v2027_v3, %v2026_v35 }
 0x7f0   :  { %v2029_v44 = vadd.f32 %v2028_v38, %v2018_v53  ;;  %v2107_v38 = vpop.permute.xlu1 %2106 }
 0x7f2   :  { %v2030_v46 = vmul.f32 %v2029_v44, %v3463_v61  ;;  %v2109_v44 = vmul.f32 %v2107_v38, %v2104_v30 }
 0x7f4   :  { %vm2031_vm14 = vcmp.lt.f32.partialorder %v2030_v46, %v2018_v53 }
 0x7f5   :  { %v2032_v49 = vsel %vm2031_vm14, 1.0, %v2815_v13 }
 0x7f6   :  { %v2033_v48 = vsub.f32 %v2032_v49, %v2957_v20  ;;  %2040 = vst.msk [vmem:[#allocation2 + $0x18] sm:$0x10] %vm593_vm0, %v2032_v49 }
 0x7f8   :  { %v2037_v28 = vrot.slane %v2033_v48, %v3115_v12  ;;  %v2119_v48 = vrot.slane %v3451_v22, %v3145_v6 }
 0x7fa   :  { %v2038_v8 = vmul.f32 %v2037_v28, %v1987_v42  ;;  %v2113_v28 = vpop.permute.xlu1 %2112 }
 0x7fc   :  { %v2039_v43 = vadd.f32 %v2038_v8, %v1979_v47 }
 0x7fe   :  { %v2050_v18 = vadd.f32 %v2049_v5, %v2039_v43 }
 0x800   :  { %v2060_v40 = vsub.f32 %v2050_v18, %v2059_v15  ;;  %v2055_v9 = vsub.f32 %v2050_v18, %v2053_v17 }
 0x802   :  { %v2061_v0 = vmax.f32 %v2060_v40, %v2055_v9 }
 0x804   :  { %v2062_v24 = vsel %vm310_vm7, %v2061_v0, -inf }
 0x805   :  { %v2063_v2 = vrot.slane %v2062_v24, 4 }
 0x807   :  { %v2064_v37 = vmax.f32 %v2062_v24, %v2063_v2 }
 0x809   :  { %v2065_v32 = vrot.slane %v2064_v37, 2 }
 0x80b   :  { %v2066_v10 = vmax.f32 %v2064_v37, %v2065_v32 }
 0x80d   :  { %v2067_v59 = vrot.slane %v2066_v10, 1 }
 0x80f   :  { %v2068_v14 = vmax.f32 %v2066_v10, %v2067_v59 }
 0x811   :  { %v2069_v12 = vsub.f32 %v2055_v9, %v2068_v14  ;;  %v2079_v62 = vsub.f32 %v2060_v40, %v2068_v14 }
 0x813   :  { %v2070_v42 = vmul.f32 1.442695, %v2069_v12  ;;  %v2080_v47 = vmul.f32 1.442695, %v2079_v62 }
 0x815   :  { %2736 = vpow2.f32 %v2070_v42 }
 0x816   :  { %2738 = vpow2.f32 %v2080_v47 }
 0x81f   :  { %v2737_v41 = vpop.eup %2736 }
 0x820   :  { %v2739_v27 = vpop.eup %2738  ;;  %v2072_v11 = vsel %vm310_vm7, %v2737_v41, 0.0 }
 0x821   :  { %v2073_v4 = vrot.slane %v2072_v11, 4  ;;  %v2082_v1 = vsel %vm310_vm7, %v2739_v27, 0.0 }
 0x822   :  { %v2083_v34 = vrot.slane %v2082_v1, 4 }
 0x823   :  { %v2074_v23 = vadd.f32 %v2073_v4, %v2072_v11 }
 0x824   :  { %v2084_v60 = vadd.f32 %v2083_v34, %v2082_v1 }
 0x825   :  { %v2075_v57 = vrot.slane %v2074_v23, 2 }
 0x826   :  { %v2085_v33 = vrot.slane %v2084_v60, 2 }
 0x827   :  { %v2076_v51 = vadd.f32 %v2075_v57, %v2074_v23 }
 0x828   :  { %v2086_v7 = vadd.f32 %v2085_v33, %v2084_v60 }
 0x829   :  { %v2077_v26 = vrot.slane %v2076_v51, 1 }
 0x82a   :  { %v2087_v54 = vrot.slane %v2086_v7, 1 }
 0x82b   :  { %v2078_v31 = vadd.f32 %v2077_v26, %v2076_v51 }
 0x82c   :  { %v2088_v21 = vadd.f32 %v2087_v54, %v2086_v7  ;;  %v2164_v7 = vrot.slane %v3435_v39, %v3160_v16  ;;  %v2167_v54 = vpop.permute.xlu0 %2166 }
 0x82e   :  { %v2089_v19 = vadd.f32 %v2088_v21, %v2078_v31  ;;  %v2169_v21 = vmul.f32 %v2167_v54, %v2164_v7 }
 0x830   :  { %v2090_v36 = vmul.f32 %v2089_v19, %v3463_v61 }
 0x832   :  { %vm2091_vm0 = vcmp.lt.f32.partialorder %v2090_v36, %v2078_v31 }
 0x833   :  { %v2092_v35 = vsel %vm2091_vm0, 1.0, %v2815_v13 }
 0x834   :  { %v2093_v3 = vsub.f32 %v2092_v35, %v2957_v20  ;;  %2100 = vst.msk [vmem:[#allocation2 + $0x18] sm:$0x20] %vm654_vm2, %v2092_v35  ;;  %v2173_v35 = vpop.permute.xlu1 %2172 }
 0x836   :  { %v2097_v53 = vrot.slane %v2093_v3, %v3130_v25  ;;  %v2179_v3 = vrot.slane %v3451_v22, %v3160_v16 }
 0x838   :  { %v2098_v46 = vmul.f32 %v2097_v53, %v2047_v29 }
 0x83a   :  { %v2099_v49 = vadd.f32 %v2098_v46, %v2039_v43 }
 0x83c   :  { %v2110_v58 = vadd.f32 %v2109_v44, %v2099_v49 }
 0x83e   :  { %v2115_v5 = vsub.f32 %v2110_v58, %v2113_v28  ;;  %v2120_v8 = vsub.f32 %v2110_v58, %v2119_v48 }
 0x840   :  { %v2121_v17 = vmax.f32 %v2120_v8, %v2115_v5 }
 0x842   :  { %v2122_v18 = vsel %vm310_vm7, %v2121_v17, -inf }
 0x843   :  { %v2123_v15 = vrot.slane %v2122_v18, 4 }
 0x845   :  { %v2124_v40 = vmax.f32 %v2122_v18, %v2123_v15 }
 0x847   :  { %v2125_v9 = vrot.slane %v2124_v40, 2 }
 0x849   :  { %v2126_v0 = vmax.f32 %v2124_v40, %v2125_v9 }
 0x84b   :  { %v2127_v24 = vrot.slane %v2126_v0, 1 }
 0x84d   :  { %v2128_v25 = vmax.f32 %v2126_v0, %v2127_v24 }
 0x84f   :  { %v2129_v2 = vsub.f32 %v2115_v5, %v2128_v25  ;;  %v2139_v37 = vsub.f32 %v2120_v8, %v2128_v25 }
 0x851   :  { %v2130_v29 = vmul.f32 1.442695, %v2129_v2  ;;  %v2140_v43 = vmul.f32 1.442695, %v2139_v37 }
 0x853   :  { %2740 = vpow2.f32 %v2130_v29 }
 0x854   :  { %2742 = vpow2.f32 %v2140_v43 }
 0x85d   :  { %v2741_v32 = vpop.eup %2740 }
 0x85e   :  { %v2743_v10 = vpop.eup %2742  ;;  %v2132_v59 = vsel %vm310_vm7, %v2741_v32, 0.0 }
 0x85f   :  { %v2133_v14 = vrot.slane %v2132_v59, 4  ;;  %v2142_v12 = vsel %vm310_vm7, %v2743_v10, 0.0 }
 0x860   :  { %v2143_v62 = vrot.slane %v2142_v12, 4 }
 0x861   :  { %v2134_v42 = vadd.f32 %v2133_v14, %v2132_v59 }
 0x862   :  { %v2144_v47 = vadd.f32 %v2143_v62, %v2142_v12  ;;  %v2322_v62 = vld [vmem:[%s3616_s3 + $0x8] sm:$0xff] }
 0x863   :  { %v2135_v41 = vrot.slane %v2134_v42, 2 }
 0x864   :  { %v2145_v27 = vrot.slane %v2144_v47, 2 }
 0x865   :  { %v2136_v11 = vadd.f32 %v2135_v41, %v2134_v42  ;;  %v2321_v41 = vld [vmem:[%s3616_s3] sm:$0xff] }
 0x866   :  { %v2146_v4 = vadd.f32 %v2145_v27, %v2144_v47  ;;  %v2216_v47 = vld [vmem:[#allocation2 + $0x10] sm:$0xff] }
 0x867   :  { %v2137_v1 = vrot.slane %v2136_v11, 1  ;;  %v2323_v27 = vld [vmem:[%s3616_s3 + $0x10] sm:$0xff] }
 0x868   :  { %v2147_v34 = vrot.slane %v2146_v4, 1 }
 0x869   :  { %v2138_v23 = vadd.f32 %v2137_v1, %v2136_v11  ;;  %v2770_v11 = vld [vmem:[#allocation2 + $0x8] sm:$0xff]  ;;  %v2771_v1 = vld [vmem:[#allocation2] sm:$0xff] }
 0x86a   :  { %v2148_v60 = vadd.f32 %v2147_v34, %v2146_v4  ;;  %v2349_v4 = vadd.f32 1.0, %v2770_v11  ;;  %v2325_v34 = vmul.f32 %v2771_v1, %v2321_v41 }
 0x86c   :  { %v2149_v57 = vadd.f32 %v2148_v60, %v2138_v23  ;;  %v2348_v60 = vadd.f32 1.0, %v2771_v1  ;;  %v2330_v7 = vsel %vm2329_vm13, %v2325_v34, 0.0 }
 0x86e   :  { %v2150_v33 = vmul.f32 %v2149_v57, %v3463_v61  ;;  %v2350_v57 = vadd.f32 1.0, %v2216_v47  ;;  %v2352_v54 = vmul.f32 %v2348_v60, %v3043_v56 }
 0x870   :  { %vm2151_vm2 = vcmp.lt.f32.partialorder %v2150_v33, %v2138_v23  ;;  %v2327_v23 = vmul.f32 %v2323_v27, %v2216_v47  ;;  %v2353_v33 = vmul.f32 %v2349_v4, %v3186_v55 }
 0x871   :  { %v2152_v51 = vsel %vm2151_vm2, 1.0, %v2815_v13 }
 0x872   :  { %v2153_v26 = vsub.f32 %v2152_v51, %v2957_v20  ;;  %2160 = vst.msk [vmem:[#allocation2 + $0x18] sm:$0x40] %vm715_vm4, %v2152_v51  ;;  %v2324_v51 = vld [vmem:[%s3616_s3 + $0x18] sm:$0xff] }
 0x874   :  { %v2157_v31 = vrot.slane %v2153_v26, %v3145_v6  ;;  %v2333_v26 = vsel %vm2329_vm13, %v2327_v23, 0.0 }
 0x876   :  { %v2158_v19 = vmul.f32 %v2157_v31, %v2107_v38  ;;  %v2354_v31 = vmul.f32 %v2350_v57, %v3317_v45 }
 0x878   :  { %v2159_v36 = vadd.f32 %v2158_v19, %v2099_v49 }
 0x87a   :  { %v2170_v30 = vadd.f32 %v2169_v21, %v2159_v36 }
 0x87c   :  { %v2175_v53 = vsub.f32 %v2170_v30, %v2173_v35  ;;  %v2180_v44 = vsub.f32 %v2170_v30, %v2179_v3  ;;  %v2357_v3 = vsel %vm2329_vm13, %v2353_v33, 0.0 }
 0x87e   :  { %v2181_v46 = vmax.f32 %v2180_v44, %v2175_v53 }
 0x880   :  { %v2182_v39 = vsel %vm310_vm7, %v2181_v46, -inf }
 0x881   :  { %v2183_v58 = vrot.slane %v2182_v39, 4 }
 0x883   :  { %v2184_v20 = vmax.f32 %v2182_v39, %v2183_v58  ;;  %v2356_v39 = vsel %vm2329_vm13, %v2352_v54, 0.0  ;;  %v2359_v58 = vsel %vm2329_vm13, %v2354_v31, 0.0 }
 0x885   :  { %v2185_v48 = vrot.slane %v2184_v20, 2 }
 0x887   :  { %v2186_v28 = vmax.f32 %v2184_v20, %v2185_v48  ;;  %v2358_v48 = vadd.f32 %v2357_v3, %v2356_v39 }
 0x889   :  { %v2187_v5 = vrot.slane %v2186_v28, 1 }
 0x88b   :  { %v2188_v8 = vmax.f32 %v2186_v28, %v2187_v5  ;;  %v2360_v5 = vadd.f32 %v2359_v58, %v2358_v48 }
 0x88d   :  { %v2189_v6 = vsub.f32 %v2175_v53, %v2188_v8  ;;  %v2199_v17 = vsub.f32 %v2180_v44, %v2188_v8 }
 0x88f   :  { %v2190_v38 = vmul.f32 1.442695, %v2189_v6  ;;  %v2200_v49 = vmul.f32 1.442695, %v2199_v17 }
 0x891   :  { %2744 = vpow2.f32 %v2190_v38 }
 0x892   :  { %2746 = vpow2.f32 %v2200_v49  ;;  %v2378_v49 = vand.u32 2147483647, %v3186_v55 }
 0x89b   :  { %v2745_v18 = vpop.eup %2744 }
 0x89c   :  { %v2747_v15 = vpop.eup %2746  ;;  %v2192_v16 = vsel %vm310_vm7, %v2745_v18, 0.0  ;;  %v2377_v18 = vand.u32 2147483647, %v3043_v56 }
 0x89d   :  { %v2193_v22 = vrot.slane %v2192_v16, 4  ;;  %v2202_v40 = vsel %vm310_vm7, %v2747_v15, 0.0 }
 0x89e   :  { %v2203_v9 = vrot.slane %v2202_v40, 4 }
 0x89f   :  { %v2194_v0 = vadd.f32 %v2193_v22, %v2192_v16  ;;  %v2379_v22 = vand.u32 2147483647, %v3317_v45 }
 0x8a0   :  { %v2204_v24 = vadd.f32 %v2203_v9, %v2202_v40  ;;  %v2382_v40 = vsub.f32 0.0, %v2378_v49 }
 0x8a1   :  { %v2195_v25 = vrot.slane %v2194_v0, 2 }
 0x8a2   :  { %v2205_v2 = vrot.slane %v2204_v24, 2 }
 0x8a3   :  { %v2196_v37 = vadd.f32 %v2195_v25, %v2194_v0  ;;  %v2381_v0 = vsub.f32 0.0, %v2377_v18  ;;  %v2380_v25 = vand.u32 2147483647, %v3447_v52 }
 0x8a4   :  { %v2206_v29 = vadd.f32 %v2205_v2, %v2204_v24  ;;  %v2383_v24 = vsub.f32 0.0, %v2379_v22  ;;  %v2387_v2 = vmul.f32 1.442695, %v2382_v40 }
 0x8a5   :  { %v2197_v43 = vrot.slane %v2196_v37, 1 }
 0x8a6   :  { %v2207_v32 = vrot.slane %v2206_v29, 1  ;;  %2748 = vpow2.f32 %v2387_v2 }
 0x8a7   :  { %v2198_v10 = vadd.f32 %v2197_v43, %v2196_v37  ;;  %v2389_v43 = vmul.f32 1.442695, %v2383_v24 }
 0x8a8   :  { %v2208_v59 = vadd.f32 %v2207_v32, %v2206_v29  ;;  %v2384_v32 = vsub.f32 0.0, %v2380_v25 }
 0x8aa   :  { %v2209_v14 = vadd.f32 %v2208_v59, %v2198_v10 }
 0x8ac   :  { %v2210_v12 = vmul.f32 %v2209_v14, %v3463_v61  ;;  %v2326_v61 = vmul.f32 %v2770_v11, %v2322_v62  ;;  %v2391_v14 = vmul.f32 1.442695, %v2384_v32 }
 0x8ae   :  { %vm2211_vm4 = vcmp.lt.f32.partialorder %v2210_v12, %v2198_v10 }
 0x8af   :  { %v2212_v42 = vsel %vm2211_vm4, 1.0, %v2815_v13  ;;  %v2331_v13 = vsel %vm2329_vm13, %v2326_v61, 0.0 }
 0x8b0   :  { %2213 = vst.msk [vmem:[#allocation2 + $0x18] sm:$0x80] %vm776_vm9, %v2212_v42  ;;  %v2332_v19 = vadd.f32 %v2331_v13, %v2330_v7  ;;  %v2749_v62 = vpop.eup %2748 }
 0x8b1   :  { %v2394_v41 = vadd.f32 1.0, %v2749_v62 }
 0x8b2   :  { %v2334_v53 = vadd.f32 %v2333_v26, %v2332_v19  ;;  %v2374_v19 = vmax.f32 %v3186_v55, 0.0 }
 0x8b7   :  { %v2217_v21 = vld [vmem:[#allocation2 + $0x18] sm:$0xff] }
 0x8b8   :  { %v2513_v36 = vpack.c.bf16 %v2217_v21, %v2216_v47  ;;  %v2328_v35 = vmul.f32 %v2324_v51, %v2217_v21  ;;  %v2351_v30 = vadd.f32 1.0, %v2217_v21 }
 0x8ba   :  { %2514 = vmatpush3.bf16.msra.mxu0 %v2513_v36  ;;  %v2335_v44 = vsel %vm2329_vm13, %v2328_v35, 0.0  ;;  %v2355_v46 = vmul.f32 %v2351_v30, %v3447_v52  ;;  %v2373_v36 = vmax.f32 %v3043_v56, 0.0  ;;  %v2375_v35 = vmax.f32 %v3317_v45, 0.0 }
 0x8bb   :  { %v2336_v20 = vadd.f32 %v2335_v44, %v2334_v53 }
 0x8bc   :  { %v2361_v28 = vsel %vm2329_vm13, %v2355_v46, 0.0  ;;  %v2376_v46 = vmax.f32 %v3447_v52, 0.0 }
 0x8bd   :  { %2337 = vadd.xlane.f32.xlu0 %v2336_v20  ;;  %2497 = vmatmul.mubr.msk.f32.vlgmr.msra.gmra.mrb[4].mxu0 %vm202_vm6, %v3430_v50  ;;  %v2362_v8 = vadd.f32 %v2361_v28, %v2360_v5 }
 0x8c1   :  { %2363 = vadd.xlane.f32.xlu0 %v2362_v8 }
 0x94a   :  { %v2338_v49 = vpop.xlane.xlu0 %2337 }
 0x94e   :  { %v2364_v18 = vpop.xlane.xlu0 %2363 }
 0x990   :  { %v2284_v6 = vpop.f32.mrb[4].mxu0 }
 0x991   :  { %v2288_v17 = vadd.f32 %v2284_v6, %v3055_v63  ;;  %v2498_v38 = vpop.f32.mrb[5].mxu0  ;;  %v2385_v63 = vmul.f32 1.442695, %v2381_v0 }
 0x993   :  { %v2289_v15 = vsel %vm310_vm7, %v2288_v17, -inf  ;;  %2750 = vpow2.f32 %v2385_v63 }
 0x994   :  { %v2290_v16 = vrot.slane %v2289_v15, 4  ;;  %2752 = vpow2.f32 %v2389_v43 }
 0x996   :  { %v2291_v9 = vmax.f32 %v2289_v15, %v2290_v16  ;;  %v2339_v15 = vrot.slane %v2338_v49, 4  ;;  %v2365_v16 = vrot.slane %v2364_v18, 4 }
 0x998   :  { %v2292_v50 = vrot.slane %v2291_v9, 2  ;;  %v2340_v22 = vadd.f32 %v2339_v15, %v2338_v49  ;;  %v2366_v40 = vadd.f32 %v2365_v16, %v2364_v18 }
 0x99a   :  { %v2293_v37 = vmax.f32 %v2291_v9, %v2292_v50  ;;  %v2341_v9 = vrot.slane %v2340_v22, 2  ;;  %v2367_v50 = vrot.slane %v2366_v40, 2 }
 0x99c   :  { %v2294_v29 = vrot.slane %v2293_v37, 1  ;;  %v2368_v63 = vadd.f32 %v2367_v50, %v2366_v40 }
 0x99d   :  { %v2751_v42 = vpop.eup %2750 }
 0x99e   :  { %v2295_v10 = vmax.f32 %v2293_v37, %v2294_v29  ;;  %v2753_v47 = vpop.eup %2752  ;;  %v2393_v27 = vadd.f32 1.0, %v2751_v42  ;;  %v2342_v37 = vadd.f32 %v2341_v9, %v2340_v22  ;;  %v2369_v62 = vrot.slane %v2368_v63, 1 }
 0x99f   :  { %v2395_v61 = vadd.f32 1.0, %v2753_v47 }
 0x9a0   :  { %v2296_v59 = vsub.f32 %v2288_v17, %v2295_v10 }
 0x9a2   :  { %v2297_v12 = vmul.f32 1.442695, %v2296_v59  ;;  %v2343_v59 = vrot.slane %v2342_v37, 1 }
 0x9a4   :  { %2754 = vpow2.f32 %v2297_v12 }
 0x9a5   :  { %2756 = vpow2.f32 %v2391_v14 }
 0x9a6   :  { %2758 = vlog2.f32 %v2394_v41  ;;  %v2344_v41 = vadd.f32 %v2343_v59, %v2342_v37 }
 0x9a7   :  { %2760 = vlog2.f32 %v2393_v27  ;;  %v2370_v27 = vadd.f32 %v2369_v62, %v2368_v63 }
 0x9a8   :  { %2762 = vlog2.f32 %v2395_v61 }
 0x9ae   :  { %v2755_v11 = vpop.eup %2754 }
 0x9af   :  { %v2757_v4 = vpop.eup %2756  ;;  %v2299_v1 = vsel %vm310_vm7, %v2755_v11, 0.0 }
 0x9b0   :  { %v2300_v34 = vrot.slane %v2299_v1, 4  ;;  %v2396_v60 = vadd.f32 1.0, %v2757_v4  ;;  %v2759_v51 = vpop.eup %2758 }
 0x9b1   :  { %v2761_v7 = vpop.eup %2760  ;;  %v2400_v21 = vmul.f32 0.6931472, %v2759_v51 }
 0x9b2   :  { %v2301_v23 = vadd.f32 %v2300_v34, %v2299_v1  ;;  %2764 = vlog2.f32 %v2396_v60  ;;  %v2763_v54 = vpop.eup %2762  ;;  %v2398_v31 = vmul.f32 0.6931472, %v2761_v7 }
 0x9b3   :  { %v2402_v30 = vmul.f32 0.6931472, %v2763_v54  ;;  %v2406_v44 = vadd.f32 %v2400_v21, %v2374_v19 }
 0x9b4   :  { %v2302_v57 = vrot.slane %v2301_v23, 2  ;;  %v2405_v53 = vadd.f32 %v2398_v31, %v2373_v36 }
 0x9b5   :  { %v2407_v58 = vadd.f32 %v2402_v30, %v2375_v35  ;;  %v2410_v48 = vsel %vm2329_vm13, %v2406_v44, 0.0 }
 0x9b6   :  { %v2303_v13 = vadd.f32 %v2302_v57, %v2301_v23  ;;  %v2409_v20 = vsel %vm2329_vm13, %v2405_v53, 0.0 }
 0x9b7   :  { %v2412_v55 = vsel %vm2329_vm13, %v2407_v58, 0.0  ;;  %v2411_v56 = vadd.f32 %v2410_v48, %v2409_v20 }
 0x9b8   :  { %v2304_v33 = vrot.slane %v2303_v13, 1 }
 0x9b9   :  { %v2413_v45 = vadd.f32 %v2412_v55, %v2411_v56 }
 0x9ba   :  { %v2305_v26 = vadd.f32 %v2304_v33, %v2303_v13 }
 0x9bc   :  { %2766 = vlog2.f32 %v2305_v26  ;;  %v2765_v3 = vpop.eup %2764 }
 0x9bd   :  { %v2404_v39 = vmul.f32 0.6931472, %v2765_v3 }
 0x9bf   :  { %v2408_v8 = vadd.f32 %v2404_v39, %v2376_v46 }
 0x9c1   :  { %v2414_v38 = vsel %vm2329_vm13, %v2408_v8, 0.0 }
 0x9c2   :  { %v2415_v52 = vadd.f32 %v2414_v38, %v2413_v45 }
 0x9c6   :  { %v2767_v28 = vpop.eup %2766 }
 0x9c7   :  { %v2307_v5 = vmul.f32 0.6931472, %v2767_v28 }
 0x9c9   :  { %v2308_v6 = vadd.f32 %v2307_v5, %v2295_v10 }
 0x9cb   :  { %v2309_v17 = vsel %vm349_vm8, %v2308_v6, 0.0 }
 0x9cc   :  { %2310 = vadd.xlane.f32.xlu1 %v2309_v17 }
 0x9d0   :  { %2416 = vadd.xlane.f32.xlu1 %v2415_v52 }
 0xa59   :  { %v2311_v0 = vpop.xlane.xlu1 %2310 }
 0xa5a   :  { %v2312_v24 = vrot.slane %v2311_v0, 4 }
 0xa5c   :  { %v2313_v25 = vadd.f32 %v2312_v24, %v2311_v0 }
 0xa5d   :  { %v2417_v2 = vpop.xlane.xlu1 %2416 }
 0xa5e   :  { %v2314_v29 = vrot.slane %v2313_v25, 2  ;;  %v2418_v43 = vrot.slane %v2417_v2, 4 }
 0xa60   :  { %v2419_v32 = vadd.f32 %v2418_v43, %v2417_v2  ;;  %v2315_v10 = vadd.f32 %v2314_v29, %v2313_v25 }
 0xa62   :  { %v2420_v14 = vrot.slane %v2419_v32, 2  ;;  %v2316_v12 = vrot.slane %v2315_v10, 1 }
 0xa64   :  { %v2421_v42 = vadd.f32 %v2420_v14, %v2419_v32  ;;  %v2317_v47 = vadd.f32 %v2316_v12, %v2315_v10 }
 0xa66   :  { %2515 = vpush %v2317_v47  ;;  %v2422_v11 = vrot.slane %v2421_v42, 1 }
 0xa67   :  { %2517 = vpush %v2344_v41 }
 0xa68   :  { %2519 = vpush %v2370_v27  ;;  %v2423_v61 = vadd.f32 %v2422_v11, %v2421_v42 }
 0xa6a   :  { %2521 = vpush %v2423_v61 }
 0xa97   :  { %s2516_s3 = spop %2515 }
 0xa98   :  { %s2518_s2 = spop %2517  ;;  %s2319_s27 = smul.f32 0.125, %s2516_s3 }
 0xa99   :  { %s2346_s25 = smul.f32 0.0625, %s2518_s2  ;;  %s2520_s26 = spop %2519 }
 0xa9a   :  { %s2372_s12 = smul.f32 0.0625, %s2520_s26 }
 0xa9b   :  { %s2347_s30 = sadd.f32 %s2346_s25, %s3621_s8  ;;  %s2522_s10 = spop %2521 }
 0xa9c   :  { %s2425_s14 = smul.f32 0.125, %s2522_s10 }
 0xa9d   :  { %s2426_s11 = ssub.f32 %s2347_s30, %s2319_s27 }
 0xa9f   :  { %s2427_s13 = sadd.f32 %s2426_s11, %s2372_s12 }
 0xaa1   :  { %s2428_s15 = ssub.f32 %s2427_s13, %s2425_s14 }
 0xaa3   :  { %2430 = sst [smem:[#allocation7]] %s2428_s15 }
 0xaa4   :  { %2803 = shalt.err (!%p2800_p10)
}
 0xaa5   :  { %s2847_s8 = smov [#allocation7]  }
 0xaa6   :  { %2438 = dma.smem_to_hbm %s2847_s8, 16, %s3622_s9, [#allocation6]  }
 0xaa7   :  { %2806 = dma.done.wait [#allocation6], 16  }
 0xaa8   :  { %2807 = vsyncadd [#allocation6], 4294967280 }
 0xaa9   :  { %2442 = sfence }
 0xaaa   :  { %2443 = vsyncpa [#allocation5], 1 }
 0xaab   :  { %2444 = vsyncpa [#allocation6], 1 }

</bundles_post_ra>
